<compile_context>
chip_gen: v7x
topology: tpu7x:2x2x1
jax: 0.10.0
libtpu: 0.0.40
codegen_flags: <defaults>
</compile_context>

<pallas_src>
import jax
import jax.numpy as jnp
from jax import lax
from jax.experimental import pallas as pl
from jax.experimental.pallas import tpu as pltpu


# ------------------------------ fused kernel --------------------------------

def net_kernel(x_ref, t1_ref, b1_ref, t2_ref, b2_ref,
               wf1_ref, bf1_ref, wf2_ref, bf2_ref, o_ref):
    """Whole network for one batch tile.

    x_ref  : (BT, 784)      input images (lane-dense rows)
    t1_ref : (140, 512)     conv1 Toeplitz slab, bf16
                            [di*28+p, s*256 + wp*16 + c], w = 2*wp + s
    b1_ref : (1, 256)       conv1 bias at cols wp*16 + c (wp<12, c<10)
    t2_ref : (1280, 256)    conv2 Toeplitz slab, bf16
                            [di*256 + w*16 + ci, u*128 + jp*32 + oc], j = 2*jp + u
    b2_ref : (1, 128)       conv2 bias at cols jp*32 + oc (oc<20)
    wf1_ref: (512, 128)     fc1 (flatten folded in), bf16
    bf1_ref: (1, 128)       fc1 bias (50 real)
    wf2_ref: (128, 128)     fc2, bf16 (50x10 real)
    bf2_ref: (1, 128)       fc2 bias (10 real)
    o_ref  : (BT, 128)      logits (columns 0..9 are real)
    """
    BT = x_ref.shape[0]
    f32 = jnp.float32
    bf16 = jnp.bfloat16

    x = x_ref[...].reshape(BT, 28, 28)

    # ---- conv1 (1->10, k=5): one Toeplitz matmul, K = 5*28 = 140 ------------
    rows = jnp.concatenate([x[:, di:di + 24, :] for di in range(5)], axis=-1)
    rows = rows.reshape(BT * 24, 140).astype(bf16)
    acc1 = jnp.dot(rows, t1_ref[...], preferred_element_type=f32)   # (BT*24, 512)

    # ---- 2x2 maxpool + bias + relu (even/odd w split baked into T1 cols) ----
    mw = jnp.maximum(acc1[:, :256], acc1[:, 256:])                  # pooled over w
    mw = mw.reshape(BT * 12, 512)                                   # rows h -> (hp, t)
    y1 = jnp.maximum(jnp.maximum(mw[:, :256], mw[:, 256:]) + b1_ref[...], 0.0)
    y1 = y1.reshape(BT, 12, 256)                 # [b, hp, wp*16 + c]

    # ---- conv2 (10->20, k=5): one Toeplitz matmul, K = 5*16*16 = 1280 -------
    lhs2 = jnp.concatenate([y1[:, di:di + 8, :] for di in range(5)], axis=-1)
    lhs2 = lhs2.reshape(BT * 8, 1280).astype(bf16)
    acc2 = jnp.dot(lhs2, t2_ref[...], preferred_element_type=f32)   # (BT*8, 256)

    # ---- 2x2 maxpool + bias + relu (even/odd j split baked into T2 cols) ----
    mj = jnp.maximum(acc2[:, :128], acc2[:, 128:])                  # pooled over j
    mj = mj.reshape(BT * 4, 256)                                    # rows i -> (ip, t)
    y2 = jnp.maximum(jnp.maximum(mj[:, :128], mj[:, 128:]) + b2_ref[...], 0.0)
    # y2: (BT*4, 128), row = b*4 + ip, col = jp*32 + oc

    # ---- fc1 (+relu) and fc2 (NCHW flatten folded into the weights) ---------
    z = y2.reshape(BT, 512).astype(bf16)         # col = ip*128 + jp*32 + oc
    h1 = jnp.maximum(jnp.dot(z, wf1_ref[...], preferred_element_type=f32)
                     + bf1_ref[...], 0.0)
    out = jnp.dot(h1.astype(bf16), wf2_ref[...],
                  preferred_element_type=f32) + bf2_ref[...]
    o_ref[...] = out


# ------------------------ trace-time weight preparation ----------------------

def _prep_params(params):
    """Pad / permute / Toeplitz-ify PyTorch-layout parameters into kernel layouts.

    All padding is exact zeros (applied before the bf16 cast), so padded
    channels / positions stay zero through every stage and the first 10 output
    columns equal the real logits.
    """
    w1, b1, w2, b2, wf1, bf1, wf2, bf2 = [jnp.asarray(p, jnp.float32) for p in params]
    f32, bf16 = jnp.float32, jnp.bfloat16

    # conv1 -> T1[di*28 + p, s*256 + wp*16 + c] = w1[c, 0, di, p - w], w = 2*wp + s
    w1_ddc = jnp.transpose(w1[:, 0], (1, 2, 0))             # (di, dj, c)
    t1 = jnp.zeros((5, 28, 24, 16), f32)                    # (di, p, w, c16)
    for w in range(24):
        t1 = t1.at[:, w:w + 5, w, :10].set(w1_ddc)
    t1 = t1.reshape(5, 28, 12, 2, 16)                       # (di, p, wp, s, c)
    t1 = jnp.transpose(t1, (0, 1, 3, 2, 4))                 # (di, p, s, wp, c)
    t1 = jnp.pad(t1, ((0, 0), (0, 0), (0, 0), (0, 4), (0, 0)))   # wp: 12 -> 16
    T1 = t1.reshape(140, 512).astype(bf16)
    b1row = jnp.zeros((12, 16), f32).at[:, :10].set(jnp.broadcast_to(b1, (12, 10)))
    b1row = jnp.pad(b1row, ((0, 4), (0, 0))).reshape(1, 256)

    # conv2 -> T2[di*256 + w*16 + ci, u*128 + jp*32 + oc] = w2[oc, ci, di, w - j],
    # with j = 2*jp + u.
    w2_ddco = jnp.transpose(w2, (2, 3, 1, 0))               # (di, dj, ci, oc)
    t2 = jnp.zeros((5, 12, 10, 8, 20), f32)                 # (di, w, ci, j, oc)
    for j in range(8):
        t2 = t2.at[:, j:j + 5, :, j, :].set(w2_ddco)
    t2 = jnp.pad(t2, ((0, 0), (0, 4), (0, 6), (0, 0), (0, 12)))  # w->16, ci->16, oc->32
    t2 = t2.reshape(5, 16, 16, 4, 2, 32)                    # (di, w, ci, jp, u, oc)
    t2 = jnp.transpose(t2, (0, 1, 2, 4, 3, 5))              # (di, w, ci, u, jp, oc)
    T2 = t2.reshape(1280, 256).astype(bf16)
    b2row = jnp.zeros((4, 32), f32).at[:, :20].set(
        jnp.broadcast_to(b2, (4, 20))).reshape(1, 128)

    # fc1 -> (512, 128): row ip*128 + jp*32 + ci maps to torch input index
    # ci*16 + ip*4 + jp (folds the NCHW .view(B,-1) flatten into the weights).
    wf1_t = jnp.transpose(wf1.reshape(50, 20, 4, 4), (2, 3, 1, 0))   # (ip, jp, ci, o)
    Wf1 = jnp.zeros((4, 4, 32, 128), f32).at[:, :, :20, :50].set(wf1_t)
    Wf1 = Wf1.reshape(512, 128).astype(bf16)
    bf1row = jnp.zeros((1, 128), f32).at[0, :50].set(bf1)

    Wf2 = jnp.zeros((128, 128), f32).at[:50, :10].set(wf2.T).astype(bf16)
    bf2row = jnp.zeros((1, 128), f32).at[0, :10].set(bf2)

    return T1, b1row, T2, b2row, Wf1, bf1row, Wf2, bf2row


def _full_spec(a):
    return pl.BlockSpec(a.shape, lambda *_: (0,) * a.ndim)


def net_forward(x, params, *, block_b=32):
    """x: (B, 1, 28, 28) float32 -> logits (B, 10). Matches Net.forward (eval)."""
    B = x.shape[0]
    bb = min(block_b, max(8, ((B + 7) // 8) * 8))
    xs = x.astype(jnp.float32).reshape(B, 28 * 28)          # lane-dense input rows
    pad = (-B) % bb
    if pad:
        xs = jnp.concatenate([xs, jnp.zeros((pad, 28 * 28), jnp.float32)], axis=0)
    Bp = B + pad

    consts = _prep_params(params)

    out = pl.pallas_call(
        net_kernel,
        grid=(Bp // bb,),
        in_specs=[pl.BlockSpec((bb, 28 * 28), lambda i: (i, 0))]
                 + [_full_spec(a) for a in consts],
        out_specs=pl.BlockSpec((bb, 128), lambda i: (i, 0)),
        out_shape=jax.ShapeDtypeStruct((Bp, 128), jnp.float32),
        compiler_params=pltpu.CompilerParams(
            dimension_semantics=("parallel",),
            vmem_limit_bytes=48 * 1024 * 1024),
    )(xs, *consts)
    return out[:B, :10]


# ---------------------- reference (pure JAX, no Pallas) ----------------------

def ref_forward(x, params):
    w1, b1, w2, b2, wf1, bf1, wf2, bf2 = params
    dn = ('NCHW', 'OIHW', 'NCHW')

    def block(y, w, b):
        y = lax.conv_general_dilated(y, w, (1, 1), 'VALID', dimension_numbers=dn,
                                     precision=lax.Precision.HIGHEST)
        y = y + b[None, :, None, None]
        y = lax.reduce_window(y, -jnp.inf, lax.max,
                              (1, 1, 2, 2), (1, 1, 2, 2), 'VALID')
        return jnp.maximum(y, 0.0)

    y = block(x, w1, b1)
    y = block(y, w2, b2)
    y = y.reshape(y.shape[0], -1)
    y = jnp.maximum(y @ wf1.T + bf1, 0.0)
    return y @ wf2.T + bf2


# --------------------------------- params ------------------------------------

def init_params(key):
    ks = jax.random.split(key, 8)

    def u(k, shape, fan_in):
        bound = 1.0 / (fan_in ** 0.5)
        return jax.random.uniform(k, shape, jnp.float32, -bound, bound)

    w1 = u(ks[0], (10, 1, 5, 5), 25);    b1 = u(ks[1], (10,), 25)
    w2 = u(ks[2], (20, 10, 5, 5), 250);  b2 = u(ks[3], (20,), 250)
    wf1 = u(ks[4], (50, 320), 320);      bf1 = u(ks[5], (50,), 320)
    wf2 = u(ks[6], (10, 50), 50);        bf2 = u(ks[7], (10,), 50)
    return (w1, b1, w2, b2, wf1, bf1, wf2, bf2)


if __name__ == "__main__":
    key = jax.random.PRNGKey(0)
    pkey, xkey = jax.random.split(key)
    params = init_params(pkey)
    x = jax.random.normal(xkey, (2, 1, 28, 28), jnp.float32)

    out = jax.jit(net_forward)(x, params)
    out = jax.block_until_ready(out)

    ref = ref_forward(x, params)
    assert out.shape == (2, 10), out.shape
    # bf16 MXU operands -> slightly looser tolerance than the f32 version.
    assert jnp.allclose(out, ref, rtol=2e-2, atol=2e-2), (out, ref)

    print("KERNEL_OK")
</pallas_src>

<mosaic_0001>
module attributes {stable_mosaic.version = 11 : i64} {
  func.func @net_kernel(%arg0: i32, %arg1: memref<8x784xf32, #tpu.memory_space<vmem>>, %arg2: memref<140x512xbf16, #tpu.memory_space<vmem>>, %arg3: memref<1x256xf32, #tpu.memory_space<vmem>>, %arg4: memref<1280x256xbf16, #tpu.memory_space<vmem>>, %arg5: memref<1x128xf32, #tpu.memory_space<vmem>>, %arg6: memref<512x128xbf16, #tpu.memory_space<vmem>>, %arg7: memref<1x128xf32, #tpu.memory_space<vmem>>, %arg8: memref<128x128xbf16, #tpu.memory_space<vmem>>, %arg9: memref<1x128xf32, #tpu.memory_space<vmem>>, %arg10: memref<8x128xf32, #tpu.memory_space<vmem>>) attributes {dimension_semantics = [#tpu.dimension_semantics<parallel>], iteration_bounds = array<i64: 1>, scalar_prefetch = 0 : i64, scratch_operands = 0 : i64, tpu.core_type = #tpu.core_type<tc>, window_params = [{transform_indices = @transform_0, window_bounds = array<i64: 8, 784>}, {pipeline_mode = #tpu.pipeline_mode<synchronous>, transform_indices = @transform_1, window_bounds = array<i64: 140, 512>}, {pipeline_mode = #tpu.pipeline_mode<synchronous>, transform_indices = @transform_2, window_bounds = array<i64: 1, 256>}, {pipeline_mode = #tpu.pipeline_mode<synchronous>, transform_indices = @transform_3, window_bounds = array<i64: 1280, 256>}, {pipeline_mode = #tpu.pipeline_mode<synchronous>, transform_indices = @transform_4, window_bounds = array<i64: 1, 128>}, {pipeline_mode = #tpu.pipeline_mode<synchronous>, transform_indices = @transform_5, window_bounds = array<i64: 512, 128>}, {pipeline_mode = #tpu.pipeline_mode<synchronous>, transform_indices = @transform_6, window_bounds = array<i64: 1, 128>}, {pipeline_mode = #tpu.pipeline_mode<synchronous>, transform_indices = @transform_7, window_bounds = array<i64: 128, 128>}, {pipeline_mode = #tpu.pipeline_mode<synchronous>, transform_indices = @transform_8, window_bounds = array<i64: 1, 128>}, {transform_indices = @transform_9, window_bounds = array<i64: 8, 128>}]} {
    %c0 = arith.constant 0 : index
    %c0_0 = arith.constant 0 : index
    %0 = vector.load %arg1[%c0, %c0_0] : memref<8x784xf32, #tpu.memory_space<vmem>>, vector<8x784xf32>
    %1 = vector.shape_cast %0 : vector<8x784xf32> to vector<8x28x28xf32>
    %2 = vector.extract_strided_slice %1 {offsets = [0, 0, 0], sizes = [8, 24, 28], strides = [1, 1, 1]} : vector<8x28x28xf32> to vector<8x24x28xf32>
    %3 = vector.extract_strided_slice %1 {offsets = [0, 1, 0], sizes = [8, 24, 28], strides = [1, 1, 1]} : vector<8x28x28xf32> to vector<8x24x28xf32>
    %4 = vector.extract_strided_slice %1 {offsets = [0, 2, 0], sizes = [8, 24, 28], strides = [1, 1, 1]} : vector<8x28x28xf32> to vector<8x24x28xf32>
    %5 = vector.extract_strided_slice %1 {offsets = [0, 3, 0], sizes = [8, 24, 28], strides = [1, 1, 1]} : vector<8x28x28xf32> to vector<8x24x28xf32>
    %6 = vector.extract_strided_slice %1 {offsets = [0, 4, 0], sizes = [8, 24, 28], strides = [1, 1, 1]} : vector<8x28x28xf32> to vector<8x24x28xf32>
    %7 = tpu.concatenate %2, %3, %4, %5, %6 in 2 : vector<8x24x28xf32>, vector<8x24x28xf32>, vector<8x24x28xf32>, vector<8x24x28xf32>, vector<8x24x28xf32> -> vector<8x24x140xf32>
    %8 = vector.shape_cast %7 : vector<8x24x140xf32> to vector<192x140xf32>
    %9 = arith.truncf %8 : vector<192x140xf32> to vector<192x140xbf16>
    %c0_1 = arith.constant 0 : index
    %c0_2 = arith.constant 0 : index
    %10 = vector.load %arg2[%c0_1, %c0_2] : memref<140x512xbf16, #tpu.memory_space<vmem>>, vector<140x512xbf16>
    %cst = arith.constant dense<0.000000e+00> : vector<192x512xf32>
    %11 = tpu.matmul %9, %10, %cst {dimension_numbers = #tpu.dot_dimension_numbers<[1], [0], [0], [1], [0, 0, 1, 1], [], []>} : vector<192x140xbf16>, vector<140x512xbf16>, vector<192x512xf32> -> vector<192x512xf32>
    %12 = vector.extract_strided_slice %11 {offsets = [0, 0], sizes = [192, 256], strides = [1, 1]} : vector<192x512xf32> to vector<192x256xf32>
    %13 = vector.extract_strided_slice %11 {offsets = [0, 256], sizes = [192, 256], strides = [1, 1]} : vector<192x512xf32> to vector<192x256xf32>
    %14 = arith.maximumf %12, %13 : vector<192x256xf32>
    %15 = vector.shape_cast %14 : vector<192x256xf32> to vector<96x512xf32>
    %16 = vector.extract_strided_slice %15 {offsets = [0, 0], sizes = [96, 256], strides = [1, 1]} : vector<96x512xf32> to vector<96x256xf32>
    %17 = vector.extract_strided_slice %15 {offsets = [0, 256], sizes = [96, 256], strides = [1, 1]} : vector<96x512xf32> to vector<96x256xf32>
    %18 = arith.maximumf %16, %17 : vector<96x256xf32>
    %c0_3 = arith.constant 0 : index
    %c0_4 = arith.constant 0 : index
    %19 = vector.load %arg3[%c0_3, %c0_4] : memref<1x256xf32, #tpu.memory_space<vmem>>, vector<1x256xf32>
    %20 = vector.broadcast %19 : vector<1x256xf32> to vector<96x256xf32>
    %21 = arith.addf %18, %20 : vector<96x256xf32>
    %cst_5 = arith.constant 0.000000e+00 : f32
    %22 = vector.broadcast %cst_5 : f32 to vector<96x256xf32>
    %23 = arith.maximumf %21, %22 : vector<96x256xf32>
    %24 = vector.shape_cast %23 : vector<96x256xf32> to vector<8x12x256xf32>
    %25 = vector.extract_strided_slice %24 {offsets = [0, 0, 0], sizes = [8, 8, 256], strides = [1, 1, 1]} : vector<8x12x256xf32> to vector<8x8x256xf32>
    %26 = vector.extract_strided_slice %24 {offsets = [0, 1, 0], sizes = [8, 8, 256], strides = [1, 1, 1]} : vector<8x12x256xf32> to vector<8x8x256xf32>
    %27 = vector.extract_strided_slice %24 {offsets = [0, 2, 0], sizes = [8, 8, 256], strides = [1, 1, 1]} : vector<8x12x256xf32> to vector<8x8x256xf32>
    %28 = vector.extract_strided_slice %24 {offsets = [0, 3, 0], sizes = [8, 8, 256], strides = [1, 1, 1]} : vector<8x12x256xf32> to vector<8x8x256xf32>
    %29 = vector.extract_strided_slice %24 {offsets = [0, 4, 0], sizes = [8, 8, 256], strides = [1, 1, 1]} : vector<8x12x256xf32> to vector<8x8x256xf32>
    %30 = tpu.concatenate %25, %26, %27, %28, %29 in 2 : vector<8x8x256xf32>, vector<8x8x256xf32>, vector<8x8x256xf32>, vector<8x8x256xf32>, vector<8x8x256xf32> -> vector<8x8x1280xf32>
    %31 = vector.shape_cast %30 : vector<8x8x1280xf32> to vector<64x1280xf32>
    %32 = arith.truncf %31 : vector<64x1280xf32> to vector<64x1280xbf16>
    %c0_6 = arith.constant 0 : index
    %c0_7 = arith.constant 0 : index
    %33 = vector.load %arg4[%c0_6, %c0_7] : memref<1280x256xbf16, #tpu.memory_space<vmem>>, vector<1280x256xbf16>
    %cst_8 = arith.constant dense<0.000000e+00> : vector<64x256xf32>
    %34 = tpu.matmul %32, %33, %cst_8 {dimension_numbers = #tpu.dot_dimension_numbers<[1], [0], [0], [1], [0, 0, 1, 1], [], []>} : vector<64x1280xbf16>, vector<1280x256xbf16>, vector<64x256xf32> -> vector<64x256xf32>
    %35 = vector.extract_strided_slice %34 {offsets = [0, 0], sizes = [64, 128], strides = [1, 1]} : vector<64x256xf32> to vector<64x128xf32>
    %36 = vector.extract_strided_slice %34 {offsets = [0, 128], sizes = [64, 128], strides = [1, 1]} : vector<64x256xf32> to vector<64x128xf32>
    %37 = arith.maximumf %35, %36 : vector<64x128xf32>
    %38 = vector.shape_cast %37 : vector<64x128xf32> to vector<32x256xf32>
    %39 = vector.extract_strided_slice %38 {offsets = [0, 0], sizes = [32, 128], strides = [1, 1]} : vector<32x256xf32> to vector<32x128xf32>
    %40 = vector.extract_strided_slice %38 {offsets = [0, 128], sizes = [32, 128], strides = [1, 1]} : vector<32x256xf32> to vector<32x128xf32>
    %41 = arith.maximumf %39, %40 : vector<32x128xf32>
    %c0_9 = arith.constant 0 : index
    %c0_10 = arith.constant 0 : index
    %42 = vector.load %arg5[%c0_9, %c0_10] : memref<1x128xf32, #tpu.memory_space<vmem>>, vector<1x128xf32>
    %43 = vector.broadcast %42 : vector<1x128xf32> to vector<32x128xf32>
    %44 = arith.addf %41, %43 : vector<32x128xf32>
    %cst_11 = arith.constant 0.000000e+00 : f32
    %45 = vector.broadcast %cst_11 : f32 to vector<32x128xf32>
    %46 = arith.maximumf %44, %45 : vector<32x128xf32>
    %47 = vector.shape_cast %46 : vector<32x128xf32> to vector<8x512xf32>
    %48 = arith.truncf %47 : vector<8x512xf32> to vector<8x512xbf16>
    %c0_12 = arith.constant 0 : index
    %c0_13 = arith.constant 0 : index
    %49 = vector.load %arg6[%c0_12, %c0_13] : memref<512x128xbf16, #tpu.memory_space<vmem>>, vector<512x128xbf16>
    %cst_14 = arith.constant dense<0.000000e+00> : vector<8x128xf32>
    %50 = tpu.matmul %48, %49, %cst_14 {dimension_numbers = #tpu.dot_dimension_numbers<[1], [0], [0], [1], [0, 0, 1, 1], [], []>} : vector<8x512xbf16>, vector<512x128xbf16>, vector<8x128xf32> -> vector<8x128xf32>
    %c0_15 = arith.constant 0 : index
    %c0_16 = arith.constant 0 : index
    %51 = vector.load %arg7[%c0_15, %c0_16] : memref<1x128xf32, #tpu.memory_space<vmem>>, vector<1x128xf32>
    %52 = vector.broadcast %51 : vector<1x128xf32> to vector<8x128xf32>
    %53 = arith.addf %50, %52 : vector<8x128xf32>
    %cst_17 = arith.constant 0.000000e+00 : f32
    %54 = vector.broadcast %cst_17 : f32 to vector<8x128xf32>
    %55 = arith.maximumf %53, %54 : vector<8x128xf32>
    %56 = arith.truncf %55 : vector<8x128xf32> to vector<8x128xbf16>
    %c0_18 = arith.constant 0 : index
    %c0_19 = arith.constant 0 : index
    %57 = vector.load %arg8[%c0_18, %c0_19] : memref<128x128xbf16, #tpu.memory_space<vmem>>, vector<128x128xbf16>
    %cst_20 = arith.constant dense<0.000000e+00> : vector<8x128xf32>
    %58 = tpu.matmul %56, %57, %cst_20 {dimension_numbers = #tpu.dot_dimension_numbers<[1], [0], [0], [1], [0, 0, 1, 1], [], []>} : vector<8x128xbf16>, vector<128x128xbf16>, vector<8x128xf32> -> vector<8x128xf32>
    %c0_21 = arith.constant 0 : index
    %c0_22 = arith.constant 0 : index
    %59 = vector.load %arg9[%c0_21, %c0_22] : memref<1x128xf32, #tpu.memory_space<vmem>>, vector<1x128xf32>
    %60 = vector.broadcast %59 : vector<1x128xf32> to vector<8x128xf32>
    %61 = arith.addf %58, %60 : vector<8x128xf32>
    %c0_23 = arith.constant 0 : index
    %c0_24 = arith.constant 0 : index
    %62 = vector.load %arg10[%c0_23, %c0_24] : memref<8x128xf32, #tpu.memory_space<vmem>>, vector<8x128xf32>
    tpu.vector_store %arg10[%c0_23, %c0_24], %61 {strides = array<i32>} : memref<8x128xf32, #tpu.memory_space<vmem>>, vector<8x128xf32>,
    return
  }
  func.func @transform_0(%arg0: i32) -> (i32, i32) {
    %c0_i32 = arith.constant 0 : i32
    %c0_i32_0 = arith.constant 0 : i32
    return %arg0, %c0_i32 : i32, i32
  }
  func.func @transform_1(%arg0: i32) -> (i32, i32) {
    %c0_i32 = arith.constant 0 : i32
    %c0_i32_0 = arith.constant 0 : i32
    %c0_i32_1 = arith.constant 0 : i32
    return %c0_i32, %c0_i32_0 : i32, i32
  }
  func.func @transform_2(%arg0: i32) -> (i32, i32) {
    %c0_i32 = arith.constant 0 : i32
    %c0_i32_0 = arith.constant 0 : i32
    %c0_i32_1 = arith.constant 0 : i32
    return %c0_i32, %c0_i32_0 : i32, i32
  }
  func.func @transform_3(%arg0: i32) -> (i32, i32) {
    %c0_i32 = arith.constant 0 : i32
    %c0_i32_0 = arith.constant 0 : i32
    %c0_i32_1 = arith.constant 0 : i32
    return %c0_i32, %c0_i32_0 : i32, i32
  }
  func.func @transform_4(%arg0: i32) -> (i32, i32) {
    %c0_i32 = arith.constant 0 : i32
    %c0_i32_0 = arith.constant 0 : i32
    %c0_i32_1 = arith.constant 0 : i32
    return %c0_i32, %c0_i32_0 : i32, i32
  }
  func.func @transform_5(%arg0: i32) -> (i32, i32) {
    %c0_i32 = arith.constant 0 : i32
    %c0_i32_0 = arith.constant 0 : i32
    %c0_i32_1 = arith.constant 0 : i32
    return %c0_i32, %c0_i32_0 : i32, i32
  }
  func.func @transform_6(%arg0: i32) -> (i32, i32) {
    %c0_i32 = arith.constant 0 : i32
    %c0_i32_0 = arith.constant 0 : i32
    %c0_i32_1 = arith.constant 0 : i32
    return %c0_i32, %c0_i32_0 : i32, i32
  }
  func.func @transform_7(%arg0: i32) -> (i32, i32) {
    %c0_i32 = arith.constant 0 : i32
    %c0_i32_0 = arith.constant 0 : i32
    %c0_i32_1 = arith.constant 0 : i32
    return %c0_i32, %c0_i32_0 : i32, i32
  }
  func.func @transform_8(%arg0: i32) -> (i32, i32) {
    %c0_i32 = arith.constant 0 : i32
    %c0_i32_0 = arith.constant 0 : i32
    %c0_i32_1 = arith.constant 0 : i32
    return %c0_i32, %c0_i32_0 : i32, i32
  }
  func.func @transform_9(%arg0: i32) -> (i32, i32) {
    %c0_i32 = arith.constant 0 : i32
    %c0_i32_0 = arith.constant 0 : i32
    return %arg0, %c0_i32 : i32, i32
  }
}

</mosaic_0001>

<bundles_post_ra>
// kernel: net_forward.1
= control target key start
LH: loop header
LB: loop body
LE: loop exit
PB: predicated region body
PF: predicated region fallthrough
CT: control target
= control target key end

     0   :  { %s6486_s13 = smov 4   ;;  %s6487_s14 = smov 16   ;;  %v6513_v15 = vmov 1983009808   ;;  %v157_v17 = vlaneseq  ;;  %v6514_v22 = vmov 1934713408   ;;  %s9160_s0 = inlined_call_operand.vmem [shape: f32[8,784], index: 0, kind: input, shape index: {}]   ;;  %s9161_s1 = inlined_call_operand.vmem [shape: bf16[140,512], index: 1, kind: input, shape index: {}]   ;;  %s9162_s3 = inlined_call_operand.vmem [shape: bf16[1280,256], index: 3, kind: input, shape index: {}]   ;;  %s9163_s2 = inlined_call_operand.vmem [shape: f32[1,256], index: 2, kind: input, shape index: {}]   ;;  %s9164_s5 = inlined_call_operand.vmem [shape: bf16[512,128], index: 5, kind: input, shape index: {}]   ;;  %s9165_s7 = inlined_call_operand.vmem [shape: bf16[128,128], index: 7, kind: input, shape index: {}]   ;;  %s9166_s4 = inlined_call_operand.vmem [shape: f32[1,128], index: 4, kind: input, shape index: {}]   ;;  %s9167_s6 = inlined_call_operand.vmem [shape: f32[1,128], index: 6, kind: input, shape index: {}]   ;;  %s9168_s8 = inlined_call_operand.vmem [shape: f32[1,128], index: 8, kind: input, shape index: {}]   ;;  %s9169_s9 = inlined_call_operand.vmem [shape: f32[8,128], index: 9, kind: output, shape index: {}]  }
   0x1   :  { %v34_v0 = vld [vmem:[%s9160_s0 + $0x8] sm:$0xff]  ;;  %v6579_v1 = vld [vmem:[%s9160_s0] sm:$0xff]  ;;  %v35_v2 = vld [vmem:[%s9160_s0 + $0x10] sm:$0xff]  ;;  %s6488_s19 = smov 20   ;;  %s6489_s22 = smov 8   ;;  %v155_v16 = vunpack.c.l.s4 %v6513_v15  ;;  %v219_v23 = vunpack.c.l.s4 %v6514_v22  ;;  %vm55_vm0 = vcmask 130048  }
   0x2   :  { %71 = vrot.lane.b32.xlu1 %v34_v0, %s6486_s13  ;;  %51 = vrot.lane.b32.xlu0 %v6579_v1, %s6487_s14  ;;  %v36_v3 = vld [vmem:[%s9160_s0 + $0x18] sm:$0xff]  ;;  %v37_v4 = vld [vmem:[%s9160_s0 + $0x20] sm:$0xff]  ;;  %s6490_s25 = smov 24   ;;  %s6491_s26 = smov 72   ;;  %v6612_v21 = vshrl.u32 %v157_v17, 7  ;;  %vm75_vm1 = vcmask 31744  }
   0x3   :  { %v38_v5 = vld [vmem:[%s9160_s0 + $0x28] sm:$0xff]  ;;  %s6492_s27 = smov 100   ;;  %s6493_s28 = smov 116   ;;  %v39_v6 = vld [vmem:[%s9160_s0 + $0x30] sm:$0xff]  ;;  %v156_v20 = vunpack.c.0.s8 %v155_v16  ;;  %v220_v28 = vunpack.c.0.s8 %v219_v23  ;;  %vm92_vm2 = vcmask 162816   ;;  %vm112_vm3 = vcmask 64512  }
   0x4   :  { %s6494_s29 = smov 44   ;;  %s6495_s30 = smov 60   ;;  %9222 = vst [vmem:[#allocation2_spill] sm:$0xff] %v6612_v21  ;;  %v6152_v35 = vld [vmem:[%s9161_s1 + $0x4] ss:$16 sps:$4 sm:$0xff]   ;;  %vm129_vm4 = vcmask 195584  }
   0x5   :  { %s6496_s10 = smov 88   ;;  %s6497_s11 = smov 104   ;;  %v6619_v26 = vsub.s32 %v156_v20, %v6612_v21  ;;  %v6631_v33 = vsub.s32 %v220_v28, %v6612_v21  ;;  %v6154_v38 = vld [vmem:[%s9161_s1] ss:$16 sps:$4 sm:$0xff]   ;;  %1560 = vmatprep.subr.bf16.mxu1 %v6152_v35  ;;  %v6155_v44 = vld [vmem:[%s9161_s1 + $0x24] ss:$16 sps:$4 sm:$0xff]  }
   0x6   :  { %73 = vrot.lane.b32.xlu1 %v35_v2, %s6486_s13  ;;  %53 = vrot.lane.b32.xlu0 %v34_v0, %s6487_s14  ;;  %s6498_s12 = smov 32   ;;  %s6499_s13 = smov 48   ;;  %v6157_v45 = vld [vmem:[%s9161_s1 + $0x20] ss:$16 sps:$4 sm:$0xff]   ;;  %v6158_v54 = vld [vmem:[%s9161_s1 + $0x44] ss:$16 sps:$4 sm:$0xff]  }
   0x7   :  { %s6500_s14 = smov 76   ;;  %s6501_s15 = smov 92   ;;  %1561 = vmatpush1.bf16.msra.mxu1 %v6154_v38  ;;  %v6160_v55 = vld [vmem:[%s9161_s1 + $0x40] ss:$16 sps:$4 sm:$0xff]   ;;  %v6161_v56 = vld [vmem:[%s9161_s1 + $0x64] ss:$16 sps:$4 sm:$0xff]  }
   0x8   :  { %s6502_s16 = smov 120   ;;  %s6503_s17 = smov 36   ;;  %1562 = vmatprep.subr.bf16.mxu1 %v6155_v44  ;;  %v6163_v62 = vld [vmem:[%s9161_s1 + $0x60] ss:$16 sps:$4 sm:$0xff]   ;;  %vm149_vm5 = vcmask 97280   ;;  %vm789_vm6 = vcmask 1045504  }
   0x9   :  { %s6504_s18 = smov 64   ;;  %s6506_s20 = smov 108   ;;  %v6166_v16 = vld [vmem:[%s9161_s1 + $0x80] ss:$16 sps:$4 sm:$0xff]   ;;  %vm660_vm7 = vcmask 1046528   ;;  %vm1047_vm8 = vcmask 1043456  }
   0xa   :  { %90 = vrot.lane.b32.xlu1 %v36_v3, %s6488_s19  ;;  %88 = vrot.lane.b32.xlu0 %v35_v2, %s6488_s19  ;;  %s6505_s19 = smov 80   ;;  %s6507_s21 = smov 124   ;;  %vm918_vm9 = vcmask 1044480   ;;  %vm1176_vm10 = vcmask 228352   ;;  %vm1201_vm11 = vcmask 457728   ;;  %vm1226_vm12 = vcmask 687104  }
   0xb   :  { %1563 = vmatpush1.bf16.msra.mxu1 %v6157_v45  ;;  %vm1251_vm13 = vcmask 916480   ;;  %vm6522_vm14 = vmmov 0  }
   0xc   :  { %1564 = vmatprep.subr.bf16.mxu1 %v6158_v54 }
   0xe   :  { %110 = vrot.lane.b32.xlu1 %v37_v4, %s6489_s22  ;;  %108 = vrot.lane.b32.xlu0 %v36_v3, %s6489_s22  ;;  %s6508_s22 = smov 52  }
   0xf   :  { %1565 = vmatpush1.bf16.msra.mxu1 %v6160_v55 }
  0x10   :  { %1566 = vmatprep.subr.bf16.mxu1 %v6161_v56 }
  0x12   :  { %127 = vrot.lane.b32.xlu1 %v38_v5, %s6490_s25  ;;  %125 = vrot.lane.b32.xlu0 %v37_v4, %s6490_s25  ;;  %s6509_s25 = smov 12  }
  0x13   :  { %1567 = vmatpush1.bf16.msra.mxu1 %v6163_v62 }
  0x16   :  { %44 = vrot.lane.b32.xlu1 %v6579_v1, %s6491_s26  ;;  %41 = vrot.lane.b32.xlu0 %v6579_v1, %s6492_s27  ;;  %s6510_s26 = smov 68   ;;  %s6511_s27 = smov 96  }
  0x1a   :  { %58 = vrot.lane.b32.xlu1 %v34_v0, %s6493_s28  ;;  %47 = vrot.lane.b32.xlu0 %v6579_v1, %s6494_s29  ;;  %s6512_s28 = smov 40  }
  0x1e   :  { %64 = vrot.lane.b32.xlu1 %v34_v0, %s6495_s30  ;;  %61 = vrot.lane.b32.xlu0 %v34_v0, %s6496_s10 }
  0x22   :  { %78 = vrot.lane.b32.xlu1 %v35_v2, %s6497_s11  ;;  %67 = vrot.lane.b32.xlu0 %v34_v0, %s6498_s12 }
  0x26   :  { %84 = vrot.lane.b32.xlu1 %v35_v2, %s6499_s13  ;;  %81 = vrot.lane.b32.xlu0 %v35_v2, %s6500_s14  ;;  %v6164_v2 = vld [vmem:[%s9161_s1 + $0x84] ss:$16 sps:$4 sm:$0xff]  }
  0x27   :  { %1568 = vmatprep.subr.bf16.mxu1 %v6164_v2 }
  0x28   :  { %1569 = vmatpush1.bf16.msra.mxu1 %v6166_v16 }
  0x2a   :  { %98 = vrot.lane.b32.xlu1 %v36_v3, %s6501_s15  ;;  %95 = vrot.lane.b32.xlu0 %v36_v3, %s6502_s16 }
  0x2e   :  { %104 = vrot.lane.b32.xlu1 %v36_v3, %s6503_s17  ;;  %101 = vrot.lane.b32.xlu0 %v36_v3, %s6504_s18 }
  0x32   :  { %118 = vrot.lane.b32.xlu1 %v37_v4, %s6505_s19  ;;  %115 = vrot.lane.b32.xlu0 %v37_v4, %s6506_s20  ;;  %s6515_s19 = smov 56   ;;  %s6516_s20 = smov 28  }
  0x36   :  { %132 = vrot.lane.b32.xlu1 %v38_v5, %s6507_s21  ;;  %121 = vrot.lane.b32.xlu0 %v37_v4, %s6508_s22  ;;  %s6517_s21 = smov 112   ;;  %s6518_s22 = smov 84  }
  0x3a   :  { %147 = vrot.lane.b32.xlu1 %v39_v6, %s6509_s25  ;;  %145 = vrot.lane.b32.xlu0 %v38_v5, %s6509_s25 }
  0x3e   :  { %138 = vrot.lane.b32.xlu1 %v38_v5, %s6510_s26  ;;  %135 = vrot.lane.b32.xlu0 %v38_v5, %s6511_s27 }
  0x42   :  { %141 = vrot.lane.b32.xlu0 %v38_v5, %s6512_s28 }
  0x74   :  { %v72_v7 = vpop.permute.xlu1 %71  ;;  %v52_v8 = vpop.permute.xlu0 %51 }
  0x78   :  { %v74_v9 = vpop.permute.xlu1 %73  ;;  %v54_v10 = vpop.permute.xlu0 %53 }
  0x79   :  { %v6644_v39 = vsel %vm55_vm0, %v52_v8, %v54_v10  ;;  %v76_v57 = vsel %vm75_vm1, %v72_v7, %v74_v9 }
  0x7c   :  { %v6600_v11 = vpop.permute.xlu1 %90  ;;  %v6602_v12 = vpop.permute.xlu0 %88 }
  0x7d   :  { %v93_v7 = vsel %vm92_vm2, %v6602_v12, %v6600_v11 }
  0x80   :  { %v6604_v13 = vpop.permute.xlu1 %110  ;;  %v6606_v14 = vpop.permute.xlu0 %108 }
  0x84   :  { %v6608_v18 = vpop.permute.xlu1 %127  ;;  %v6610_v19 = vpop.permute.xlu0 %125 }
  0x88   :  { %v6614_v24 = vpop.permute.xlu1 %44  ;;  %v6616_v25 = vpop.permute.xlu0 %41 }
  0x89   :  { %v153_v27 = vcombine.high %v6579_v1, %v6614_v24 }
  0x8b   :  { %v167_v32 = vrot.slane %v153_v27, %v6619_v26 }
  0x8c   :  { %v6623_v29 = vpop.permute.xlu1 %58  ;;  %v6625_v30 = vpop.permute.xlu0 %47 }
  0x8d   :  { %v169_v31 = vcombine.high %v6616_v25, %v6625_v30  ;;  %v168_v35 = vcombine.low %v6616_v25, %v6625_v30  ;;  %v152_v25 = vcombine.low %v6579_v1, %v6614_v24  ;;  %v6169_v30 = vld [vmem:[%s9161_s1 + $0xa0] ss:$16 sps:$4 sm:$0xff]   ;;  %v6739_v1 = vsel %vm112_vm3, %v6606_v14, %v6604_v13 }
  0x8f   :  { %v183_v34 = vrot.slane %v169_v31, %v6619_v26 }
  0x90   :  { %v6637_v36 = vpop.permute.xlu1 %64  ;;  %v6639_v37 = vpop.permute.xlu0 %61 }
  0x91   :  { %v232_v40 = vcombine.low %v167_v32, %v183_v34  ;;  %v233_v41 = vcombine.high %v167_v32, %v183_v34  ;;  %v201_v42 = vcombine.high %v6623_v29, %v6637_v36  ;;  %v185_v43 = vcombine.high %v6644_v39, %v6639_v37  ;;  %v6167_v34 = vld [vmem:[%s9161_s1 + $0xa4] ss:$16 sps:$4 sm:$0xff]  }
  0x92   :  { %v200_v11 = vcombine.low %v6623_v29, %v6637_v36  ;;  %v184_v12 = vcombine.low %v6644_v39, %v6639_v37  ;;  %1570 = vmatprep.subr.bf16.mxu1 %v6167_v34 }
  0x93   :  { %v247_v46 = vrot.slane %v233_v41, %v6631_v33  ;;  %v215_v47 = vrot.slane %v201_v42, %v6619_v26  ;;  %v199_v48 = vrot.slane %v185_v43, %v6619_v26  ;;  %v240_v63 = vrot.slane %v232_v40, %v6631_v33  ;;  %1571 = vmatpush1.bf16.msra.mxu1 %v6169_v30 }
  0x94   :  { %v6659_v49 = vpop.permute.xlu1 %78  ;;  %v6661_v50 = vpop.permute.xlu0 %67  ;;  %v6728_v44 = vrot.slane %v200_v11, %v6619_v26  ;;  %v192_v45 = vrot.slane %v184_v12, %v6619_v26 }
  0x95   :  { %v289_v51 = vcombine.high %v6661_v50, %v6659_v49  ;;  %v264_v52 = vcombine.low %v199_v48, %v215_v47  ;;  %v265_v53 = vcombine.high %v199_v48, %v215_v47  ;;  %v288_v38 = vcombine.low %v6661_v50, %v6659_v49  ;;  %v6170_v48 = vld [vmem:[%s9161_s1 + $0xc4] ss:$16 sps:$4 sm:$0xff]  }
  0x96   :  { %1572 = vmatprep.subr.bf16.mxu1 %v6170_v48  ;;  %v249_v12 = vcombine.high %v192_v45, %v6728_v44 }
  0x97   :  { %v272_v58 = vrot.slane %v264_v52, %v6631_v33  ;;  %v279_v59 = vrot.slane %v265_v53, %v6631_v33  ;;  %v303_v8 = vrot.slane %v289_v51, %v6619_v26  ;;  %v176_v52 = vrot.slane %v168_v35, %v6619_v26 }
  0x98   :  { %v85_v60 = vpop.permute.xlu1 %84  ;;  %v82_v61 = vpop.permute.xlu0 %81  ;;  %v6751_v53 = vrot.slane %v288_v38, %v6619_v26  ;;  %v6831_v30 = vrot.slane %v249_v12, %v6631_v33 }
  0x99   :  { %v305_v0 = vcombine.high %v76_v57, %v82_v61  ;;  %v6683_v3 = vcombine.low %v240_v63, %v272_v58  ;;  %v6685_v4 = vcombine.high %v240_v63, %v272_v58  ;;  %v6687_v5 = vcombine.low %v247_v46, %v279_v59  ;;  %v6172_v58 = vld [vmem:[%s9161_s1 + $0xc0] ss:$16 sps:$4 sm:$0xff]  }
  0x9a   :  { %v6689_v6 = vcombine.high %v247_v46, %v279_v59  ;;  %v304_v40 = vcombine.low %v76_v57, %v82_v61  ;;  %v6770_v59 = vsel %vm129_vm4, %v6610_v19, %v6608_v18  ;;  %v248_v61 = vcombine.low %v192_v45, %v6728_v44  ;;  %1573 = vmatpush1.bf16.msra.mxu1 %v6172_v58  ;;  %v6176_v58 = vld [vmem:[%s9161_s1 + $0x104] ss:$16 sps:$4 sm:$0x3f]  }
  0x9b   :  { %v319_v9 = vrot.slane %v305_v0, %v6619_v26 }
  0x9c   :  { %v99_v10 = vpop.permute.xlu1 %98  ;;  %v96_v15 = vpop.permute.xlu0 %95  ;;  %v6742_v24 = vrot.slane %v304_v40, %v6619_v26 }
  0x9d   :  { %v336_v17 = vcombine.low %v93_v7, %v99_v10  ;;  %v337_v20 = vcombine.high %v93_v7, %v99_v10  ;;  %v320_v22 = vcombine.low %v85_v60, %v96_v15  ;;  %v321_v23 = vcombine.high %v85_v60, %v96_v15 }
  0x9e   :  { %v368_v27 = vcombine.low %v303_v8, %v319_v9  ;;  %v369_v28 = vcombine.high %v303_v8, %v319_v9  ;;  %v160_v60 = vrot.slane %v152_v25, %v6619_v26  ;;  %v352_v63 = vcombine.low %v6751_v53, %v6742_v24 }
  0x9f   :  { %v351_v31 = vrot.slane %v337_v20, %v6619_v26  ;;  %v335_v32 = vrot.slane %v321_v23, %v6619_v26  ;;  %v6717_v39 = vrot.slane %v336_v17, %v6619_v26  ;;  %v6720_v41 = vrot.slane %v320_v22, %v6619_v26 }
  0xa0   :  { %v383_v29 = vrot.slane %v369_v28, %v6631_v33  ;;  %v6712_v36 = vpop.permute.xlu1 %104  ;;  %v6714_v37 = vpop.permute.xlu0 %101  ;;  %v376_v49 = vrot.slane %v368_v27, %v6631_v33  ;;  %v216_v18 = vcombine.low %v160_v60, %v176_v52  ;;  %v256_v15 = vrot.slane %v248_v61, %v6631_v33 }
  0xa1   :  { %v400_v42 = vcombine.low %v335_v32, %v351_v31  ;;  %v401_v43 = vcombine.high %v335_v32, %v351_v31  ;;  %v384_v54 = vcombine.low %v6720_v41, %v6717_v39  ;;  %v424_v13 = vcombine.low %v6714_v37, %v6739_v1 }
  0xa2   :  { %v360_v16 = vrot.slane %v352_v63, %v6631_v33  ;;  %v217_v28 = vcombine.high %v160_v60, %v176_v52  ;;  %v224_v11 = vrot.slane %v216_v18, %v6631_v33 }
  0xa3   :  { %v408_v46 = vrot.slane %v400_v42, %v6631_v33  ;;  %v415_v47 = vrot.slane %v401_v43, %v6631_v33  ;;  %v392_v8 = vrot.slane %v384_v54, %v6631_v33  ;;  %v6789_v9 = vrot.slane %v424_v13, %v6619_v26  ;;  %v6173_v42 = vld [vmem:[%s9161_s1 + $0xe4] ss:$16 sps:$4 sm:$0xff]   ;;  %v6175_v43 = vld [vmem:[%s9161_s1 + $0xe0] ss:$16 sps:$4 sm:$0xff]  }
  0xa4   :  { %v6745_v50 = vpop.permute.xlu1 %118  ;;  %v6747_v51 = vpop.permute.xlu0 %115  ;;  %v6809_v34 = vcombine.low %v224_v11, %v256_v15  ;;  %v6828_v25 = vrot.slane %v217_v28, %v6631_v33  ;;  %v6833_v44 = vcombine.high %v224_v11, %v256_v15  ;;  %1574 = vmatprep.subr.bf16.mxu1 %v6173_v42 }
  0xa5   :  { %v6757_v14 = vcombine.low %v376_v49, %v408_v46  ;;  %v6759_v55 = vcombine.high %v376_v49, %v408_v46  ;;  %v6761_v56 = vcombine.low %v383_v29, %v415_v47  ;;  %v6763_v57 = vcombine.high %v383_v29, %v415_v47  ;;  %1575 = vmatpush1.bf16.msra.mxu1 %v6175_v43 }
  0xa6   :  { %v440_v62 = vcombine.low %v6712_v36, %v6747_v51  ;;  %v456_v0 = vcombine.low %v6745_v50, %v6770_v59  ;;  %v6805_v31 = vcombine.low %v360_v16, %v392_v8  ;;  %v385_v49 = vcombine.high %v6720_v41, %v6717_v39  ;;  %5509 = vmatprep.subr.msk.bf16.mxu1 %vm789_vm6, %v6176_v58 }
  0xa7   :  { %v790_v54 = vrot.slane %v6809_v34, 2  ;;  %v661_v13 = vrot.slane %v6809_v34, 1  ;;  %v6853_v60 = vcombine.high %v360_v16, %v392_v8  ;;  %v6878_v12 = vcombine.low %v6828_v25, %v6831_v30 }
  0xa8   :  { %v6780_v2 = vpop.permute.xlu1 %132  ;;  %v6782_v7 = vpop.permute.xlu0 %121  ;;  %v6785_v19 = vrot.slane %v440_v62, %v6619_v26  ;;  %v6796_v17 = vrot.slane %v456_v0, %v6619_v26  ;;  %v791_v47 = vrot.slane %v6805_v31, 2  ;;  %v662_v48 = vrot.slane %v6805_v31, 1 }
  0xa9   :  { %v472_v10 = vcombine.low %v6782_v7, %v6780_v2  ;;  %v1049_v41 = vrot.slane %v6805_v31, 4  ;;  %v920_v18 = vrot.slane %v6805_v31, 3  ;;  %v1048_v42 = vrot.slane %v6809_v34, 4 }
  0xaa   :  { %v488_v20 = vcombine.low %v6789_v9, %v6785_v19  ;;  %v792_v8 = vsel %vm789_vm6, %v790_v54, %v791_v47  ;;  %v663_v16 = vsel %vm660_vm7, %v661_v13, %v662_v48  ;;  %v669_v13 = vrot.slane %v6853_v60, 1 }
  0xab   :  { %v6801_v22 = vrot.slane %v472_v10, %v6619_v26 }
  0xac   :  { %v148_v23 = vpop.permute.xlu1 %147  ;;  %v146_v27 = vpop.permute.xlu0 %145  ;;  %v6812_v35 = vrot.slane %v488_v20, %v6631_v33 }
  0xad   :  { %v520_v32 = vcombine.low %v6796_v17, %v6801_v22  ;;  %v6840_v46 = vsel %vm149_vm5, %v146_v27, %v148_v23 }
  0xaf   :  { %v6815_v38 = vrot.slane %v520_v32, %v6631_v33  ;;  %v353_v32 = vcombine.high %v6751_v53, %v6742_v24  ;;  %v1050_v24 = vsel %vm1047_vm8, %v1048_v42, %v1049_v41  ;;  %v797_v53 = vrot.slane %v6833_v44, 2 }
  0xb0   :  { %v6817_v40 = vpop.permute.xlu1 %138  ;;  %v6819_v29 = vpop.permute.xlu0 %135 }
  0xb1   :  { %v6837_v45 = vcombine.low %v6812_v35, %v6815_v38  ;;  %v576_v52 = vcombine.low %v6817_v40, %v6840_v46 }
  0xb3   :  { %v793_v62 = vrot.slane %v6837_v45, 2  ;;  %v664_v39 = vrot.slane %v6837_v45, 1  ;;  %v1051_v0 = vrot.slane %v6837_v45, 4  ;;  %v922_v10 = vrot.slane %v6837_v45, 3 }
  0xb4   :  { %v6855_v61 = vpop.permute.xlu0 %141  ;;  %v6871_v23 = vrot.slane %v576_v52, %v6619_v26  ;;  %v919_v52 = vrot.slane %v6809_v34, 3 }
  0xb5   :  { %v560_v63 = vcombine.low %v6819_v29, %v6855_v61  ;;  %v794_v15 = vsel %vm789_vm6, %v791_v47, %v793_v62  ;;  %v665_v20 = vsel %vm660_vm7, %v662_v48, %v664_v39  ;;  %v1052_v43 = vsel %vm1047_vm8, %v1049_v41, %v1051_v0 }
  0xb6   :  { %v5917_v28 = vpack.i.bf16 %v794_v15, %v792_v8  ;;  %v5912_v11 = vpack.i.bf16 %v665_v20, %v663_v16  ;;  %v6885_v47 = vrot.slane %v385_v49, %v6631_v33  ;;  %v923_v54 = vsel %vm918_vm9, %v920_v18, %v922_v10 }
  0xb7   :  { %v6874_v27 = vrot.slane %v560_v63, %v6619_v26  ;;  %v798_v49 = vrot.slane %v6853_v60, 2  ;;  %v5927_v63 = vpack.i.bf16 %v1052_v43, %v1050_v24  ;;  %v921_v8 = vsel %vm918_vm9, %v919_v52, %v920_v18 }
  0xb8   :  { %5918 = vrot.lane.b32.xlu0 %v5917_v28, %s6515_s19  ;;  %5913 = vrot.lane.b32.xlu1 %v5912_v11, %s6516_s20  ;;  %v668_v15 = vrot.slane %v6833_v44, 1  ;;  %v489_v16 = vcombine.high %v6789_v9, %v6785_v19  ;;  %v521_v20 = vcombine.high %v6796_v17, %v6801_v22  ;;  %v5922_v41 = vpack.i.bf16 %v923_v54, %v921_v8 }
  0xb9   :  { %v592_v48 = vcombine.low %v6874_v27, %v6871_v23  ;;  %v1055_v28 = vrot.slane %v6833_v44, 4  ;;  %v6908_v18 = vcombine.high %v6812_v35, %v6815_v38  ;;  %v799_v19 = vsel %vm789_vm6, %v797_v53, %v798_v49 }
  0xba   :  { %v670_v9 = vsel %vm660_vm7, %v668_v15, %v669_v13  ;;  %v9170_v17 = vmov 0.0   ;;  %v1056_v24 = vrot.slane %v6853_v60, 4  ;;  %v6919_v35 = vrot.slane %v521_v20, %v6631_v33 }
  0xbb   :  { %v600_v58 = vrot.slane %v592_v48, %v6631_v33  ;;  %v926_v53 = vrot.slane %v6833_v44, 3 }
  0xbc   :  { %5928 = vrot.lane.b32.xlu0 %v5927_v63, %s6517_s21  ;;  %5923 = vrot.lane.b32.xlu1 %v5922_v41, %s6518_s22  ;;  %v927_v63 = vrot.slane %v6853_v60, 3  ;;  %v1057_v20 = vsel %vm1047_vm8, %v1055_v28, %v1056_v24 }
  0xbd   :  { %v795_v11 = vrot.slane %v600_v58, 2  ;;  %v666_v42 = vrot.slane %v600_v58, 1  ;;  %v1053_v48 = vrot.slane %v600_v58, 4  ;;  %v924_v43 = vrot.slane %v600_v58, 3 }
  0xbe   :  { %v624_v22 = vcombine.high %v600_v58, %v9170_v17 }
  0xbf   :  { %v796_v52 = vsel %vm789_vm6, %v793_v62, %v795_v11  ;;  %v667_v54 = vsel %vm660_vm7, %v664_v39, %v666_v42  ;;  %v1054_v15 = vsel %vm1047_vm8, %v1051_v0, %v1053_v48  ;;  %v925_v41 = vsel %vm918_vm9, %v922_v10, %v924_v43 }
  0xc0   :  { %v5937_v38 = vpack.i.bf16 %v799_v19, %v796_v52  ;;  %v5932_v8 = vpack.i.bf16 %v670_v9, %v667_v54  ;;  %v802_v58 = vrot.slane %v624_v22, 2  ;;  %v673_v17 = vrot.slane %v624_v22, 1 }
  0xc1   :  { %v6926_v62 = vcombine.high %v6828_v25, %v6831_v30  ;;  %v367_v39 = vrot.slane %v353_v32, %v6631_v33  ;;  %v6930_v11 = vrot.slane %v489_v16, %v6631_v33  ;;  %v928_v0 = vsel %vm918_vm9, %v926_v53, %v927_v63 }
  0xc2   :  { %5938 = vrot.lane.b32.xlu0 %v5937_v38, %s6515_s19  ;;  %5933 = vrot.lane.b32.xlu1 %v5932_v8, %s6516_s20  ;;  %v800_v10 = vrot.slane %v6908_v18, 2  ;;  %v671_v42 = vrot.slane %v6908_v18, 1  ;;  %v5947_v32 = vpack.i.bf16 %v1057_v20, %v1054_v15  ;;  %v5942_v16 = vpack.i.bf16 %v928_v0, %v925_v41 }
  0xc3   :  { %v6939_v25 = vcombine.low %v367_v39, %v6885_v47  ;;  %v6943_v30 = vcombine.low %v6930_v11, %v6919_v35  ;;  %v1060_v28 = vrot.slane %v624_v22, 4  ;;  %v931_v19 = vrot.slane %v624_v22, 3 }
  0xc4   :  { %v803_v48 = vsel %vm789_vm6, %v800_v10, %v802_v58  ;;  %v674_v43 = vsel %vm660_vm7, %v671_v42, %v673_v17  ;;  %v457_v9 = vcombine.high %v6745_v50, %v6770_v59  ;;  %v473_v52 = vcombine.high %v6782_v7, %v6780_v2 }
  0xc5   :  { %v593_v54 = vcombine.high %v6874_v27, %v6871_v23  ;;  %v801_v38 = vsel %vm789_vm6, %v798_v49, %v800_v10  ;;  %v672_v8 = vsel %vm660_vm7, %v669_v13, %v671_v42  ;;  %v1058_v17 = vrot.slane %v6908_v18, 4 }
  0xc6   :  { %5948 = vrot.lane.b32.xlu0 %v5947_v32, %s6517_s21  ;;  %5943 = vrot.lane.b32.xlu1 %v5942_v16, %s6518_s22  ;;  %v929_v22 = vrot.slane %v6908_v18, 3  ;;  %v425_v50 = vcombine.high %v6714_v37, %v6739_v1  ;;  %v441_v59 = vcombine.high %v6712_v36, %v6747_v51  ;;  %v5957_v2 = vpack.i.bf16 %v803_v48, %v801_v38 }
  0xc7   :  { %v5952_v7 = vpack.i.bf16 %v674_v43, %v672_v8  ;;  %v1061_v23 = vsel %vm1047_vm8, %v1058_v17, %v1060_v28  ;;  %v807_v49 = vrot.slane %v6943_v30, 2  ;;  %v678_v13 = vrot.slane %v6943_v30, 1 }
  0xc8   :  { %v932_v27 = vsel %vm918_vm9, %v929_v22, %v931_v19  ;;  %v6968_v53 = vrot.slane %v457_v9, %v6619_v26  ;;  %v6971_v15 = vrot.slane %v473_v52, %v6619_v26  ;;  %v6974_v37 = vrot.slane %v593_v54, %v6631_v33 }
  0xc9   :  { %v1059_v36 = vsel %vm1047_vm8, %v1056_v24, %v1058_v17  ;;  %v930_v1 = vsel %vm918_vm9, %v927_v63, %v929_v22  ;;  %v805_v51 = vrot.slane %v6939_v25, 2  ;;  %v676_v41 = vrot.slane %v6939_v25, 1 }
  0xca   :  { %5958 = vrot.lane.b32.xlu0 %v5957_v2, %s6515_s19  ;;  %5953 = vrot.lane.b32.xlu1 %v5952_v7, %s6516_s20  ;;  %v5967_v58 = vpack.i.bf16 %v1061_v23, %v1059_v36  ;;  %v5962_v20 = vpack.i.bf16 %v932_v27, %v930_v1  ;;  %v804_v0 = vrot.slane %v6878_v12, 2  ;;  %v1065_v10 = vrot.slane %v6943_v30, 4 }
  0xcb   :  { %v808_v42 = vsel %vm789_vm6, %v805_v51, %v807_v49  ;;  %v675_v32 = vrot.slane %v6878_v12, 1  ;;  %v679_v16 = vsel %vm660_vm7, %v676_v41, %v678_v13  ;;  %v936_v24 = vrot.slane %v6943_v30, 3 }
  0xcc   :  { %v6989_v63 = vrot.slane %v425_v50, %v6619_v26  ;;  %v6992_v48 = vrot.slane %v441_v59, %v6619_v26  ;;  %v536_v43 = vcombine.low %v6968_v53, %v6971_v15  ;;  %v1063_v28 = vrot.slane %v6939_v25, 4 }
  0xcd   :  { %v7000_v19 = vcombine.high %v367_v39, %v6885_v47  ;;  %v806_v9 = vsel %vm789_vm6, %v804_v0, %v805_v51  ;;  %v677_v52 = vsel %vm660_vm7, %v675_v32, %v676_v41  ;;  %v934_v54 = vrot.slane %v6939_v25, 3 }
  0xce   :  { %5968 = vrot.lane.b32.xlu0 %v5967_v58, %s6517_s21  ;;  %5963 = vrot.lane.b32.xlu1 %v5962_v20, %s6518_s22  ;;  %v5977_v38 = vpack.i.bf16 %v808_v42, %v806_v9  ;;  %v5972_v8 = vpack.i.bf16 %v679_v16, %v677_v52  ;;  %v1062_v17 = vrot.slane %v6878_v12, 4  ;;  %v1066_v22 = vsel %vm1047_vm8, %v1063_v28, %v1065_v10 }
  0xcf   :  { %v933_v50 = vrot.slane %v6878_v12, 3  ;;  %v937_v59 = vsel %vm918_vm9, %v934_v54, %v936_v24  ;;  %v809_v2 = vrot.slane %v6974_v37, 2  ;;  %v680_v47 = vrot.slane %v6974_v37, 1 }
  0xd0   :  { %v504_v39 = vcombine.low %v6989_v63, %v6992_v48  ;;  %v7014_v7 = vrot.slane %v536_v43, %v6631_v33  ;;  %v1064_v23 = vsel %vm1047_vm8, %v1062_v17, %v1063_v28  ;;  %v812_v1 = vrot.slane %v7000_v19, 2 }
  0xd1   :  { %v5987_v27 = vpack.i.bf16 %v1066_v22, %v1064_v23  ;;  %v935_v36 = vsel %vm918_vm9, %v933_v50, %v934_v54  ;;  %v683_v51 = vrot.slane %v7000_v19, 1  ;;  %v811_v58 = vrot.slane %v6926_v62, 2 }
  0xd2   :  { %5978 = vrot.lane.b32.xlu0 %v5977_v38, %s6515_s19  ;;  %5973 = vrot.lane.b32.xlu1 %v5972_v8, %s6516_s20  ;;  %v5982_v41 = vpack.i.bf16 %v937_v59, %v935_v36  ;;  %v682_v20 = vrot.slane %v6926_v62, 1  ;;  %v1067_v0 = vrot.slane %v6974_v37, 4  ;;  %v810_v42 = vsel %vm789_vm6, %v807_v49, %v809_v2 }
  0xd3   :  { %v681_v32 = vsel %vm660_vm7, %v678_v13, %v680_v47  ;;  %v938_v16 = vrot.slane %v6974_v37, 3  ;;  %v9223_v43 = vmov 0.0   ;;  %v7032_v9 = vcombine.high %v6930_v11, %v6919_v35 }
  0xd4   :  { %v625_v28 = vcombine.high %v6974_v37, %v9223_v43  ;;  %v577_v52 = vcombine.high %v6817_v40, %v6840_v46  ;;  %v561_v54 = vcombine.high %v6819_v29, %v6855_v61  ;;  %v813_v49 = vsel %vm789_vm6, %v811_v58, %v812_v1 }
  0xd5   :  { %v684_v13 = vsel %vm660_vm7, %v682_v20, %v683_v51  ;;  %v1070_v37 = vrot.slane %v7000_v19, 4  ;;  %v941_v38 = vrot.slane %v7000_v19, 3  ;;  %v5997_v35 = vpack.i.bf16 %v813_v49, %v810_v42 }
  0xd6   :  { %5988 = vrot.lane.b32.xlu0 %v5987_v27, %s6517_s21  ;;  %5983 = vrot.lane.b32.xlu1 %v5982_v41, %s6518_s22  ;;  %v5992_v11 = vpack.i.bf16 %v684_v13, %v681_v32  ;;  %v1068_v8 = vsel %vm1047_vm8, %v1065_v10, %v1067_v0  ;;  %v1069_v40 = vrot.slane %v6926_v62, 4  ;;  %v939_v29 = vsel %vm918_vm9, %v936_v24, %v938_v16 }
  0xd7   :  { %v940_v46 = vrot.slane %v6926_v62, 3  ;;  %v816_v61 = vrot.slane %v625_v28, 2  ;;  %v687_v17 = vrot.slane %v625_v28, 1  ;;  %v7049_v22 = vrot.slane %v504_v39, %v6631_v33 }
  0xd8   :  { %v7052_v50 = vrot.slane %v561_v54, %v6619_v26  ;;  %v1071_v10 = vsel %vm1047_vm8, %v1069_v40, %v1070_v37  ;;  %v814_v24 = vrot.slane %v7032_v9, 2  ;;  %v685_v2 = vrot.slane %v7032_v9, 1 }
  0xd9   :  { %v942_v59 = vsel %vm918_vm9, %v940_v46, %v941_v38  ;;  %v7062_v47 = vcombine.low %v7049_v22, %v7014_v7  ;;  %v7065_v39 = vrot.slane %v577_v52, %v6619_v26  ;;  %v6007_v23 = vpack.i.bf16 %v1071_v10, %v1068_v8 }
  0xda   :  { %5998 = vrot.lane.b32.xlu0 %v5997_v35, %s6515_s19  ;;  %5993 = vrot.lane.b32.xlu1 %v5992_v11, %s6516_s20  ;;  %v6002_v27 = vpack.i.bf16 %v942_v59, %v939_v29  ;;  %v817_v36 = vsel %vm789_vm6, %v814_v24, %v816_v61  ;;  %v688_v41 = vsel %vm660_vm7, %v685_v2, %v687_v17  ;;  %v1074_v58 = vrot.slane %v625_v28, 4 }
  0xdb   :  { %v945_v20 = vrot.slane %v625_v28, 3  ;;  %v608_v0 = vcombine.low %v7052_v50, %v7065_v39  ;;  %v815_v42 = vsel %vm789_vm6, %v812_v1, %v814_v24  ;;  %v686_v32 = vsel %vm660_vm7, %v683_v51, %v685_v2 }
  0xdc   :  { %v1072_v16 = vrot.slane %v7032_v9, 4  ;;  %v943_v52 = vrot.slane %v7032_v9, 3  ;;  %v6017_v54 = vpack.i.bf16 %v817_v36, %v815_v42  ;;  %v6012_v49 = vpack.i.bf16 %v688_v41, %v686_v32 }
  0xdd   :  { %v821_v35 = vrot.slane %v7062_v47, 2  ;;  %v692_v11 = vrot.slane %v7062_v47, 1  ;;  %v616_v8 = vrot.slane %v608_v0, %v6631_v33  ;;  %v819_v40 = vrot.slane %v6757_v14, 2 }
  0xde   :  { %6008 = vrot.lane.b32.xlu0 %v6007_v23, %s6517_s21  ;;  %6003 = vrot.lane.b32.xlu1 %v6002_v27, %s6518_s22  ;;  %v1075_v13 = vsel %vm1047_vm8, %v1072_v16, %v1074_v58  ;;  %v946_v28 = vsel %vm918_vm9, %v943_v52, %v945_v20  ;;  %v1073_v1 = vsel %vm1047_vm8, %v1070_v37, %v1072_v16  ;;  %v690_v29 = vrot.slane %v6757_v14, 1 }
  0xdf   :  { %v944_v51 = vsel %vm918_vm9, %v941_v38, %v943_v52  ;;  %v6027_v46 = vpack.i.bf16 %v1075_v13, %v1073_v1  ;;  %v818_v17 = vrot.slane %v6683_v3, 2  ;;  %v1079_v10 = vrot.slane %v7062_v47, 4 }
  0xe0   :  { %v6022_v61 = vpack.i.bf16 %v946_v28, %v944_v51  ;;  %v822_v59 = vsel %vm789_vm6, %v819_v40, %v821_v35  ;;  %v689_v24 = vrot.slane %v6683_v3, 1  ;;  %v693_v2 = vsel %vm660_vm7, %v690_v29, %v692_v11 }
  0xe1   :  { %v950_v37 = vrot.slane %v7062_v47, 3  ;;  %v1077_v38 = vrot.slane %v6757_v14, 4  ;;  %v820_v23 = vsel %vm789_vm6, %v818_v17, %v819_v40  ;;  %v948_v36 = vrot.slane %v6757_v14, 3 }
  0xe2   :  { %6018 = vrot.lane.b32.xlu0 %v6017_v54, %s6515_s19  ;;  %6013 = vrot.lane.b32.xlu1 %v6012_v49, %s6516_s20  ;;  %v691_v27 = vsel %vm660_vm7, %v689_v24, %v690_v29  ;;  %v6037_v41 = vpack.i.bf16 %v822_v59, %v820_v23  ;;  %v1076_v20 = vrot.slane %v6683_v3, 4  ;;  %v947_v42 = vrot.slane %v6683_v3, 3 }
  0xe3   :  { %v6032_v58 = vpack.i.bf16 %v693_v2, %v691_v27  ;;  %v1080_v0 = vsel %vm1047_vm8, %v1077_v38, %v1079_v10  ;;  %v951_v32 = vsel %vm918_vm9, %v948_v36, %v950_v37  ;;  %v823_v16 = vrot.slane %v616_v8, 2 }
  0xe4   :  { %v694_v52 = vrot.slane %v616_v8, 1  ;;  %v537_v54 = vcombine.high %v6968_v53, %v6971_v15  ;;  %v1078_v49 = vsel %vm1047_vm8, %v1076_v20, %v1077_v38  ;;  %v949_v28 = vsel %vm918_vm9, %v947_v42, %v948_v36 }
  0xe5   :  { %v6047_v13 = vpack.i.bf16 %v1080_v0, %v1078_v49  ;;  %v826_v1 = vrot.slane %v6759_v55, 2  ;;  %v697_v51 = vrot.slane %v6759_v55, 1  ;;  %v6042_v40 = vpack.i.bf16 %v951_v32, %v949_v28 }
  0xe6   :  { %6028 = vrot.lane.b32.xlu0 %v6027_v46, %s6517_s21  ;;  %6023 = vrot.lane.b32.xlu1 %v6022_v61, %s6518_s22  ;;  %v825_v29 = vrot.slane %v6685_v4, 2  ;;  %v696_v46 = vrot.slane %v6685_v4, 1  ;;  %v1081_v61 = vrot.slane %v616_v8, 4  ;;  %v824_v53 = vsel %vm789_vm6, %v821_v35, %v823_v16 }
  0xe7   :  { %v695_v15 = vsel %vm660_vm7, %v692_v11, %v694_v52  ;;  %v952_v17 = vrot.slane %v616_v8, 3  ;;  %v626_v59 = vcombine.high %v616_v8, %v9223_v43  ;;  %v505_v24 = vcombine.high %v6989_v63, %v6992_v48 }
  0xe8   :  { %v7120_v2 = vrot.slane %v537_v54, %v6631_v33  ;;  %v7124_v38 = vcombine.high %v7049_v22, %v7014_v7  ;;  %v827_v35 = vsel %vm789_vm6, %v825_v29, %v826_v1  ;;  %v698_v11 = vsel %vm660_vm7, %v696_v46, %v697_v51  ;;  %v6178_v54 = vld [vmem:[%s9161_s1 + $0x100] ss:$16 sps:$4 sm:$0x3f]  }
  0xe9   :  { %v1084_v8 = vrot.slane %v6759_v55, 4  ;;  %v955_v23 = vrot.slane %v6759_v55, 3  ;;  %v6057_v63 = vpack.i.bf16 %v827_v35, %v824_v53  ;;  %v6052_v48 = vpack.i.bf16 %v698_v11, %v695_v15 }
  0xea   :  { %6038 = vrot.lane.b32.xlu0 %v6037_v41, %s6515_s19  ;;  %6033 = vrot.lane.b32.xlu1 %v6032_v58, %s6516_s20  ;;  %v1082_v27 = vsel %vm1047_vm8, %v1079_v10, %v1081_v61  ;;  %v1083_v36 = vrot.slane %v6685_v4, 4  ;;  %v953_v7 = vsel %vm918_vm9, %v950_v37, %v952_v17  ;;  %v954_v22 = vrot.slane %v6685_v4, 3  ;;  %v6181_v17 = vld [vmem:[%s9161_s1 + $0xc] ss:$16 sps:$4 sm:$0xff]  }
  0xeb   :  { %v830_v41 = vrot.slane %v626_v59, 2  ;;  %v701_v58 = vrot.slane %v626_v59, 1  ;;  %v7137_v20 = vrot.slane %v505_v24, %v6631_v33  ;;  %v828_v10 = vrot.slane %v7124_v38, 2 }
  0xec   :  { %v1085_v0 = vsel %vm1047_vm8, %v1083_v36, %v1084_v8  ;;  %v956_v42 = vsel %vm918_vm9, %v954_v22, %v955_v23  ;;  %v699_v32 = vrot.slane %v7124_v38, 1  ;;  %v1088_v28 = vrot.slane %v626_v59, 4 }
  0xed   :  { %v7147_v37 = vcombine.low %v7137_v20, %v7120_v2  ;;  %v6067_v16 = vpack.i.bf16 %v1085_v0, %v1082_v27  ;;  %v6062_v52 = vpack.i.bf16 %v956_v42, %v953_v7  ;;  %v831_v49 = vsel %vm789_vm6, %v828_v10, %v830_v41 }
  0xee   :  { %6048 = vrot.lane.b32.xlu0 %v6047_v13, %s6517_s21  ;;  %6043 = vrot.lane.b32.xlu1 %v6042_v40, %s6518_s22  ;;  %v702_v13 = vsel %vm660_vm7, %v699_v32, %v701_v58  ;;  %v959_v40 = vrot.slane %v626_v59, 3  ;;  %v609_v29 = vcombine.high %v7052_v50, %v7065_v39  ;;  %v829_v46 = vsel %vm789_vm6, %v826_v1, %v828_v10 }
  0xef   :  { %v700_v61 = vsel %vm660_vm7, %v697_v51, %v699_v32  ;;  %v1086_v53 = vrot.slane %v7124_v38, 4  ;;  %v957_v15 = vrot.slane %v7124_v38, 3  ;;  %v6077_v59 = vpack.i.bf16 %v831_v49, %v829_v46 }
  0xf0   :  { %v6072_v24 = vpack.i.bf16 %v702_v13, %v700_v61  ;;  %v1549_v50 = vsel %vm789_vm6, %v6178_v54, 0  ;;  %v835_v1 = vrot.slane %v7147_v37, 2  ;;  %v706_v51 = vrot.slane %v7147_v37, 1 }
  0xf1   :  { %v1089_v39 = vsel %vm1047_vm8, %v1086_v53, %v1088_v28  ;;  %v960_v35 = vsel %vm918_vm9, %v957_v15, %v959_v40  ;;  %1577 = vmatpush1.bf16.msra.mxu1 %v1549_v50  ;;  %v623_v11 = vrot.slane %v609_v29, %v6631_v33  ;;  %v833_v27 = vrot.slane %v6761_v56, 2 }
  0xf2   :  { %6058 = vrot.lane.b32.xlu0 %v6057_v63, %s6515_s19  ;;  %6053 = vrot.lane.b32.xlu1 %v6052_v48, %s6516_s20  ;;  %v1087_v63 = vsel %vm1047_vm8, %v1084_v8, %v1086_v53  ;;  %v958_v48 = vsel %vm918_vm9, %v955_v23, %v957_v15  ;;  %v704_v36 = vrot.slane %v6761_v56, 1  ;;  %v832_v41 = vrot.slane %v6687_v5, 2 }
  0xf3   :  { %1713 = vmatprep.subr.bf16.mxu1 %v6181_v17  ;;  %v6087_v7 = vpack.i.bf16 %v1089_v39, %v1087_v63  ;;  %v6082_v22 = vpack.i.bf16 %v960_v35, %v958_v48  ;;  %v703_v58 = vrot.slane %v6687_v5, 1  ;;  %v836_v33 = vsel %vm789_vm6, %v833_v27, %v835_v1 }
  0xf4   :  { %v707_v0 = vsel %vm660_vm7, %v704_v36, %v706_v51  ;;  %v1093_v42 = vrot.slane %v7147_v37, 4  ;;  %v964_v8 = vrot.slane %v7147_v37, 3  ;;  %v1091_v23 = vrot.slane %v6761_v56, 4 }
  0xf5   :  { %v834_v10 = vsel %vm789_vm6, %v832_v41, %v833_v27  ;;  %v705_v32 = vsel %vm660_vm7, %v703_v58, %v704_v36  ;;  %v1090_v49 = vrot.slane %v6687_v5, 4  ;;  %v837_v13 = vrot.slane %v623_v11, 2 }
  0xf6   :  { %6068 = vrot.lane.b32.xlu0 %v6067_v16, %s6517_s21  ;;  %6063 = vrot.lane.b32.xlu1 %v6062_v52, %s6518_s22  ;;  %v962_v16 = vrot.slane %v6761_v56, 3  ;;  %v6097_v52 = vpack.i.bf16 %v836_v33, %v834_v10  ;;  %v6092_v54 = vpack.i.bf16 %v707_v0, %v705_v32  ;;  %v1094_v28 = vsel %vm1047_vm8, %v1091_v23, %v1093_v42 }
  0xf7   :  { %v961_v40 = vrot.slane %v6687_v5, 3  ;;  %v708_v46 = vrot.slane %v623_v11, 1  ;;  %v1092_v61 = vsel %vm1047_vm8, %v1090_v49, %v1091_v23  ;;  %v839_v15 = vrot.slane %v6689_v6, 2 }
  0xf8   :  { %v965_v29 = vsel %vm918_vm9, %v962_v16, %v964_v8  ;;  %v840_v17 = vrot.slane %v6763_v57, 2  ;;  %v838_v39 = vsel %vm789_vm6, %v835_v1, %v837_v13  ;;  %v1095_v35 = vrot.slane %v623_v11, 4 }
  0xf9   :  { %v963_v53 = vsel %vm918_vm9, %v961_v40, %v962_v16  ;;  %v709_v63 = vsel %vm660_vm7, %v706_v51, %v708_v46  ;;  %v710_v48 = vrot.slane %v6689_v6, 1  ;;  %v966_v27 = vrot.slane %v623_v11, 3 }
  0xfa   :  { %6078 = vrot.lane.b32.xlu0 %v6077_v59, %s6515_s19  ;;  %6073 = vrot.lane.b32.xlu1 %v6072_v24, %s6516_s20  ;;  %v711_v59 = vrot.slane %v6763_v57, 1  ;;  %v6107_v24 = vpack.i.bf16 %v1094_v28, %v1092_v61  ;;  %v6102_v50 = vpack.i.bf16 %v965_v29, %v963_v53  ;;  %v627_v36 = vcombine.high %v623_v11, %v9223_v43 }
  0xfb   :  { %v1098_v41 = vrot.slane %v6763_v57, 4  ;;  %v969_v51 = vrot.slane %v6763_v57, 3  ;;  %v1096_v11 = vsel %vm1047_vm8, %v1093_v42, %v1095_v35  ;;  %v1097_v0 = vrot.slane %v6689_v6, 4 }
  0xfc   :  { %v712_v1 = vsel %vm660_vm7, %v710_v48, %v711_v59  ;;  %v844_v23 = vrot.slane %v627_v36, 2  ;;  %v715_v10 = vrot.slane %v627_v36, 1  ;;  %v1102_v28 = vrot.slane %v627_v36, 4 }
  0xfd   :  { %v6112_v33 = vpack.i.bf16 %v712_v1, %v709_v63  ;;  %v1099_v32 = vsel %vm1047_vm8, %v1097_v0, %v1098_v41  ;;  %v973_v40 = vrot.slane %v627_v36, 3 }
  0xfe   :  { %6088 = vrot.lane.b32.xlu0 %v6087_v7, %s6517_s21  ;;  %6083 = vrot.lane.b32.xlu1 %v6082_v22, %s6518_s22  ;;  %v7206_v7 = vcombine.high %v7137_v20, %v7120_v2  ;;  %v841_v22 = vsel %vm789_vm6, %v839_v15, %v840_v17  ;;  %v967_v2 = vsel %vm918_vm9, %v964_v8, %v966_v27  ;;  %v968_v20 = vrot.slane %v6689_v6, 3 }
  0xff   :  { %v6117_v58 = vpack.i.bf16 %v841_v22, %v838_v39 }
 0x100   :  { %v970_v16 = vsel %vm918_vm9, %v968_v20, %v969_v51  ;;  %v713_v42 = vrot.slane %v7206_v7, 1  ;;  %v1100_v61 = vrot.slane %v7206_v7, 4  ;;  %v971_v53 = vrot.slane %v7206_v7, 3 }
 0x101   :  { %v6122_v49 = vpack.i.bf16 %v970_v16, %v967_v2 }
 0x102   :  { %6098 = vrot.lane.b32.xlu0 %v6097_v52, %s6515_s19  ;;  %6093 = vrot.lane.b32.xlu1 %v6092_v54, %s6516_s20  ;;  %v842_v52 = vrot.slane %v7206_v7, 2  ;;  %v6127_v54 = vpack.i.bf16 %v1099_v32, %v1096_v11  ;;  %v716_v13 = vsel %vm660_vm7, %v713_v42, %v715_v10  ;;  %v714_v46 = vsel %vm660_vm7, %v711_v59, %v713_v42 }
 0x103   :  { %v974_v39 = vsel %vm918_vm9, %v971_v53, %v973_v40  ;;  %v1101_v35 = vsel %vm1047_vm8, %v1098_v41, %v1100_v61 }
 0x104   :  { %v845_v8 = vsel %vm789_vm6, %v842_v52, %v844_v23  ;;  %v843_v29 = vsel %vm789_vm6, %v840_v17, %v842_v52  ;;  %v972_v17 = vsel %vm918_vm9, %v969_v51, %v971_v53 }
 0x105   :  { %v6137_v15 = vpack.i.bf16 %v845_v8, %v843_v29  ;;  %v6142_v59 = vpack.i.bf16 %v974_v39, %v972_v17 }
 0x106   :  { %6108 = vrot.lane.b32.xlu0 %v6107_v24, %s6517_s21  ;;  %6103 = vrot.lane.b32.xlu1 %v6102_v50, %s6518_s22  ;;  %v6132_v24 = vpack.i.bf16 %v716_v13, %v714_v46  ;;  %v1103_v50 = vsel %vm1047_vm8, %v1100_v61, %v1102_v28  ;;  %v6179_v28 = vld [vmem:[%s9161_s1 + $0x8] ss:$16 sps:$4 sm:$0xff]   ;;  %v6184_v61 = vld [vmem:[%s9161_s1 + $0x2c] ss:$16 sps:$4 sm:$0xff]  }
 0x107   :  { %v6147_v63 = vpack.i.bf16 %v1103_v50, %v1101_v35 }
 0x10a   :  { %6118 = vrot.lane.b32.xlu0 %v6117_v58, %s6515_s19  ;;  %6113 = vrot.lane.b32.xlu1 %v6112_v33, %s6516_s20 }
 0x10e   :  { %6128 = vrot.lane.b32.xlu0 %v6127_v54, %s6517_s21  ;;  %6123 = vrot.lane.b32.xlu1 %v6122_v49, %s6518_s22 }
 0x112   :  { %6138 = vrot.lane.b32.xlu0 %v6137_v15, %s6515_s19  ;;  %6133 = vrot.lane.b32.xlu1 %v6132_v24, %s6516_s20 }
 0x116   :  { %6148 = vrot.lane.b32.xlu0 %v6147_v63, %s6517_s21  ;;  %6143 = vrot.lane.b32.xlu1 %v6142_v59, %s6518_s22  ;;  %v6182_v59 = vld [vmem:[%s9161_s1 + $0x28] ss:$16 sps:$4 sm:$0xff]  }
 0x12a   :  { %v5919_v48 = vpop.permute.xlu0 %5918  ;;  %v5914_v27 = vpop.permute.xlu1 %5913 }
 0x12b   :  { %v5916_v36 = vunpack.i.h.bf16 %v5914_v27  ;;  %v5915_v22 = vunpack.i.l.bf16 %v5914_v27  ;;  %v5921_v1 = vunpack.i.h.bf16 %v5919_v48  ;;  %v5920_v58 = vunpack.i.l.bf16 %v5919_v48 }
 0x12d   :  { %v1178_v33 = vsel %vm1176_vm10, %v6805_v31, %v5916_v36  ;;  %v1177_v41 = vsel %vm1176_vm10, %v6809_v34, %v5915_v22 }
 0x12e   :  { %v5929_v51 = vpop.permute.xlu0 %5928  ;;  %v5924_v11 = vpop.permute.xlu1 %5923  ;;  %v1203_v10 = vsel %vm1201_vm11, %v1178_v33, %v5921_v1  ;;  %v1202_v32 = vsel %vm1201_vm11, %v1177_v41, %v5920_v58 }
 0x12f   :  { %v5931_v0 = vunpack.i.h.bf16 %v5929_v51  ;;  %v5930_v2 = vunpack.i.l.bf16 %v5929_v51  ;;  %v5926_v20 = vunpack.i.h.bf16 %v5924_v11  ;;  %v5925_v23 = vunpack.i.l.bf16 %v5924_v11 }
 0x131   :  { %v7246_v16 = vpack.c.bf16 %v5931_v0, %v5930_v2  ;;  %v1227_v31 = vsel %vm1226_vm12, %v1202_v32, %v5925_v23  ;;  %v1228_v52 = vsel %vm1226_vm12, %v1203_v10, %v5926_v20  ;;  %v6190_v10 = vld [vmem:[%s9161_s1 + $0x6c] ss:$16 sps:$4 sm:$0xff]  }
 0x132   :  { %v1252_v54 = vsel %vm1251_vm13, %v1227_v31, %v5930_v2  ;;  %v1253_v49 = vsel %vm1251_vm13, %v1228_v52, %v5931_v0  ;;  %v6185_v0 = vld [vmem:[%s9161_s1 + $0x48] ss:$16 sps:$4 sm:$0xff]  }
 0x133   :  { %5510 = vmatprep.mubr.msk.bf16.mxu1 %vm149_vm5, %v7246_v16  ;;  %v7257_v46 = vpack.c.bf16 %v1253_v49, %v1252_v54 }
 0x134   :  { %v5934_v34 = vpop.permute.xlu1 %5933  ;;  %v5939_v42 = vpop.permute.xlu0 %5938 }
 0x135   :  { %v5936_v8 = vunpack.i.h.bf16 %v5934_v34  ;;  %v5935_v13 = vunpack.i.l.bf16 %v5934_v34  ;;  %v5941_v40 = vunpack.i.h.bf16 %v5939_v42  ;;  %v5940_v29 = vunpack.i.l.bf16 %v5939_v42  ;;  %1593 = vmatmul.mubr.bf16.vlgmr.msra.gmra.mrb[0].mxu1 %v7257_v46 }
 0x136   :  { %1714 = vmatpush1.bf16.msra.mxu1 %v6179_v28 }
 0x137   :  { %v1180_v53 = vsel %vm1176_vm10, %v6833_v44, %v5936_v8  ;;  %v1179_v15 = vsel %vm1176_vm10, %v6837_v45, %v5935_v13  ;;  %1715 = vmatprep.subr.bf16.mxu1 %v6184_v61  ;;  %v6187_v45 = vld [vmem:[%s9161_s1 + $0x4c] ss:$16 sps:$4 sm:$0xff]   ;;  %v6188_v13 = vld [vmem:[%s9161_s1 + $0x68] ss:$16 sps:$4 sm:$0xff]  }
 0x138   :  { %v5944_v24 = vpop.permute.xlu1 %5943  ;;  %v5949_v50 = vpop.permute.xlu0 %5948  ;;  %v1205_v48 = vsel %vm1201_vm11, %v1180_v53, %v5941_v40  ;;  %v1204_v44 = vsel %vm1201_vm11, %v1179_v15, %v5940_v29 }
 0x139   :  { %v5946_v39 = vunpack.i.h.bf16 %v5944_v24  ;;  %v5945_v35 = vunpack.i.l.bf16 %v5944_v24  ;;  %v5951_v17 = vunpack.i.h.bf16 %v5949_v50  ;;  %v5950_v63 = vunpack.i.l.bf16 %v5949_v50 }
 0x13a   :  { %1716 = vmatpush1.bf16.msra.mxu1 %v6182_v59 }
 0x13b   :  { %v1229_v27 = vsel %vm1226_vm12, %v1204_v44, %v5945_v35  ;;  %v1230_v36 = vsel %vm1226_vm12, %v1205_v48, %v5946_v39  ;;  %v7277_v22 = vpack.c.bf16 %v5951_v17, %v5950_v63  ;;  %1717 = vmatprep.subr.bf16.mxu1 %v6187_v45  ;;  %v6196_v44 = vld [vmem:[%s9161_s1 + $0xac] ss:$16 sps:$4 sm:$0xff]  }
 0x13c   :  { %v5954_v1 = vpop.permute.xlu1 %5953  ;;  %v5959_v58 = vpop.permute.xlu0 %5958  ;;  %v1254_v33 = vsel %vm1251_vm13, %v1229_v27, %v5950_v63  ;;  %v1255_v41 = vsel %vm1251_vm13, %v1230_v36, %v5951_v17  ;;  %v6191_v17 = vld [vmem:[%s9161_s1 + $0x88] ss:$16 sps:$4 sm:$0xff]  }
 0x13d   :  { %v5956_v51 = vunpack.i.h.bf16 %v5954_v1  ;;  %v5955_v11 = vunpack.i.l.bf16 %v5954_v1  ;;  %5511 = vmatprep.mubr.msk.bf16.mxu1 %vm149_vm5, %v7277_v22  ;;  %v5961_v2 = vunpack.i.h.bf16 %v5959_v58  ;;  %v5960_v20 = vunpack.i.l.bf16 %v5959_v58 }
 0x13e   :  { %v7286_v23 = vpack.c.bf16 %v1255_v41, %v1254_v33  ;;  %1718 = vmatpush1.bf16.msra.mxu1 %v6185_v0 }
 0x13f   :  { %v1182_v32 = vsel %vm1176_vm10, %v6908_v18, %v5956_v51  ;;  %v1181_v31 = vsel %vm1176_vm10, %v6853_v60, %v5955_v11  ;;  %1719 = vmatprep.subr.bf16.mxu1 %v6190_v10  ;;  %v6193_v60 = vld [vmem:[%s9161_s1 + $0x8c] ss:$16 sps:$4 sm:$0xff]   ;;  %v6194_v11 = vld [vmem:[%s9161_s1 + $0xa8] ss:$16 sps:$4 sm:$0xff]  }
 0x140   :  { %1603 = vmatmul.mubr.bf16.gmra.mrb[4].mxu1 %v7286_v23  ;;  %v5964_v52 = vpop.permute.xlu1 %5963  ;;  %v5969_v34 = vpop.permute.xlu0 %5968  ;;  %v1207_v28 = vsel %vm1201_vm11, %v1182_v32, %v5961_v2  ;;  %v1206_v18 = vsel %vm1201_vm11, %v1181_v31, %v5960_v20 }
 0x141   :  { %v5966_v42 = vunpack.i.h.bf16 %v5964_v52  ;;  %v5965_v54 = vunpack.i.l.bf16 %v5964_v52  ;;  %v5971_v49 = vunpack.i.h.bf16 %v5969_v34  ;;  %v5970_v8 = vunpack.i.l.bf16 %v5969_v34 }
 0x142   :  { %1720 = vmatpush1.bf16.msra.mxu1 %v6188_v13 }
 0x143   :  { %v1231_v40 = vsel %vm1226_vm12, %v1206_v18, %v5965_v54  ;;  %v1232_v29 = vsel %vm1226_vm12, %v1207_v28, %v5966_v42  ;;  %v7306_v61 = vpack.c.bf16 %v5971_v49, %v5970_v8  ;;  %1721 = vmatprep.subr.bf16.mxu1 %v6193_v60  ;;  %v6202_v18 = vld [vmem:[%s9161_s1 + $0xec] ss:$16 sps:$4 sm:$0xff]  }
 0x144   :  { %v5974_v53 = vpop.permute.xlu1 %5973  ;;  %v5979_v15 = vpop.permute.xlu0 %5978  ;;  %v1256_v24 = vsel %vm1251_vm13, %v1231_v40, %v5970_v8  ;;  %v1257_v50 = vsel %vm1251_vm13, %v1232_v29, %v5971_v49  ;;  %v6197_v49 = vld [vmem:[%s9161_s1 + $0xc8] ss:$16 sps:$4 sm:$0xff]  }
 0x145   :  { %v5976_v39 = vunpack.i.h.bf16 %v5974_v53  ;;  %v5975_v35 = vunpack.i.l.bf16 %v5974_v53  ;;  %5512 = vmatprep.mubr.msk.bf16.mxu1 %vm149_vm5, %v7306_v61  ;;  %v5981_v63 = vunpack.i.h.bf16 %v5979_v15  ;;  %v5980_v59 = vunpack.i.l.bf16 %v5979_v15 }
 0x146   :  { %v7315_v48 = vpack.c.bf16 %v1257_v50, %v1256_v24  ;;  %1722 = vmatpush1.bf16.msra.mxu1 %v6191_v17 }
 0x147   :  { %v1184_v45 = vsel %vm1176_vm10, %v6939_v25, %v5976_v39  ;;  %v1183_v27 = vsel %vm1176_vm10, %v6878_v12, %v5975_v35  ;;  %1723 = vmatprep.subr.bf16.mxu1 %v6196_v44  ;;  %v6199_v12 = vld [vmem:[%s9161_s1 + $0xcc] ss:$16 sps:$4 sm:$0xff]   ;;  %v6200_v35 = vld [vmem:[%s9161_s1 + $0xe8] ss:$16 sps:$4 sm:$0xff]  }
 0x148   :  { %1613 = vmatmul.mubr.bf16.gmra.mrb[8].mxu1 %v7315_v48  ;;  %v5984_v36 = vpop.permute.xlu1 %5983  ;;  %v5989_v1 = vpop.permute.xlu0 %5988  ;;  %v1209_v0 = vsel %vm1201_vm11, %v1184_v45, %v5981_v63  ;;  %v1208_v25 = vsel %vm1201_vm11, %v1183_v27, %v5980_v59  ;;  %v6205_v63 = vld [vmem:[%s9161_s1 + $0x108] ss:$16 sps:$4 sm:$0x3f]  }
 0x149   :  { %v5986_v58 = vunpack.i.h.bf16 %v5984_v36  ;;  %v5985_v33 = vunpack.i.l.bf16 %v5984_v36  ;;  %v5991_v41 = vunpack.i.h.bf16 %v5989_v1  ;;  %v5990_v51 = vunpack.i.l.bf16 %v5989_v1 }
 0x14a   :  { %1724 = vmatpush1.bf16.msra.mxu1 %v6194_v11 }
 0x14b   :  { %v1233_v2 = vsel %vm1226_vm12, %v1208_v25, %v5985_v33  ;;  %v1234_v20 = vsel %vm1226_vm12, %v1209_v0, %v5986_v58  ;;  %v7335_v10 = vpack.c.bf16 %v5991_v41, %v5990_v51  ;;  %1725 = vmatprep.subr.bf16.mxu1 %v6199_v12  ;;  %v1555_v25 = vsel %vm789_vm6, %v6205_v63, 0 }
 0x14c   :  { %v5994_v32 = vpop.permute.xlu1 %5993  ;;  %v5999_v31 = vpop.permute.xlu0 %5998  ;;  %v1258_v52 = vsel %vm1251_vm13, %v1233_v2, %v5990_v51  ;;  %v1259_v34 = vsel %vm1251_vm13, %v1234_v20, %v5991_v41 }
 0x14d   :  { %v5996_v42 = vunpack.i.h.bf16 %v5994_v32  ;;  %v5995_v54 = vunpack.i.l.bf16 %v5994_v32  ;;  %5513 = vmatprep.mubr.msk.bf16.mxu1 %vm149_vm5, %v7335_v10  ;;  %v6001_v8 = vunpack.i.h.bf16 %v5999_v31  ;;  %v6000_v13 = vunpack.i.l.bf16 %v5999_v31 }
 0x14e   :  { %v7344_v28 = vpack.c.bf16 %v1259_v34, %v1258_v52  ;;  %1726 = vmatpush1.bf16.msra.mxu1 %v6197_v49 }
 0x14f   :  { %v1186_v60 = vsel %vm1176_vm10, %v6926_v62, %v5996_v42  ;;  %v1185_v40 = vsel %vm1176_vm10, %v6943_v30, %v5995_v54  ;;  %1727 = vmatprep.subr.bf16.mxu1 %v6202_v18  ;;  %v6203_v30 = vld [vmem:[%s9161_s1 + $0x10c] ss:$16 sps:$4 sm:$0x3f]  }
 0x150   :  { %1623 = vmatmul.mubr.bf16.gmra.mrb[12].mxu1 %v7344_v28  ;;  %v6004_v29 = vpop.permute.xlu1 %6003  ;;  %v6009_v53 = vpop.permute.xlu0 %6008  ;;  %v1211_v17 = vsel %vm1201_vm11, %v1186_v60, %v6001_v8  ;;  %v1210_v62 = vsel %vm1201_vm11, %v1185_v40, %v6000_v13 }
 0x151   :  { %v6006_v15 = vunpack.i.h.bf16 %v6004_v29  ;;  %v6005_v24 = vunpack.i.l.bf16 %v6004_v29  ;;  %v6011_v50 = vunpack.i.h.bf16 %v6009_v53  ;;  %v6010_v39 = vunpack.i.l.bf16 %v6009_v53 }
 0x152   :  { %1728 = vmatpush1.bf16.msra.mxu1 %v6200_v35 }
 0x153   :  { %v1235_v59 = vsel %vm1226_vm12, %v1210_v62, %v6005_v24  ;;  %v1236_v44 = vsel %vm1226_vm12, %v1211_v17, %v6006_v15  ;;  %v7367_v45 = vpack.c.bf16 %v6011_v50, %v6010_v39  ;;  %5522 = vmatprep.subr.msk.bf16.mxu1 %vm789_vm6, %v6203_v30 }
 0x154   :  { %v6014_v27 = vpop.permute.xlu1 %6013  ;;  %v6019_v36 = vpop.permute.xlu0 %6018  ;;  %v1260_v1 = vsel %vm1251_vm13, %v1235_v59, %v6010_v39  ;;  %v1261_v58 = vsel %vm1251_vm13, %v1236_v44, %v6011_v50 }
 0x155   :  { %v6016_v33 = vunpack.i.h.bf16 %v6014_v27  ;;  %v6015_v41 = vunpack.i.l.bf16 %v6014_v27  ;;  %5514 = vmatprep.mubr.msk.bf16.mxu1 %vm149_vm5, %v7367_v45  ;;  %v6021_v51 = vunpack.i.h.bf16 %v6019_v36  ;;  %v6020_v11 = vunpack.i.l.bf16 %v6019_v36 }
 0x156   :  { %v7373_v0 = vpack.c.bf16 %v1261_v58, %v1260_v1  ;;  %1730 = vmatpush1.bf16.msra.mxu1 %v1555_v25 }
 0x157   :  { %v1188_v12 = vsel %vm1176_vm10, %v7032_v9, %v6016_v33  ;;  %v1187_v2 = vsel %vm1176_vm10, %v7000_v19, %v6015_v41 }
 0x158   :  { %1633 = vmatmul.mubr.bf16.gmra.mrb[16].mxu1 %v7373_v0  ;;  %v6024_v20 = vpop.permute.xlu1 %6023  ;;  %v6029_v32 = vpop.permute.xlu0 %6028  ;;  %v1213_v54 = vsel %vm1201_vm11, %v1188_v12, %v6021_v51  ;;  %v1212_v49 = vsel %vm1201_vm11, %v1187_v2, %v6020_v11 }
 0x159   :  { %v6026_v31 = vunpack.i.h.bf16 %v6024_v20  ;;  %v6025_v52 = vunpack.i.l.bf16 %v6024_v20  ;;  %v6031_v34 = vunpack.i.h.bf16 %v6029_v32  ;;  %v6030_v42 = vunpack.i.l.bf16 %v6029_v32 }
 0x15b   :  { %v1237_v8 = vsel %vm1226_vm12, %v1212_v49, %v6025_v52  ;;  %v1238_v9 = vsel %vm1226_vm12, %v1213_v54, %v6026_v31  ;;  %v7386_v13 = vpack.c.bf16 %v6031_v34, %v6030_v42 }
 0x15c   :  { %v6034_v19 = vpop.permute.xlu1 %6033  ;;  %v6039_v18 = vpop.permute.xlu0 %6038  ;;  %v1262_v60 = vsel %vm1251_vm13, %v1237_v8, %v6030_v42  ;;  %v1263_v40 = vsel %vm1251_vm13, %v1238_v9, %v6031_v34 }
 0x15d   :  { %v6036_v29 = vunpack.i.h.bf16 %v6034_v19  ;;  %v6035_v53 = vunpack.i.l.bf16 %v6034_v19  ;;  %5515 = vmatprep.mubr.msk.bf16.mxu1 %vm149_vm5, %v7386_v13  ;;  %v6041_v15 = vunpack.i.h.bf16 %v6039_v18  ;;  %v6040_v24 = vunpack.i.l.bf16 %v6039_v18 }
 0x15e   :  { %v7392_v50 = vpack.c.bf16 %v1263_v40, %v1262_v60 }
 0x15f   :  { %v1190_v39 = vsel %vm1176_vm10, %v6757_v14, %v6036_v29  ;;  %v1189_v35 = vsel %vm1176_vm10, %v6683_v3, %v6035_v53 }
 0x160   :  { %1643 = vmatmul.mubr.bf16.gmra.mrb[20].mxu1 %v7392_v50  ;;  %v6044_v17 = vpop.permute.xlu1 %6043  ;;  %v6049_v62 = vpop.permute.xlu0 %6048  ;;  %v1215_v27 = vsel %vm1201_vm11, %v1190_v39, %v6041_v15  ;;  %v1214_v36 = vsel %vm1201_vm11, %v1189_v35, %v6040_v24 }
 0x161   :  { %v6046_v30 = vunpack.i.h.bf16 %v6044_v17  ;;  %v6045_v63 = vunpack.i.l.bf16 %v6044_v17  ;;  %v6051_v59 = vunpack.i.h.bf16 %v6049_v62  ;;  %v6050_v44 = vunpack.i.l.bf16 %v6049_v62 }
 0x163   :  { %v1239_v1 = vsel %vm1226_vm12, %v1214_v36, %v6045_v63  ;;  %v1240_v58 = vsel %vm1226_vm12, %v1215_v27, %v6046_v30  ;;  %v7403_v14 = vpack.c.bf16 %v6051_v59, %v6050_v44 }
 0x164   :  { %v6054_v33 = vpop.permute.xlu1 %6053  ;;  %v6059_v3 = vpop.permute.xlu0 %6058  ;;  %v1264_v41 = vsel %vm1251_vm13, %v1239_v1, %v6050_v44  ;;  %v1265_v51 = vsel %vm1251_vm13, %v1240_v58, %v6051_v59 }
 0x165   :  { %v6056_v11 = vunpack.i.h.bf16 %v6054_v33  ;;  %v6055_v25 = vunpack.i.l.bf16 %v6054_v33  ;;  %5516 = vmatprep.mubr.msk.bf16.mxu1 %vm149_vm5, %v7403_v14  ;;  %v6061_v12 = vunpack.i.h.bf16 %v6059_v3  ;;  %v6060_v2 = vunpack.i.l.bf16 %v6059_v3 }
 0x166   :  { %v7409_v20 = vpack.c.bf16 %v1265_v51, %v1264_v41 }
 0x167   :  { %v1192_v32 = vsel %vm1176_vm10, %v6685_v4, %v6056_v11  ;;  %v1191_v31 = vsel %vm1176_vm10, %v7062_v47, %v6055_v25 }
 0x168   :  { %1653 = vmatmul.mubr.bf16.gmra.mrb[24].mxu1 %v7409_v20  ;;  %v6064_v52 = vpop.permute.xlu1 %6063  ;;  %v6069_v34 = vpop.permute.xlu0 %6068  ;;  %v1217_v9 = vsel %vm1201_vm11, %v1192_v32, %v6061_v12  ;;  %v1216_v19 = vsel %vm1201_vm11, %v1191_v31, %v6060_v2 }
 0x169   :  { %v6066_v42 = vunpack.i.h.bf16 %v6064_v52  ;;  %v6065_v54 = vunpack.i.l.bf16 %v6064_v52  ;;  %v6071_v49 = vunpack.i.h.bf16 %v6069_v34  ;;  %v6070_v8 = vunpack.i.l.bf16 %v6069_v34 }
 0x16b   :  { %v1241_v18 = vsel %vm1226_vm12, %v1216_v19, %v6065_v54  ;;  %v1242_v60 = vsel %vm1226_vm12, %v1217_v9, %v6066_v42  ;;  %v7420_v4 = vpack.c.bf16 %v6071_v49, %v6070_v8 }
 0x16c   :  { %v6074_v40 = vpop.permute.xlu1 %6073  ;;  %v6079_v47 = vpop.permute.xlu0 %6078  ;;  %v1266_v29 = vsel %vm1251_vm13, %v1241_v18, %v6070_v8  ;;  %v1267_v53 = vsel %vm1251_vm13, %v1242_v60, %v6071_v49 }
 0x16d   :  { %v6076_v15 = vunpack.i.h.bf16 %v6074_v40  ;;  %v6075_v24 = vunpack.i.l.bf16 %v6074_v40  ;;  %5517 = vmatprep.mubr.msk.bf16.mxu1 %vm149_vm5, %v7420_v4  ;;  %v6081_v39 = vunpack.i.h.bf16 %v6079_v47  ;;  %v6080_v35 = vunpack.i.l.bf16 %v6079_v47 }
 0x16e   :  { %v7426_v17 = vpack.c.bf16 %v1267_v53, %v1266_v29 }
 0x16f   :  { %v1194_v62 = vsel %vm1176_vm10, %v7124_v38, %v6076_v15  ;;  %v1193_v30 = vsel %vm1176_vm10, %v6759_v55, %v6075_v24 }
 0x170   :  { %1663 = vmatmul.mubr.bf16.gmra.mrb[28].mxu1 %v7426_v17  ;;  %v6084_v63 = vpop.permute.xlu1 %6083  ;;  %v6089_v59 = vpop.permute.xlu0 %6088  ;;  %v1219_v58 = vsel %vm1201_vm11, %v1194_v62, %v6081_v39  ;;  %v1218_v33 = vsel %vm1201_vm11, %v1193_v30, %v6080_v35 }
 0x171   :  { %v6086_v44 = vunpack.i.h.bf16 %v6084_v63  ;;  %v6085_v27 = vunpack.i.l.bf16 %v6084_v63  ;;  %v6091_v36 = vunpack.i.h.bf16 %v6089_v59  ;;  %v6090_v1 = vunpack.i.l.bf16 %v6089_v59 }
 0x173   :  { %v1243_v3 = vsel %vm1226_vm12, %v1218_v33, %v6085_v27  ;;  %v1244_v41 = vsel %vm1226_vm12, %v1219_v58, %v6086_v44  ;;  %v7437_v38 = vpack.c.bf16 %v6091_v36, %v6090_v1 }
 0x174   :  { %v6094_v51 = vpop.permute.xlu1 %6093  ;;  %v6099_v55 = vpop.permute.xlu0 %6098  ;;  %v1268_v11 = vsel %vm1251_vm13, %v1243_v3, %v6090_v1  ;;  %v1269_v25 = vsel %vm1251_vm13, %v1244_v41, %v6091_v36 }
 0x175   :  { %v6096_v12 = vunpack.i.h.bf16 %v6094_v51  ;;  %v6095_v2 = vunpack.i.l.bf16 %v6094_v51  ;;  %5518 = vmatprep.mubr.msk.bf16.mxu1 %vm149_vm5, %v7437_v38  ;;  %v6101_v32 = vunpack.i.h.bf16 %v6099_v55  ;;  %v6100_v31 = vunpack.i.l.bf16 %v6099_v55 }
 0x176   :  { %v7443_v52 = vpack.c.bf16 %v1269_v25, %v1268_v11 }
 0x177   :  { %v1196_v34 = vsel %vm1176_vm10, %v6761_v56, %v6096_v12  ;;  %v1195_v42 = vsel %vm1176_vm10, %v6687_v5, %v6095_v2 }
 0x178   :  { %1673 = vmatmul.mubr.bf16.gmra.mrb[32].mxu1 %v7443_v52  ;;  %v6104_v54 = vpop.permute.xlu1 %6103  ;;  %v6109_v49 = vpop.permute.xlu0 %6108  ;;  %v1221_v60 = vsel %vm1201_vm11, %v1196_v34, %v6101_v32  ;;  %v1220_v40 = vsel %vm1201_vm11, %v1195_v42, %v6100_v31 }
 0x179   :  { %v6106_v8 = vunpack.i.h.bf16 %v6104_v54  ;;  %v6105_v9 = vunpack.i.l.bf16 %v6104_v54  ;;  %v6111_v19 = vunpack.i.h.bf16 %v6109_v49  ;;  %v6110_v18 = vunpack.i.l.bf16 %v6109_v49 }
 0x17b   :  { %v1245_v47 = vsel %vm1226_vm12, %v1220_v40, %v6105_v9  ;;  %v1246_v29 = vsel %vm1226_vm12, %v1221_v60, %v6106_v8  ;;  %v7454_v56 = vpack.c.bf16 %v6111_v19, %v6110_v18 }
 0x17c   :  { %v6114_v53 = vpop.permute.xlu1 %6113  ;;  %v6119_v5 = vpop.permute.xlu0 %6118  ;;  %v1270_v15 = vsel %vm1251_vm13, %v1245_v47, %v6110_v18  ;;  %v1271_v24 = vsel %vm1251_vm13, %v1246_v29, %v6111_v19 }
 0x17d   :  { %v6116_v39 = vunpack.i.h.bf16 %v6114_v53  ;;  %v6115_v35 = vunpack.i.l.bf16 %v6114_v53  ;;  %5519 = vmatprep.mubr.msk.bf16.mxu1 %vm149_vm5, %v7454_v56  ;;  %v6121_v62 = vunpack.i.h.bf16 %v6119_v5  ;;  %v6120_v30 = vunpack.i.l.bf16 %v6119_v5 }
 0x17e   :  { %v7460_v63 = vpack.c.bf16 %v1271_v24, %v1270_v15 }
 0x17f   :  { %v1198_v59 = vsel %vm1176_vm10, %v6689_v6, %v6116_v39  ;;  %v1197_v44 = vsel %vm1176_vm10, %v7147_v37, %v6115_v35  ;;  %v6237_v35 = vld [vmem:[%s9162_s3 + $0x54] ss:$8 sps:$4 sm:$0xff]  }
 0x180   :  { %1683 = vmatmul.mubr.bf16.gmra.mrb[36].mxu1 %v7460_v63  ;;  %v6124_v27 = vpop.permute.xlu1 %6123  ;;  %v6129_v36 = vpop.permute.xlu0 %6128  ;;  %v1223_v41 = vsel %vm1201_vm11, %v1198_v59, %v6121_v62  ;;  %v1222_v51 = vsel %vm1201_vm11, %v1197_v44, %v6120_v30  ;;  %v6235_v62 = vld [vmem:[%s9162_s3 + $0x50] ss:$8 sps:$4 sm:$0xff]   ;;  %v6238_v30 = vld [vmem:[%s9162_s3 + $0x140] ss:$8 sps:$4 sm:$0xff]   ;;  %v6243_v44 = vld [vmem:[%s9162_s3 + $0x64] ss:$8 sps:$4 sm:$0xff]  }
 0x181   :  { %v6126_v1 = vunpack.i.h.bf16 %v6124_v27  ;;  %v6125_v58 = vunpack.i.l.bf16 %v6124_v27  ;;  %v6131_v33 = vunpack.i.h.bf16 %v6129_v36  ;;  %v6130_v3 = vunpack.i.l.bf16 %v6129_v36  ;;  %v6241_v59 = vld [vmem:[%s9162_s3 + $0x60] ss:$8 sps:$4 sm:$0xff]   ;;  %v6244_v27 = vld [vmem:[%s9162_s3 + $0x150] ss:$8 sps:$4 sm:$0xff]   ;;  %v6245_v36 = vld [vmem:[%s9162_s3 + $0x164] ss:$8 sps:$4 sm:$0xff]  }
 0x183   :  { %v1247_v55 = vsel %vm1226_vm12, %v1222_v51, %v6125_v58  ;;  %v1248_v11 = vsel %vm1226_vm12, %v1223_v41, %v6126_v1  ;;  %v7471_v6 = vpack.c.bf16 %v6131_v33, %v6130_v3  ;;  %v6247_v1 = vld [vmem:[%s9162_s3 + $0x70] ss:$8 sps:$4 sm:$0xff]   ;;  %v6249_v58 = vld [vmem:[%s9162_s3 + $0x74] ss:$8 sps:$4 sm:$0xff]   ;;  %v6253_v41 = vld [vmem:[%s9162_s3 + $0x80] ss:$8 sps:$4 sm:$0xff]  }
 0x184   :  { %v6134_v25 = vpop.permute.xlu1 %6133  ;;  %v6139_v37 = vpop.permute.xlu0 %6138  ;;  %v1272_v12 = vsel %vm1251_vm13, %v1247_v55, %v6130_v3  ;;  %v1273_v2 = vsel %vm1251_vm13, %v1248_v11, %v6131_v33  ;;  %v6250_v33 = vld [vmem:[%s9162_s3 + $0x160] ss:$8 sps:$4 sm:$0xff]   ;;  %v6251_v3 = vld [vmem:[%s9162_s3 + $0x174] ss:$8 sps:$4 sm:$0xff]   ;;  %v6255_v51 = vld [vmem:[%s9162_s3 + $0x84] ss:$8 sps:$4 sm:$0xff]  }
 0x185   :  { %v6136_v32 = vunpack.i.h.bf16 %v6134_v25  ;;  %v6135_v31 = vunpack.i.l.bf16 %v6134_v25  ;;  %5520 = vmatprep.mubr.msk.bf16.mxu1 %vm149_vm5, %v7471_v6  ;;  %v6141_v34 = vunpack.i.h.bf16 %v6139_v37  ;;  %v6140_v42 = vunpack.i.l.bf16 %v6139_v37  ;;  %v6256_v55 = vld [vmem:[%s9162_s3 + $0x170] ss:$8 sps:$4 sm:$0xff]   ;;  %v6257_v11 = vld [vmem:[%s9162_s3 + $0x184] ss:$8 sps:$4 sm:$0xff]   ;;  %v6261_v25 = vld [vmem:[%s9162_s3 + $0x94] ss:$8 sps:$4 sm:$0xff]  }
 0x186   :  { %v7477_v54 = vpack.c.bf16 %v1273_v2, %v1272_v12  ;;  %v6262_v37 = vld [vmem:[%s9162_s3 + $0x180] ss:$8 sps:$4 sm:$0xff]   ;;  %v6263_v12 = vld [vmem:[%s9162_s3 + $0x194] ss:$8 sps:$4 sm:$0xff]  }
 0x187   :  { %v1200_v49 = vsel %vm1176_vm10, %v7206_v7, %v6136_v32  ;;  %v1199_v8 = vsel %vm1176_vm10, %v6763_v57, %v6135_v31 }
 0x188   :  { %1693 = vmatmul.mubr.bf16.gmra.mrb[40].mxu1 %v7477_v54  ;;  %v6144_v9 = vpop.permute.xlu1 %6143  ;;  %v6149_v19 = vpop.permute.xlu0 %6148  ;;  %v1225_v29 = vsel %vm1201_vm11, %v1200_v49, %v6141_v34  ;;  %v1224_v53 = vsel %vm1201_vm11, %v1199_v8, %v6140_v42  ;;  %v6265_v34 = vld [vmem:[%s9162_s3 + $0xa0] ss:$8 sps:$4 sm:$0xff]   ;;  %v6267_v42 = vld [vmem:[%s9162_s3 + $0xa4] ss:$8 sps:$4 sm:$0xff]   ;;  %v6268_v49 = vld [vmem:[%s9162_s3 + $0x190] ss:$8 sps:$4 sm:$0xff]  }
 0x189   :  { %v6146_v18 = vunpack.i.h.bf16 %v6144_v9  ;;  %v6145_v60 = vunpack.i.l.bf16 %v6144_v9  ;;  %v6151_v40 = vunpack.i.h.bf16 %v6149_v19  ;;  %v6150_v47 = vunpack.i.l.bf16 %v6149_v19  ;;  %v6269_v8 = vld [vmem:[%s9162_s3 + $0x1a4] ss:$8 sps:$4 sm:$0xff]   ;;  %v6271_v9 = vld [vmem:[%s9162_s3 + $0xb0] ss:$8 sps:$4 sm:$0xff]   ;;  %v6273_v19 = vld [vmem:[%s9162_s3 + $0xb4] ss:$8 sps:$4 sm:$0xff]  }
 0x18b   :  { %v1249_v5 = vsel %vm1226_vm12, %v1224_v53, %v6145_v60  ;;  %v1250_v15 = vsel %vm1226_vm12, %v1225_v29, %v6146_v18  ;;  %v7488_v7 = vpack.c.bf16 %v6151_v40, %v6150_v47  ;;  %v6274_v18 = vld [vmem:[%s9162_s3 + $0x1a0] ss:$8 sps:$4 sm:$0xff]   ;;  %v6275_v60 = vld [vmem:[%s9162_s3 + $0x1b4] ss:$8 sps:$4 sm:$0xff]   ;;  %v6279_v29 = vld [vmem:[%s9162_s3 + $0xc4] ss:$8 sps:$4 sm:$0xff]  }
 0x18c   :  { %v1274_v57 = vsel %vm1251_vm13, %v1249_v5, %v6150_v47  ;;  %v1275_v24 = vsel %vm1251_vm13, %v1250_v15, %v6151_v40  ;;  %v6277_v47 = vld [vmem:[%s9162_s3 + $0xc0] ss:$8 sps:$4 sm:$0xff]   ;;  %v6280_v53 = vld [vmem:[%s9162_s3 + $0x1b0] ss:$8 sps:$4 sm:$0xff]  }
 0x18d   :  { %5521 = vmatprep.mubr.msk.bf16.mxu1 %vm149_vm5, %v7488_v7  ;;  %v7494_v39 = vpack.c.bf16 %v1275_v24, %v1274_v57  ;;  %v6281_v57 = vld [vmem:[%s9162_s3 + $0x1c4] ss:$8 sps:$4 sm:$0xff]   ;;  %v6283_v24 = vld [vmem:[%s9162_s3 + $0xd0] ss:$8 sps:$4 sm:$0xff]  }
 0x190   :  { %1703 = vmatmul.mubr.bf16.gmra.mrb[44].mxu1 %v7494_v39 }
 0x191   :  { %5523 = vmatprep.mubr.msk.bf16.mxu1 %vm149_vm5, %v7246_v16  ;;  %v6206_v16 = vld [vmem:[%s9162_s3] ss:$8 sps:$4 sm:$0xff]  }
 0x198   :  { %1746 = vmatmul.mubr.bf16.vlgmr.msra.gmra.mrb[48].mxu1 %v7257_v46  ;;  %v6208_v46 = vld [vmem:[%s9162_s3 + $0x4] ss:$8 sps:$4 sm:$0xff]  }
 0x199   :  { %5524 = vmatprep.mubr.msk.bf16.mxu1 %vm149_vm5, %v7277_v22  ;;  %v6209_v22 = vld [vmem:[%s9162_s3 + $0x104] ss:$8 sps:$4 sm:$0xff]   ;;  %4434 = vmatprep.subr.bf16.mxu1 %v6208_v46  ;;  %v6287_v46 = vld [vmem:[%s9162_s3 + $0x1d4] ss:$8 sps:$4 sm:$0xff]  }
 0x19a   :  { %4435 = vmatpush1.bf16.msra.mxu1 %v6206_v16  ;;  %4507 = vmatprep.subr.bf16.mxu0 %v6209_v22  ;;  %v6286_v16 = vld [vmem:[%s9162_s3 + $0x1c0] ss:$8 sps:$4 sm:$0xff]  }
 0x1a0   :  { %1756 = vmatmul.mubr.bf16.gmra.mrb[52].mxu1 %v7286_v23  ;;  %v6211_v23 = vld [vmem:[%s9162_s3 + $0x10] ss:$8 sps:$4 sm:$0xff]  }
 0x1a1   :  { %5525 = vmatprep.mubr.msk.bf16.mxu1 %vm149_vm5, %v7306_v61  ;;  %v6213_v61 = vld [vmem:[%s9162_s3 + $0x14] ss:$8 sps:$4 sm:$0xff]  }
 0x1a2   :  { %4436 = vmatprep.subr.bf16.mxu1 %v6213_v61 }
 0x1a3   :  { %4437 = vmatpush1.bf16.msra.mxu1 %v6211_v23 }
 0x1a8   :  { %1766 = vmatmul.mubr.bf16.gmra.mrb[56].mxu1 %v7315_v48  ;;  %v6214_v48 = vld [vmem:[%s9162_s3 + $0x100] ss:$8 sps:$4 sm:$0xff]  }
 0x1a9   :  { %5526 = vmatprep.mubr.msk.bf16.mxu1 %vm149_vm5, %v7335_v10  ;;  %4508 = vmatpush1.bf16.msra.mxu0 %v6214_v48  ;;  %v6215_v10 = vld [vmem:[%s9162_s3 + $0x114] ss:$8 sps:$4 sm:$0xff]   ;;  %v6289_v48 = vld [vmem:[%s9162_s3 + $0xe0] ss:$8 sps:$4 sm:$0xff]  }
 0x1aa   :  { %4509 = vmatprep.subr.bf16.mxu0 %v6215_v10  ;;  %v6291_v10 = vld [vmem:[%s9162_s3 + $0xe4] ss:$8 sps:$4 sm:$0xff]  }
 0x1b0   :  { %1776 = vmatmul.mubr.bf16.gmra.mrb[60].mxu1 %v7344_v28  ;;  %v6217_v28 = vld [vmem:[%s9162_s3 + $0x20] ss:$8 sps:$4 sm:$0xff]  }
 0x1b1   :  { %5527 = vmatprep.mubr.msk.bf16.mxu1 %vm149_vm5, %v7367_v45  ;;  %v6219_v45 = vld [vmem:[%s9162_s3 + $0x24] ss:$8 sps:$4 sm:$0xff]  }
 0x1b2   :  { %4438 = vmatprep.subr.bf16.mxu1 %v6219_v45  ;;  %v6292_v45 = vld [vmem:[%s9162_s3 + $0x1d0] ss:$8 sps:$4 sm:$0xff]  }
 0x1b3   :  { %4439 = vmatpush1.bf16.msra.mxu1 %v6217_v28 }
 0x1b8   :  { %1786 = vmatmul.mubr.bf16.gmra.mrb[64].mxu1 %v7373_v0  ;;  %v6220_v0 = vld [vmem:[%s9162_s3 + $0x110] ss:$8 sps:$4 sm:$0xff]  }
 0x1b9   :  { %5528 = vmatprep.mubr.msk.bf16.mxu1 %vm149_vm5, %v7386_v13  ;;  %v6221_v13 = vld [vmem:[%s9162_s3 + $0x124] ss:$8 sps:$4 sm:$0xff]   ;;  %4510 = vmatpush1.bf16.msra.mxu0 %v6220_v0 }
 0x1ba   :  { %4511 = vmatprep.subr.bf16.mxu0 %v6221_v13  ;;  %v6293_v0 = vld [vmem:[%s9162_s3 + $0x1e4] ss:$8 sps:$4 sm:$0xff]   ;;  %v6297_v13 = vld [vmem:[%s9162_s3 + $0xf4] ss:$8 sps:$4 sm:$0xff]  }
 0x1c0   :  { %1796 = vmatmul.mubr.bf16.gmra.mrb[68].mxu1 %v7392_v50  ;;  %v6225_v50 = vld [vmem:[%s9162_s3 + $0x34] ss:$8 sps:$4 sm:$0xff]  }
 0x1c1   :  { %5529 = vmatprep.mubr.msk.bf16.mxu1 %vm149_vm5, %v7403_v14  ;;  %v6223_v14 = vld [vmem:[%s9162_s3 + $0x30] ss:$8 sps:$4 sm:$0xff]   ;;  %4440 = vmatprep.subr.bf16.mxu1 %v6225_v50  ;;  %v6298_v50 = vld [vmem:[%s9162_s3 + $0x1e0] ss:$8 sps:$4 sm:$0xff]  }
 0x1c2   :  { %4441 = vmatpush1.bf16.msra.mxu1 %v6223_v14  ;;  %v6295_v14 = vld [vmem:[%s9162_s3 + $0xf0] ss:$8 sps:$4 sm:$0xff]  }
 0x1c8   :  { %1806 = vmatmul.mubr.bf16.gmra.mrb[72].mxu1 %v7409_v20  ;;  %v6226_v20 = vld [vmem:[%s9162_s3 + $0x120] ss:$8 sps:$4 sm:$0xff]  }
 0x1c9   :  { %5530 = vmatprep.mubr.msk.bf16.mxu1 %vm149_vm5, %v7420_v4  ;;  %4512 = vmatpush1.bf16.msra.mxu0 %v6226_v20  ;;  %v6227_v4 = vld [vmem:[%s9162_s3 + $0x134] ss:$8 sps:$4 sm:$0xff]  }
 0x1ca   :  { %4513 = vmatprep.subr.bf16.mxu0 %v6227_v4  ;;  %v6299_v20 = vld [vmem:[%s9162_s3 + $0x1f4] ss:$8 sps:$4 sm:$0xff]  }
 0x1d0   :  { %1816 = vmatmul.mubr.bf16.gmra.mrb[76].mxu1 %v7426_v17  ;;  %v6229_v17 = vld [vmem:[%s9162_s3 + $0x40] ss:$8 sps:$4 sm:$0xff]  }
 0x1d1   :  { %5531 = vmatprep.mubr.msk.bf16.mxu1 %vm149_vm5, %v7437_v38  ;;  %v6231_v38 = vld [vmem:[%s9162_s3 + $0x44] ss:$8 sps:$4 sm:$0xff]  }
 0x1d2   :  { %4442 = vmatprep.subr.bf16.mxu1 %v6231_v38 }
 0x1d3   :  { %4443 = vmatpush1.bf16.msra.mxu1 %v6229_v17 }
 0x1d4   :  { %4444 = vmatprep.subr.bf16.mxu1 %v6237_v35 }
 0x1d7   :  { %4445 = vmatpush1.bf16.msra.mxu1 %v6235_v62 }
 0x1d8   :  { %1826 = vmatmul.mubr.bf16.gmra.mrb[80].mxu1 %v7443_v52  ;;  %v6232_v52 = vld [vmem:[%s9162_s3 + $0x130] ss:$8 sps:$4 sm:$0xff]   ;;  %4446 = vmatprep.subr.bf16.mxu1 %v6243_v44 }
 0x1d9   :  { %5532 = vmatprep.mubr.msk.bf16.mxu1 %vm149_vm5, %v7454_v56  ;;  %v6233_v56 = vld [vmem:[%s9162_s3 + $0x144] ss:$8 sps:$4 sm:$0xff]   ;;  %4514 = vmatpush1.bf16.msra.mxu0 %v6232_v52 }
 0x1da   :  { %4515 = vmatprep.subr.bf16.mxu0 %v6233_v56  ;;  %v6301_v56 = vld [vmem:[%s9162_s3 + $0x1f0] ss:$8 sps:$4 sm:$0xff]  }
 0x1db   :  { %4447 = vmatpush1.bf16.msra.mxu1 %v6241_v59 }
 0x1dc   :  { %4448 = vmatprep.subr.bf16.mxu1 %v6249_v58 }
 0x1dd   :  { %4516 = vmatpush1.bf16.msra.mxu0 %v6238_v30 }
 0x1df   :  { %4449 = vmatpush1.bf16.msra.mxu1 %v6247_v1  ;;  %v6304_v1 = vld [vmem:[%s9162_s3 + $0x204] ss:$8 sps:$4 sm:$0xff]  }
 0x1e0   :  { %1836 = vmatmul.mubr.bf16.gmra.mrb[84].mxu1 %v7460_v63  ;;  %v6239_v63 = vld [vmem:[%s9162_s3 + $0x154] ss:$8 sps:$4 sm:$0xff]   ;;  %4450 = vmatprep.subr.bf16.mxu1 %v6255_v51 }
 0x1e1   :  { %5533 = vmatprep.mubr.msk.bf16.mxu1 %vm149_vm5, %v7471_v6  ;;  %4517 = vmatprep.subr.bf16.mxu0 %v6239_v63  ;;  %v6259_v6 = vld [vmem:[%s9162_s3 + $0x90] ss:$8 sps:$4 sm:$0xff]  }
 0x1e2   :  { %4518 = vmatpush1.bf16.msra.mxu0 %v6244_v27 }
 0x1e3   :  { %4519 = vmatprep.subr.bf16.mxu0 %v6245_v36  ;;  %4451 = vmatpush1.bf16.msra.mxu1 %v6253_v41 }
 0x1e4   :  { %4452 = vmatprep.subr.bf16.mxu1 %v6261_v25 }
 0x1e6   :  { %4520 = vmatpush1.bf16.msra.mxu0 %v6250_v33 }
 0x1e7   :  { %4521 = vmatprep.subr.bf16.mxu0 %v6251_v3  ;;  %4453 = vmatpush1.bf16.msra.mxu1 %v6259_v6 }
 0x1e8   :  { %1846 = vmatmul.mubr.bf16.gmra.mrb[88].mxu1 %v7477_v54  ;;  %4454 = vmatprep.subr.bf16.mxu1 %v6267_v42 }
 0x1e9   :  { %5534 = vmatprep.mubr.msk.bf16.mxu1 %vm149_vm5, %v7488_v7 }
 0x1ea   :  { %4522 = vmatpush1.bf16.msra.mxu0 %v6256_v55 }
 0x1eb   :  { %4523 = vmatprep.subr.bf16.mxu0 %v6257_v11  ;;  %4455 = vmatpush1.bf16.msra.mxu1 %v6265_v34 }
 0x1ec   :  { %4456 = vmatprep.subr.bf16.mxu1 %v6273_v19 }
 0x1ee   :  { %4524 = vmatpush1.bf16.msra.mxu0 %v6262_v37 }
 0x1ef   :  { %4525 = vmatprep.subr.bf16.mxu0 %v6263_v12  ;;  %4457 = vmatpush1.bf16.msra.mxu1 %v6271_v9 }
 0x1f0   :  { %1856 = vmatmul.mubr.bf16.gmra.mrb[92].mxu1 %v7494_v39  ;;  %4458 = vmatprep.subr.bf16.mxu1 %v6279_v29  ;;  %v6285_v39 = vld [vmem:[%s9162_s3 + $0xd4] ss:$8 sps:$4 sm:$0xff]  }
 0x1f2   :  { %4526 = vmatpush1.bf16.msra.mxu0 %v6268_v49 }
 0x1f3   :  { %4527 = vmatprep.subr.bf16.mxu0 %v6269_v8  ;;  %4459 = vmatpush1.bf16.msra.mxu1 %v6277_v47 }
 0x1f4   :  { %4460 = vmatprep.subr.bf16.mxu1 %v6285_v39 }
 0x1f6   :  { %4528 = vmatpush1.bf16.msra.mxu0 %v6274_v18 }
 0x1f7   :  { %4529 = vmatprep.subr.bf16.mxu0 %v6275_v60  ;;  %4461 = vmatpush1.bf16.msra.mxu1 %v6283_v24  ;;  %v6520_v24 = vmov 1966171168  }
 0x1f8   :  { %4462 = vmatprep.subr.bf16.mxu1 %v6291_v10  ;;  %v2059_v39 = vunpack.c.l.s4 %v6520_v24  ;;  %v2586_v10 = vld [vmem:[%s9163_s2] sm:$0x3] }
 0x1fa   :  { %4530 = vmatpush1.bf16.msra.mxu0 %v6280_v53 }
 0x1fb   :  { %4531 = vmatprep.subr.bf16.mxu0 %v6281_v57  ;;  %4463 = vmatpush1.bf16.msra.mxu1 %v6289_v48  ;;  %v2594_v48 = vsub.s32 1, %v6612_v21 }
 0x1fc   :  { %4464 = vmatprep.subr.bf16.mxu1 %v6297_v13 }
 0x1fe   :  { %4532 = vmatpush1.bf16.msra.mxu0 %v6286_v16 }
 0x1ff   :  { %4533 = vmatprep.subr.bf16.mxu0 %v6287_v46  ;;  %4465 = vmatpush1.bf16.msra.mxu1 %v6295_v14  ;;  %v2590_v46 = vsub.s32 0, %v6612_v21 }
 0x201   :  { %v2591_v13 = vrot.slane %v2586_v10, %v2590_v46 }
 0x202   :  { %4534 = vmatpush1.bf16.msra.mxu0 %v6292_v45  ;;  %v2060_v45 = vunpack.c.0.s8 %v2059_v39 }
 0x203   :  { %4535 = vmatprep.subr.bf16.mxu0 %v6293_v0 }
 0x206   :  { %4536 = vmatpush1.bf16.msra.mxu0 %v6298_v50  ;;  %v2595_v50 = vrot.slane %v2586_v10, %v2594_v48 }
 0x207   :  { %4537 = vmatprep.subr.bf16.mxu0 %v6299_v20 }
 0x208   :  { %v7650_v2 = vpop.f32.mrb[0].mxu1 }
 0x209   :  { %v7652_v32 = vpop.f32.mrb[1].mxu1 }
 0x20a   :  { %v7654_v31 = vpop.f32.mrb[2].mxu1  ;;  %4538 = vmatpush1.bf16.msra.mxu0 %v6301_v56 }
 0x20b   :  { %v7662_v54 = vpop.f32.mrb[3].mxu1  ;;  %4580 = vmatprep.subr.bf16.mxu0 %v6304_v1  ;;  %v7832_v1 = vsub.s32 %v2060_v45, %v6612_v21 }
 0x20d   :  { %9232 = vst [vmem:[#allocation11_spill] sm:$0xff] %v7832_v1 }
 0x213   :  { %v7682_v40 = vpop.f32.mrb[4].mxu1 }
 0x214   :  { %v7693_v5 = vpop.f32.mrb[5].mxu1 }
 0x215   :  { %v7695_v15 = vpop.f32.mrb[6].mxu1 }
 0x216   :  { %v7697_v7 = vpop.f32.mrb[7].mxu1 }
 0x21b   :  { %v7714_v22 = vpop.f32.mrb[8].mxu1 }
 0x21c   :  { %v7716_v23 = vpop.f32.mrb[9].mxu1 }
 0x21d   :  { %v7718_v61 = vpop.f32.mrb[10].mxu1 }
 0x21e   :  { %v7726_v28 = vpop.f32.mrb[11].mxu1 }
 0x223   :  { %v7746_v4 = vpop.f32.mrb[12].mxu1 }
 0x224   :  { %v7748_v17 = vpop.f32.mrb[13].mxu1 }
 0x225   :  { %v7750_v38 = vpop.f32.mrb[14].mxu1 }
 0x226   :  { %v7752_v52 = vpop.f32.mrb[15].mxu1 }
 0x22b   :  { %v7757_v35 = vpop.f32.mrb[16].mxu1 }
 0x22c   :  { %v7759_v62 = vpop.f32.mrb[17].mxu1 }
 0x22d   :  { %v7761_v30 = vpop.f32.mrb[18].mxu1 }
 0x22e   :  { %v7763_v63 = vpop.f32.mrb[19].mxu1 }
 0x233   :  { %v7765_v59 = vpop.f32.mrb[20].mxu1 }
 0x234   :  { %v7767_v44 = vpop.f32.mrb[21].mxu1 }
 0x235   :  { %v7769_v27 = vpop.f32.mrb[22].mxu1 }
 0x236   :  { %v7771_v36 = vpop.f32.mrb[23].mxu1 }
 0x23b   :  { %v7776_v58 = vpop.f32.mrb[24].mxu1 }
 0x23c   :  { %v7778_v33 = vpop.f32.mrb[25].mxu1 }
 0x23d   :  { %v7780_v3 = vpop.f32.mrb[26].mxu1 }
 0x23e   :  { %v7782_v41 = vpop.f32.mrb[27].mxu1 }
 0x243   :  { %v7784_v51 = vpop.f32.mrb[28].mxu1 }
 0x244   :  { %v7786_v55 = vpop.f32.mrb[29].mxu1 }
 0x245   :  { %v7788_v11 = vpop.f32.mrb[30].mxu1 }
 0x246   :  { %v7790_v6 = vpop.f32.mrb[31].mxu1 }
 0x24b   :  { %v7792_v25 = vpop.f32.mrb[32].mxu1 }
 0x24c   :  { %v7794_v37 = vpop.f32.mrb[33].mxu1 }
 0x24d   :  { %v7796_v12 = vpop.f32.mrb[34].mxu1 }
 0x24e   :  { %v7798_v34 = vpop.f32.mrb[35].mxu1 }
 0x253   :  { %v7800_v42 = vpop.f32.mrb[36].mxu1 }
 0x254   :  { %v7802_v49 = vpop.f32.mrb[37].mxu1 }
 0x255   :  { %v7804_v8 = vpop.f32.mrb[38].mxu1 }
 0x256   :  { %v7806_v9 = vpop.f32.mrb[39].mxu1 }
 0x25b   :  { %v7808_v19 = vpop.f32.mrb[40].mxu1 }
 0x25c   :  { %9224 = vst [vmem:[#allocation3_spill] sm:$0xff] %v7808_v19  ;;  %v7810_v18 = vpop.f32.mrb[41].mxu1 }
 0x25d   :  { %9225 = vst [vmem:[#allocation4_spill] sm:$0xff] %v7810_v18  ;;  %v7812_v60 = vpop.f32.mrb[42].mxu1 }
 0x25e   :  { %9226 = vst [vmem:[#allocation5_spill] sm:$0xff] %v7812_v60  ;;  %v7814_v47 = vpop.f32.mrb[43].mxu1 }
 0x25f   :  { %9227 = vst [vmem:[#allocation6_spill] sm:$0xff] %v7814_v47 }
 0x263   :  { %v7816_v29 = vpop.f32.mrb[44].mxu1 }
 0x264   :  { %9228 = vst [vmem:[#allocation7_spill] sm:$0xff] %v7816_v29  ;;  %v7818_v53 = vpop.f32.mrb[45].mxu1  ;;  %v2596_v29 = vcombine.low %v2591_v13, %v2595_v50 }
 0x265   :  { %9229 = vst [vmem:[#allocation8_spill] sm:$0xff] %v7818_v53  ;;  %v7820_v57 = vpop.f32.mrb[46].mxu1 }
 0x266   :  { %9230 = vst [vmem:[#allocation9_spill] sm:$0xff] %v7820_v57  ;;  %v7822_v16 = vpop.f32.mrb[47].mxu1  ;;  %v7839_v45 = vrot.slane %v2596_v29, %v6619_v26 }
 0x267   :  { %9231 = vst [vmem:[#allocation10_spill] sm:$0xff] %v7822_v16 }
 0x26b   :  { %v1747_v0 = vpop.f32.mrb[48].mxu1 }
 0x26c   :  { %v1866_v14 = vmax.f32 %v7650_v2, %v1747_v0  ;;  %v1749_v20 = vpop.f32.mrb[49].mxu1  ;;  %v2597_v0 = vcombine.high %v2591_v13, %v2595_v50 }
 0x26d   :  { %v1867_v56 = vmax.f32 %v7652_v32, %v1749_v20  ;;  %v1751_v24 = vpop.f32.mrb[50].mxu1 }
 0x26e   :  { %v1868_v43 = vmax.f32 %v7654_v31, %v1751_v24  ;;  %v1753_v16 = vpop.f32.mrb[51].mxu1 }
 0x26f   :  { %v1962_v57 = vcombine.low %v1866_v14, %v1867_v56  ;;  %v1963_v53 = vcombine.high %v1866_v14, %v1867_v56  ;;  %v1869_v39 = vmax.f32 %v7662_v54, %v1753_v16 }
 0x271   :  { %v2064_v46 = vrot.slane %v1962_v57, %v7832_v1  ;;  %v2071_v48 = vrot.slane %v1963_v53, %v7832_v1  ;;  %v1964_v2 = vcombine.low %v1868_v43, %v1869_v39  ;;  %v1965_v10 = vcombine.high %v1868_v43, %v1869_v39 }
 0x272   :  { %v7845_v53 = vrot.slane %v2597_v0, %v6619_v26  ;;  %v7851_v39 = vcombine.high %v7839_v45, %v7839_v45 }
 0x273   :  { %v2442_v32 = vrot.slane %v2064_v46, 4  ;;  %v2078_v20 = vrot.slane %v1964_v2, %v7832_v1  ;;  %v2085_v31 = vrot.slane %v1965_v10, %v7832_v1  ;;  %v1757_v24 = vpop.f32.mrb[52].mxu1  ;;  %v2443_v14 = vrot.slane %v2071_v48, 4 }
 0x274   :  { %v1870_v56 = vmax.f32 %v7682_v40, %v1757_v24  ;;  %v1759_v54 = vpop.f32.mrb[53].mxu1  ;;  %v7856_v0 = vcombine.high %v7845_v53, %v7845_v53 }
 0x275   :  { %v2444_v16 = vrot.slane %v2078_v20, 4  ;;  %v1761_v57 = vpop.f32.mrb[54].mxu1  ;;  %v2445_v21 = vrot.slane %v2085_v31, 4  ;;  %v1871_v43 = vmax.f32 %v7693_v5, %v1759_v54  ;;  %v2538_v50 = vmax.f32 %v2064_v46, %v2442_v32 }
 0x276   :  { %v1872_v29 = vmax.f32 %v7695_v15, %v1761_v57  ;;  %v1763_v13 = vpop.f32.mrb[55].mxu1  ;;  %v2539_v2 = vmax.f32 %v2071_v48, %v2443_v14 }
 0x277   :  { %v1966_v10 = vcombine.low %v1870_v56, %v1871_v43  ;;  %v1967_v40 = vcombine.high %v1870_v56, %v1871_v43  ;;  %v1873_v24 = vmax.f32 %v7697_v7, %v1763_v13  ;;  %v2540_v47 = vmax.f32 %v2078_v20, %v2444_v16 }
 0x278   :  { %v2541_v60 = vmax.f32 %v2085_v31, %v2445_v21  ;;  %v2618_v46 = vadd.f32 %v7839_v45, %v2538_v50  ;;  %v7860_v32 = vadd.f32 %v7851_v39, %v2539_v2 }
 0x279   :  { %v1968_v5 = vcombine.low %v1872_v29, %v1873_v24  ;;  %v1969_v54 = vcombine.high %v1872_v29, %v1873_v24  ;;  %v7865_v7 = vadd.f32 %v7845_v53, %v2540_v47  ;;  %v2092_v57 = vrot.slane %v1966_v10, %v7832_v1 }
 0x27a   :  { %v7870_v16 = vadd.f32 %v7856_v0, %v2541_v60 }
 0x27b   :  { %v1767_v15 = vpop.f32.mrb[56].mxu1  ;;  %v2106_v48 = vrot.slane %v1968_v5, %v7832_v1  ;;  %v2113_v14 = vrot.slane %v1969_v54, %v7832_v1  ;;  %v2666_v5 = vmax.f32 %v2618_v46, 0.0 }
 0x27c   :  { %v1769_v56 = vpop.f32.mrb[57].mxu1  ;;  %v1874_v21 = vmax.f32 %v7714_v22, %v1767_v15  ;;  %v2099_v22 = vrot.slane %v1967_v40, %v7832_v1  ;;  %v9174_v18 = vmax.f32 %v7870_v16, 0.0 }
 0x27d   :  { %v1875_v20 = vmax.f32 %v7716_v23, %v1769_v56  ;;  %v1771_v31 = vpop.f32.mrb[58].mxu1  ;;  %v2448_v43 = vrot.slane %v2106_v48, 4  ;;  %v2449_v29 = vrot.slane %v2113_v14, 4 }
 0x27e   :  { %v1773_v13 = vpop.f32.mrb[59].mxu1  ;;  %v1876_v24 = vmax.f32 %v7718_v61, %v1771_v31  ;;  %v2447_v19 = vrot.slane %v2099_v22, 4 }
 0x27f   :  { %v1970_v50 = vcombine.low %v1874_v21, %v1875_v20  ;;  %v1971_v2 = vcombine.high %v1874_v21, %v1875_v20  ;;  %v2544_v54 = vmax.f32 %v2106_v48, %v2448_v43  ;;  %v2545_v23 = vmax.f32 %v2113_v14, %v2449_v29 }
 0x280   :  { %v1877_v10 = vmax.f32 %v7726_v28, %v1773_v13  ;;  %v2446_v21 = vrot.slane %v2092_v57, 4  ;;  %v9233_v14 = vmax.f32 %v7860_v32, 0.0 }
 0x281   :  { %v2120_v15 = vrot.slane %v1970_v50, %v7832_v1  ;;  %v2127_v60 = vrot.slane %v1971_v2, %v7832_v1  ;;  %v2624_v29 = vadd.f32 %v7845_v53, %v2544_v54  ;;  %v7886_v28 = vadd.f32 %v7856_v0, %v2545_v23 }
 0x282   :  { %v1972_v46 = vcombine.low %v1876_v24, %v1877_v10  ;;  %v1973_v31 = vcombine.high %v1876_v24, %v1877_v10  ;;  %v2746_v43 = vcombine.low %v2666_v5, %v9233_v14  ;;  %v9235_v5 = vmax.f32 %v7865_v7, 0.0 }
 0x283   :  { %v2450_v20 = vrot.slane %v2120_v15, 4  ;;  %v2451_v61 = vrot.slane %v2127_v60, 4  ;;  %v1777_v47 = vpop.f32.mrb[60].mxu1  ;;  %9234 = vst [vmem:[#allocation12_spill] sm:$0xff] %v7886_v28  ;;  %v2542_v14 = vmax.f32 %v2092_v57, %v2446_v21 }
 0x284   :  { %v1878_v40 = vmax.f32 %v7746_v4, %v1777_v47  ;;  %v1779_v48 = vpop.f32.mrb[61].mxu1  ;;  %v2134_v56 = vrot.slane %v1972_v46, %v7832_v1  ;;  %v2141_v24 = vrot.slane %v1973_v31, %v7832_v1  ;;  %v2747_v54 = vcombine.low %v9235_v5, %v9174_v18 }
 0x285   :  { %v2546_v13 = vmax.f32 %v2120_v15, %v2450_v20  ;;  %v2547_v50 = vmax.f32 %v2127_v60, %v2451_v61  ;;  %v1781_v2 = vpop.f32.mrb[62].mxu1  ;;  %v1879_v10 = vmax.f32 %v7748_v17, %v1779_v48  ;;  %v2543_v60 = vmax.f32 %v2099_v22, %v2447_v19 }
 0x286   :  { %v1880_v4 = vmax.f32 %v7750_v38, %v1781_v2  ;;  %v1783_v47 = vpop.f32.mrb[63].mxu1  ;;  %v2672_v46 = vmax.f32 %v2624_v29, 0.0  ;;  %v9182_v38 = vmax.f32 %v7886_v28, 0.0  ;;  %v2452_v2 = vrot.slane %v2134_v56, 4 }
 0x287   :  { %v7897_v23 = vadd.f32 %v7839_v45, %v2546_v13  ;;  %v7900_v15 = vadd.f32 %v7851_v39, %v2547_v50  ;;  %v1974_v20 = vcombine.low %v1878_v40, %v1879_v10  ;;  %v1975_v61 = vcombine.high %v1878_v40, %v1879_v10 }
 0x288   :  { %v1881_v17 = vmax.f32 %v7752_v52, %v1783_v47  ;;  %v2453_v57 = vrot.slane %v2141_v24, 4  ;;  %v7907_v5 = vrot.slane %v2747_v54, %v6619_v26  ;;  %v2754_v40 = vrot.slane %v2746_v43, %v6619_v26 }
 0x289   :  { %9236 = vst [vmem:[#allocation13_spill] sm:$0xff] %v7897_v23  ;;  %9237 = vst [vmem:[#allocation14_spill] sm:$0xff] %v7900_v15  ;;  %v9177_v31 = vmax.f32 %v7897_v23, 0.0  ;;  %v9176_v48 = vmax.f32 %v7900_v15, 0.0  ;;  %v2148_v19 = vrot.slane %v1974_v20, %v7832_v1  ;;  %v2622_v52 = vadd.f32 %v7839_v45, %v2542_v14 }
 0x28a   :  { %v1976_v21 = vcombine.low %v1880_v4, %v1881_v17  ;;  %v1977_v13 = vcombine.high %v1880_v4, %v1881_v17  ;;  %9238 = vst [vmem:[#allocation15_spill] sm:$0xff] %v7907_v5  ;;  %v7919_v47 = vadd.f32 %v7851_v39, %v2543_v60  ;;  %v2155_v54 = vrot.slane %v1975_v61, %v7832_v1 }
 0x28b   :  { %v1787_v22 = vpop.f32.mrb[64].mxu1  ;;  %v2765_v29 = vcombine.low %v9177_v31, %v9176_v48  ;;  %v2764_v14 = vcombine.low %v2672_v46, %v9182_v38  ;;  %v2548_v17 = vmax.f32 %v2134_v56, %v2452_v2  ;;  %v2549_v18 = vmax.f32 %v2141_v24, %v2453_v57 }
 0x28c   :  { %v2162_v50 = vrot.slane %v1976_v21, %v7832_v1  ;;  %v2169_v10 = vrot.slane %v1977_v13, %v7832_v1  ;;  %v1789_v4 = vpop.f32.mrb[65].mxu1  ;;  %9239 = vst [vmem:[#allocation16_spill] sm:$0xff] %v7919_v47  ;;  %v1882_v20 = vmax.f32 %v7757_v35, %v1787_v22  ;;  %v2454_v21 = vrot.slane %v2148_v19, 4 }
 0x28d   :  { %v1791_v43 = vpop.f32.mrb[66].mxu1  ;;  %v1883_v13 = vmax.f32 %v7759_v62, %v1789_v4  ;;  %v7929_v61 = vrot.slane %v2765_v29, %v6619_v26  ;;  %v7932_v28 = vcombine.low %v2754_v40, %v7907_v5  ;;  %v2455_v56 = vrot.slane %v2155_v54, 4 }
 0x28e   :  { %v2456_v15 = vrot.slane %v2162_v50, 4  ;;  %v2457_v48 = vrot.slane %v2169_v10, 4  ;;  %v1793_v31 = vpop.f32.mrb[67].mxu1  ;;  %v1884_v23 = vmax.f32 %v7761_v30, %v1791_v43  ;;  %v7934_v57 = vmax.f32 %v2622_v52, 0.0 }
 0x28f   :  { %v1885_v60 = vmax.f32 %v7763_v63, %v1793_v31  ;;  %9240 = vst [vmem:[#allocation17_spill] sm:$0xff] %v7929_v61  ;;  %v1978_v24 = vcombine.low %v1882_v20, %v1883_v13  ;;  %v1979_v46 = vcombine.high %v1882_v20, %v1883_v13  ;;  %v2772_v63 = vrot.slane %v2764_v14, %v6619_v26 }
 0x290   :  { %v2552_v35 = vmax.f32 %v2162_v50, %v2456_v15  ;;  %v2553_v22 = vmax.f32 %v2169_v10, %v2457_v48  ;;  %v2628_v15 = vadd.f32 %v7845_v53, %v2548_v17  ;;  %v7945_v31 = vadd.f32 %v7856_v0, %v2549_v18 }
 0x291   :  { %v1980_v2 = vcombine.low %v1884_v23, %v1885_v60  ;;  %v2550_v48 = vmax.f32 %v2148_v19, %v2454_v21  ;;  %v1981_v29 = vcombine.high %v1884_v23, %v1885_v60  ;;  %v7951_v20 = vcombine.low %v2772_v63, %v7929_v61 }
 0x292   :  { %v7937_v62 = vadd.f32 %v7845_v53, %v2552_v35  ;;  %v7940_v30 = vadd.f32 %v7856_v0, %v2553_v22  ;;  %9242 = vst [vmem:[#allocation19_spill] sm:$0xff] %v7945_v31  ;;  %v2551_v13 = vmax.f32 %v2155_v54, %v2455_v56  ;;  %v2176_v14 = vrot.slane %v1978_v24, %v7832_v1 }
 0x293   :  { %v1797_v50 = vpop.f32.mrb[68].mxu1  ;;  %v2183_v17 = vrot.slane %v1979_v46, %v7832_v1  ;;  %v7956_v18 = vcombine.high %v2754_v40, %v7907_v5  ;;  %v3434_v54 = vpack.c.bf16 %v7951_v20, %v7932_v28  ;;  %v9185_v35 = vmax.f32 %v7919_v47, 0.0 }
 0x294   :  { %9241 = vst [vmem:[#allocation18_spill] sm:$0xff] %v7940_v30  ;;  %v9181_v10 = vmax.f32 %v7937_v62, 0.0  ;;  %v9180_v52 = vmax.f32 %v7940_v30, 0.0  ;;  %v1886_v4 = vmax.f32 %v7765_v59, %v1797_v50  ;;  %v1799_v43 = vpop.f32.mrb[69].mxu1  ;;  %v2781_v59 = vcombine.high %v2772_v63, %v7929_v61 }
 0x295   :  { %v1801_v23 = vpop.f32.mrb[70].mxu1  ;;  %v1887_v21 = vmax.f32 %v7767_v44, %v1799_v43  ;;  %v9186_v22 = vmax.f32 %v7945_v31, 0.0  ;;  %v7969_v40 = vadd.f32 %v7839_v45, %v2550_v48  ;;  %v2190_v56 = vrot.slane %v1980_v2, %v7832_v1 }
 0x296   :  { %v2783_v19 = vcombine.low %v9181_v10, %v9180_v52  ;;  %v1803_v60 = vpop.f32.mrb[71].mxu1  ;;  %v7972_v24 = vmax.f32 %v2628_v15, 0.0  ;;  %v3435_v46 = vpack.c.bf16 %v2781_v59, %v7956_v18  ;;  %v7976_v44 = vadd.f32 %v7851_v39, %v2551_v13 }
 0x297   :  { %v1982_v63 = vcombine.low %v1886_v4, %v1887_v21  ;;  %v1983_v50 = vcombine.high %v1886_v4, %v1887_v21  ;;  %v2458_v43 = vrot.slane %v2176_v14, 4  ;;  %v2459_v52 = vrot.slane %v2183_v17, 4 }
 0x298   :  { %v2197_v10 = vrot.slane %v1981_v29, %v7832_v1  ;;  %4466 = vmatprep.mubr.bf16.mxu1 %v3435_v46  ;;  %v1888_v2 = vmax.f32 %v7769_v27, %v1801_v23  ;;  %v1889_v15 = vmax.f32 %v7771_v36, %v1803_v60  ;;  %v7986_v4 = vrot.slane %v9185_v35, %v6619_v26 }
 0x299   :  { %v2204_v38 = vrot.slane %v1982_v63, %v7832_v1  ;;  %v2211_v48 = vrot.slane %v1983_v50, %v7832_v1  ;;  %v7991_v13 = vrot.slane %v9186_v22, %v6619_v26  ;;  %v2460_v21 = vrot.slane %v2190_v56, 4  ;;  %4467 = vmatmul.mubr.bf16.vlgmr.msra.gmra.mrb[96].mxu1 %v3434_v54 }
 0x29a   :  { %9243 = vst [vmem:[#allocation20_spill] sm:$0xff] %v7986_v4  ;;  %v1984_v27 = vcombine.low %v1888_v2, %v1889_v15  ;;  %v1985_v23 = vcombine.high %v1888_v2, %v1889_v15  ;;  %v2555_v5 = vmax.f32 %v2183_v17, %v2459_v52  ;;  %v2920_v35 = vrot.slane %v7934_v57, %v6619_v26 }
 0x29b   :  { %9244 = vst [vmem:[#allocation21_spill] sm:$0xff] %v7991_v13  ;;  %v1807_v46 = vpop.f32.mrb[72].mxu1  ;;  %v2462_v63 = vrot.slane %v2204_v38, 4  ;;  %v2463_v50 = vrot.slane %v2211_v48, 4  ;;  %v2928_v22 = vrot.slane %v7972_v24, %v6619_v26  ;;  %v7999_v47 = vmax.f32 %v2176_v14, %v2458_v43 }
 0x29c   :  { %v1809_v36 = vpop.f32.mrb[73].mxu1  ;;  %v2461_v29 = vrot.slane %v2197_v10, 4  ;;  %v2556_v13 = vmax.f32 %v2190_v56, %v2460_v21  ;;  %v2921_v30 = vcombine.high %v2920_v35, %v2920_v35  ;;  %v2987_v15 = vrot.slane %v2781_v59, 1 }
 0x29d   :  { %v1811_v61 = vpop.f32.mrb[74].mxu1  ;;  %v2558_v54 = vmax.f32 %v2204_v38, %v2462_v63  ;;  %v2559_v31 = vmax.f32 %v2211_v48, %v2463_v50  ;;  %v2929_v2 = vcombine.high %v2928_v22, %v2928_v22  ;;  %v8002_v60 = vrot.slane %v2783_v19, %v6619_v26 }
 0x29e   :  { %v1813_v4 = vpop.f32.mrb[75].mxu1  ;;  %v2218_v14 = vrot.slane %v1984_v27, %v7832_v1  ;;  %v8012_v43 = vadd.f32 %v7851_v39, %v2555_v5  ;;  %v2981_v38 = vrot.slane %v7956_v18, 1  ;;  %v2982_v56 = vrot.slane %v2921_v30, 1 }
 0x29f   :  { %9245 = vst [vmem:[#allocation22_spill] sm:$0xff] %v8002_v60  ;;  %v8005_v52 = vadd.f32 %v7839_v45, %v2558_v54  ;;  %v8008_v17 = vadd.f32 %v7851_v39, %v2559_v31  ;;  %v2988_v48 = vrot.slane %v2929_v2, 1  ;;  %v2557_v21 = vmax.f32 %v2197_v10, %v2461_v29 }
 0x2a0   :  { %9247 = vst [vmem:[#allocation24_spill] sm:$0xff] %v8012_v43  ;;  %v2979_v63 = vrot.slane %v2920_v35, 1  ;;  %v8018_v50 = vadd.f32 %v7845_v53, %v2556_v13  ;;  %v2983_v31 = vsel %vm660_vm7, %v2981_v38, %v2982_v56  ;;  %v2984_v5 = vrot.slane %v7951_v20, 1 }
 0x2a1   :  { %9246 = vst [vmem:[#allocation23_spill] sm:$0xff] %v8008_v17  ;;  %v9199_v59 = vmax.f32 %v8005_v52, 0.0  ;;  %v9197_v19 = vmax.f32 %v8008_v17, 0.0  ;;  %v2989_v27 = vsel %vm660_vm7, %v2987_v15, %v2988_v48  ;;  %v2464_v10 = vrot.slane %v2218_v14, 4 }
 0x2a2   :  { %v3437_v18 = vpack.c.bf16 %v2989_v27, %v2983_v31  ;;  %v2978_v35 = vrot.slane %v7932_v28, 1  ;;  %v2985_v13 = vrot.slane %v2928_v22, 1  ;;  %v1890_v2 = vmax.f32 %v7776_v58, %v1807_v46 }
 0x2a3   :  { %v1817_v54 = vpop.f32.mrb[76].mxu1  ;;  %v8027_v30 = vcombine.low %v9199_v59, %v9197_v19  ;;  %v1891_v38 = vmax.f32 %v7778_v33, %v1809_v36  ;;  %v1892_v15 = vmax.f32 %v7780_v3, %v1811_v61  ;;  %v8034_v56 = vadd.f32 %v7856_v0, %v2557_v21  ;;  %v6302_v3 = vld [vmem:[%s9162_s3 + $0x200] ss:$8 sps:$4 sm:$0xff]  }
 0x2a4   :  { %v1819_v29 = vpop.f32.mrb[77].mxu1  ;;  %v8037_v48 = vrot.slane %v1985_v23, %v7832_v1  ;;  %4539 = vmatprep.mubr.bf16.mxu0 %v3437_v18  ;;  %v2980_v31 = vsel %vm660_vm7, %v2978_v35, %v2979_v63  ;;  %v1893_v28 = vmax.f32 %v7782_v41, %v1813_v4  ;;  %v2986_v22 = vsel %vm660_vm7, %v2984_v5, %v2985_v13  ;;  %v6307_v63 = vld [vmem:[%s9162_s3 + $0x214] ss:$8 sps:$4 sm:$0xff]  }
 0x2a5   :  { %v1821_v20 = vpop.f32.mrb[78].mxu1  ;;  %v1986_v58 = vcombine.low %v1890_v2, %v1891_v38  ;;  %v1987_v46 = vcombine.high %v1890_v2, %v1891_v38  ;;  %v1894_v33 = vmax.f32 %v7784_v51, %v1817_v54  ;;  %v2560_v61 = vmax.f32 %v2218_v14, %v2464_v10 }
 0x2a6   :  { %v1823_v27 = vpop.f32.mrb[79].mxu1  ;;  %v3436_v36 = vpack.c.bf16 %v2986_v22, %v2980_v31  ;;  %v1988_v23 = vcombine.low %v1892_v15, %v1893_v28  ;;  %v1989_v21 = vcombine.high %v1892_v15, %v1893_v28  ;;  %v1895_v5 = vmax.f32 %v7786_v55, %v1819_v29  ;;  %v6305_v55 = vld [vmem:[%s9162_s3 + $0x210] ss:$8 sps:$4 sm:$0xff]  }
 0x2a7   :  { %v2232_v41 = vrot.slane %v1986_v58, %v7832_v1  ;;  %v2239_v4 = vrot.slane %v1987_v46, %v7832_v1  ;;  %v1896_v51 = vmax.f32 %v7788_v11, %v1821_v20  ;;  %v1897_v10 = vmax.f32 %v7790_v6, %v1823_v27 }
 0x2a8   :  { %4540 = vmatmul.mubr.bf16.vlgmr.msra.gmra.mrb[0].mxu0 %v3436_v36  ;;  %v2246_v54 = vrot.slane %v1988_v23, %v7832_v1  ;;  %v2253_v14 = vrot.slane %v1989_v21, %v7832_v1  ;;  %v9248_v18 = vmax.f32 %v7976_v44, 0.0  ;;  %v9249_v35 = vmax.f32 %v7969_v40, 0.0  ;;  %v6310_v40 = vld [vmem:[%s9162_s3 + $0x224] ss:$8 sps:$4 sm:$0xff]  }
 0x2a9   :  { %v2466_v2 = vrot.slane %v2232_v41, 4  ;;  %v2467_v38 = vrot.slane %v2239_v4, 4  ;;  %v1990_v15 = vcombine.low %v1894_v33, %v1895_v5  ;;  %v1991_v31 = vcombine.high %v1894_v33, %v1895_v5  ;;  %4581 = vmatpush1.bf16.msra.mxu0 %v6302_v3 }
 0x2aa   :  { %v2782_v13 = vcombine.low %v9249_v35, %v9248_v18  ;;  %v2468_v29 = vrot.slane %v2246_v54, 4  ;;  %v2469_v20 = vrot.slane %v2253_v14, 4  ;;  %v1992_v28 = vcombine.low %v1896_v51, %v1897_v10  ;;  %4582 = vmatprep.subr.bf16.mxu0 %v6307_v63 }
 0x2ab   :  { %v1827_v11 = vpop.f32.mrb[80].mxu1  ;;  %v1993_v22 = vcombine.high %v1896_v51, %v1897_v10  ;;  %v2634_v27 = vadd.f32 %v7839_v45, %v7999_v47  ;;  %v2562_v58 = vmax.f32 %v2232_v41, %v2466_v2  ;;  %v2563_v46 = vmax.f32 %v2239_v4, %v2467_v38  ;;  %v6308_v41 = vld [vmem:[%s9162_s3 + $0x220] ss:$8 sps:$4 sm:$0xff]  }
 0x2ac   :  { %v1829_v6 = vpop.f32.mrb[81].mxu1  ;;  %v2260_v33 = vrot.slane %v1990_v15, %v7832_v1  ;;  %v2564_v36 = vmax.f32 %v2246_v54, %v2468_v29  ;;  %v2565_v23 = vmax.f32 %v2253_v14, %v2469_v20  ;;  %v2267_v21 = vrot.slane %v1991_v31, %v7832_v1 }
 0x2ad   :  { %v1831_v3 = vpop.f32.mrb[82].mxu1  ;;  %v2274_v5 = vrot.slane %v1992_v28, %v7832_v1  ;;  %v9194_v51 = vmax.f32 %v8012_v43, 0.0  ;;  %v2684_v10 = vmax.f32 %v8018_v50, 0.0  ;;  %v2465_v18 = vrot.slane %v8037_v48, 4  ;;  %4583 = vmatpush1.bf16.msra.mxu0 %v6305_v55  ;;  %v6313_v50 = vld [vmem:[%s9162_s3 + $0x234] ss:$8 sps:$4 sm:$0xff]  }
 0x2ae   :  { %v1833_v63 = vpop.f32.mrb[83].mxu1  ;;  %v2281_v47 = vrot.slane %v1993_v22, %v7832_v1  ;;  %v9198_v4 = vmax.f32 %v8034_v56, 0.0  ;;  %v2640_v54 = vadd.f32 %v7845_v53, %v2560_v61  ;;  %v8081_v14 = vadd.f32 %v7845_v53, %v2564_v36  ;;  %4584 = vmatprep.subr.bf16.mxu0 %v6310_v40 }
 0x2af   :  { %v8084_v35 = vadd.f32 %v7856_v0, %v2565_v23  ;;  %v8089_v2 = vmax.f32 %v2634_v27, 0.0  ;;  %v8092_v38 = vadd.f32 %v7839_v45, %v2562_v58  ;;  %v8095_v15 = vadd.f32 %v7851_v39, %v2563_v46  ;;  %v6311_v58 = vld [vmem:[%s9162_s3 + $0x230] ss:$8 sps:$4 sm:$0xff]  }
 0x2b0   :  { %9250 = vst [vmem:[#allocation25_spill] sm:$0xff] %v8081_v14  ;;  %v2470_v61 = vrot.slane %v2260_v33, 4  ;;  %v9196_v31 = vmax.f32 %v8081_v14, 0.0  ;;  %v2471_v29 = vrot.slane %v2267_v21, 4  ;;  %v2472_v20 = vrot.slane %v2274_v5, 4 }
 0x2b1   :  { %9251 = vst [vmem:[#allocation26_spill] sm:$0xff] %v8084_v35  ;;  %v9195_v55 = vmax.f32 %v8084_v35, 0.0  ;;  %v8102_v28 = vrot.slane %v9194_v51, %v6619_v26  ;;  %v8105_v22 = vmax.f32 %v8037_v48, %v2465_v18  ;;  %v2473_v40 = vrot.slane %v2281_v47, 4  ;;  %4585 = vmatpush1.bf16.msra.mxu0 %v6308_v41  ;;  %v6316_v18 = vld [vmem:[%s9162_s3 + $0x244] ss:$8 sps:$4 sm:$0xff]  }
 0x2b2   :  { %v1898_v27 = vmax.f32 %v7792_v25, %v1827_v11  ;;  %v8113_v36 = vrot.slane %v8027_v30, %v6619_v26  ;;  %v8115_v23 = vmax.f32 %v2640_v54, 0.0  ;;  %v2800_v25 = vcombine.low %v2684_v10, %v9198_v4  ;;  %4586 = vmatprep.subr.bf16.mxu0 %v6313_v50 }
 0x2b3   :  { %9252 = vst [vmem:[#allocation27_spill] sm:$0xff] %v8102_v28  ;;  %v1837_v46 = vpop.f32.mrb[84].mxu1  ;;  %v8121_v48 = vcombine.low %v9196_v31, %v9195_v55  ;;  %v2790_v54 = vrot.slane %v2782_v13, %v6619_v26  ;;  %v1899_v51 = vmax.f32 %v7794_v37, %v1829_v6  ;;  %v2566_v31 = vmax.f32 %v2260_v33, %v2470_v61  ;;  %v6314_v37 = vld [vmem:[%s9162_s3 + $0x240] ss:$8 sps:$4 sm:$0xff]  }
 0x2b4   :  { %9253 = vst [vmem:[#allocation28_spill] sm:$0xff] %v8113_v36  ;;  %v8125_v11 = vpop.f32.mrb[85].mxu1  ;;  %v8136_v19 = vmax.f32 %v2267_v21, %v2471_v29  ;;  %v2568_v10 = vmax.f32 %v2274_v5, %v2472_v20  ;;  %v2808_v50 = vrot.slane %v2800_v25, %v6619_v26  ;;  %v8141_v59 = vmax.f32 %v2281_v47, %v2473_v40  ;;  %v6319_v5 = vld [vmem:[%s9162_s3 + $0x254] ss:$8 sps:$4 sm:$0xff]  }
 0x2b5   :  { %v8134_v55 = vpop.f32.mrb[86].mxu1  ;;  %v8144_v30 = vcombine.high %v2790_v54, %v8002_v60  ;;  %v1994_v41 = vcombine.low %v1898_v27, %v1899_v51  ;;  %v1995_v43 = vcombine.high %v1898_v27, %v1899_v51  ;;  %4587 = vmatpush1.bf16.msra.mxu0 %v6311_v58  ;;  %v2798_v6 = vcombine.low %v2790_v54, %v8002_v60 }
 0x2b6   :  { %v8139_v4 = vpop.f32.mrb[87].mxu1  ;;  %v2817_v13 = vcombine.high %v2808_v50, %v8113_v36  ;;  %v2816_v33 = vcombine.low %v2808_v50, %v8113_v36  ;;  %v1900_v21 = vmax.f32 %v7796_v12, %v1831_v3  ;;  %4588 = vmatprep.subr.bf16.mxu0 %v6316_v18  ;;  %v1901_v61 = vmax.f32 %v7798_v34, %v1833_v63  ;;  %v6317_v34 = vld [vmem:[%s9162_s3 + $0x250] ss:$8 sps:$4 sm:$0xff]   ;;  %v6322_v50 = vld [vmem:[%s9162_s3 + $0x264] ss:$8 sps:$4 sm:$0xff]  }
 0x2b7   :  { %v2288_v51 = vrot.slane %v1994_v41, %v7832_v1  ;;  %v2295_v47 = vrot.slane %v1995_v43, %v7832_v1  ;;  %v2936_v29 = vrot.slane %v8089_v2, %v6619_v26  ;;  %v2646_v20 = vadd.f32 %v7839_v45, %v2566_v31 }
 0x2b8   :  { %v8163_v40 = vadd.f32 %v7845_v53, %v2568_v10  ;;  %v3445_v12 = vpack.c.bf16 %v2817_v13, %v8144_v30  ;;  %v2996_v3 = vrot.slane %v2816_v33, 1  ;;  %v3444_v25 = vpack.c.bf16 %v2816_v33, %v2798_v6 }
 0x2b9   :  { %v2474_v27 = vrot.slane %v2288_v51, 4  ;;  %v2475_v58 = vrot.slane %v2295_v47, 4  ;;  %v1996_v18 = vcombine.low %v1900_v21, %v1901_v61  ;;  %4589 = vmatpush1.bf16.msra.mxu0 %v6314_v37  ;;  %v1997_v63 = vcombine.high %v1900_v21, %v1901_v61 }
 0x2ba   :  { %4476 = vmatprep.mubr.bf16.mxu1 %v3445_v12  ;;  %v2937_v41 = vcombine.high %v2936_v29, %v2936_v29  ;;  %v2944_v31 = vrot.slane %v8115_v23, %v6619_v26  ;;  %v2991_v54 = vrot.slane %v2936_v29, 1  ;;  %4590 = vmatprep.subr.bf16.mxu0 %v6319_v5  ;;  %v1902_v36 = vmax.f32 %v7800_v42, %v1837_v46  ;;  %v6320_v42 = vld [vmem:[%s9162_s3 + $0x260] ss:$8 sps:$4 sm:$0xff]  }
 0x2bb   :  { %v1847_v43 = vpop.f32.mrb[88].mxu1  ;;  %v2570_v33 = vmax.f32 %v2288_v51, %v2474_v27  ;;  %v2571_v37 = vmax.f32 %v2295_v47, %v2475_v58  ;;  %4477 = vmatmul.mubr.bf16.gmra.mrb[100].mxu1 %v3444_v25  ;;  %v2302_v60 = vrot.slane %v1996_v18, %v7832_v1  ;;  %v2999_v21 = vrot.slane %v2817_v13, 1  ;;  %v6325_v47 = vld [vmem:[%s9162_s3 + $0x274] ss:$8 sps:$4 sm:$0xff]  }
 0x2bc   :  { %v1849_v10 = vpop.f32.mrb[89].mxu1  ;;  %v2990_v61 = vrot.slane %v2798_v6, 1  ;;  %v2945_v28 = vcombine.high %v2944_v31, %v2944_v31  ;;  %v2994_v35 = vrot.slane %v2937_v41, 1  ;;  %v2993_v5 = vrot.slane %v8144_v30, 1 }
 0x2bd   :  { %v1851_v12 = vpop.f32.mrb[90].mxu1  ;;  %v8178_v29 = vadd.f32 %v7839_v45, %v2570_v33  ;;  %v8181_v17 = vadd.f32 %v7851_v39, %v2571_v37  ;;  %v2997_v51 = vrot.slane %v2944_v31, 1  ;;  %4591 = vmatpush1.bf16.msra.mxu0 %v6317_v34  ;;  %v2309_v46 = vrot.slane %v1997_v63, %v7832_v1 }
 0x2be   :  { %v1853_v14 = vpop.f32.mrb[91].mxu1  ;;  %v3000_v13 = vrot.slane %v2945_v28, 1  ;;  %v2992_v6 = vsel %vm660_vm7, %v2990_v61, %v2991_v54  ;;  %v1903_v30 = vmax.f32 %v7802_v49, %v8125_v11  ;;  %4592 = vmatprep.subr.bf16.mxu0 %v6322_v50  ;;  %v2476_v25 = vrot.slane %v2302_v60, 4 }
 0x2bf   :  { %v9213_v27 = vmax.f32 %v8178_v29, 0.0  ;;  %v9211_v58 = vmax.f32 %v8181_v17, 0.0  ;;  %v2998_v18 = vsel %vm660_vm7, %v2996_v3, %v2997_v51  ;;  %v2995_v34 = vsel %vm660_vm7, %v2993_v5, %v2994_v35  ;;  %v6323_v35 = vld [vmem:[%s9162_s3 + $0x270] ss:$8 sps:$4 sm:$0xff]   ;;  %v9254_v51 = vld [vmem:[#allocation3_spill] sm:$0xff] }
 0x2c0   :  { %v3001_v28 = vsel %vm660_vm7, %v2999_v21, %v3000_v13  ;;  %v3446_v63 = vpack.c.bf16 %v2998_v18, %v2992_v6  ;;  %v1998_v41 = vcombine.low %v1902_v36, %v1903_v30  ;;  %v8200_v49 = vadd.f32 %v7856_v0, %v8141_v59 }
 0x2c1   :  { %v2837_v11 = vcombine.low %v9213_v27, %v9211_v58  ;;  %v3447_v31 = vpack.c.bf16 %v3001_v28, %v2995_v34  ;;  %v1999_v54 = vcombine.high %v1902_v36, %v1903_v30  ;;  %4593 = vmatpush1.bf16.msra.mxu0 %v6320_v42  ;;  %v8209_v50 = vmax.f32 %v2646_v20, 0.0  ;;  %v6328_v36 = vld [vmem:[%s9162_s3 + $0x284] ss:$8 sps:$4 sm:$0xff]  }
 0x2c2   :  { %v2316_v33 = vrot.slane %v1998_v41, %v7832_v1  ;;  %v1904_v59 = vmax.f32 %v7804_v8, %v8134_v55  ;;  %v1905_v37 = vmax.f32 %v7806_v9, %v8139_v4  ;;  %4594 = vmatprep.subr.bf16.mxu0 %v6325_v47  ;;  %v8223_v61 = vrot.slane %v8121_v48, %v6619_v26  ;;  %v9255_v47 = vld [vmem:[#allocation4_spill] sm:$0xff]  ;;  %v9256_v48 = vld [vmem:[#allocation5_spill] sm:$0xff]  ;;  %v9257_v28 = vld [vmem:[#allocation6_spill] sm:$0xff] }
 0x2c3   :  { %v1857_v3 = vpop.f32.mrb[92].mxu1  ;;  %v2477_v20 = vrot.slane %v2309_v46, 4  ;;  %4549 = vmatprep.mubr.bf16.mxu0 %v3447_v31  ;;  %v2323_v5 = vrot.slane %v1999_v54, %v7832_v1  ;;  %v1906_v8 = vmax.f32 %v9254_v51, %v1847_v43  ;;  %v2572_v9 = vmax.f32 %v2302_v60, %v2476_v25  ;;  %v6326_v43 = vld [vmem:[%s9162_s3 + $0x280] ss:$8 sps:$4 sm:$0xff]  }
 0x2c4   :  { %v8216_v21 = vpop.f32.mrb[93].mxu1  ;;  %4550 = vmatmul.mubr.bf16.gmra.mrb[4].mxu0 %v3446_v63  ;;  %v2478_v4 = vrot.slane %v2316_v33, 4  ;;  %v2000_v42 = vcombine.low %v1904_v59, %v1905_v37  ;;  %v2001_v13 = vcombine.high %v1904_v59, %v1905_v37  ;;  %v1907_v18 = vmax.f32 %v9255_v47, %v1849_v10  ;;  %v6331_v10 = vld [vmem:[%s9162_s3 + $0x294] ss:$8 sps:$4 sm:$0xff]   ;;  %v9263_v27 = vld [vmem:[#allocation10_spill] sm:$0xff] }
 0x2c5   :  { %v8227_v55 = vpop.f32.mrb[94].mxu1  ;;  %v2479_v30 = vrot.slane %v2323_v5, 4  ;;  %v1908_v34 = vmax.f32 %v9256_v48, %v1851_v12  ;;  %v1909_v41 = vmax.f32 %v9257_v28, %v1853_v14  ;;  %4595 = vmatpush1.bf16.msra.mxu0 %v6323_v35  ;;  %v2696_v60 = vmax.f32 %v8163_v40, 0.0 }
 0x2c6   :  { %v8229_v6 = vpop.f32.mrb[95].mxu1  ;;  %v2574_v25 = vmax.f32 %v2316_v33, %v2478_v4  ;;  %v2330_v63 = vrot.slane %v2000_v42, %v7832_v1  ;;  %v2337_v31 = vrot.slane %v2001_v13, %v7832_v1  ;;  %4596 = vmatprep.subr.bf16.mxu0 %v6328_v36  ;;  %v2002_v54 = vcombine.low %v1906_v8, %v1907_v18 }
 0x2c7   :  { %v2575_v12 = vmax.f32 %v2323_v5, %v2479_v30  ;;  %v2003_v14 = vcombine.high %v1906_v8, %v1907_v18  ;;  %v2004_v35 = vcombine.low %v1908_v34, %v1909_v41  ;;  %v9212_v59 = vmax.f32 %v8200_v49, 0.0  ;;  %v6329_v5 = vld [vmem:[%s9162_s3 + $0x290] ss:$8 sps:$4 sm:$0xff]  }
 0x2c8   :  { %v2480_v37 = vrot.slane %v2330_v63, 4  ;;  %v2481_v51 = vrot.slane %v2337_v31, 4  ;;  %v2005_v47 = vcombine.high %v1908_v34, %v1909_v41  ;;  %v8244_v40 = vmax.f32 %v2309_v46, %v2477_v20  ;;  %v6334_v46 = vld [vmem:[%s9162_s3 + $0x2a4] ss:$8 sps:$4 sm:$0xff]  }
 0x2c9   :  { %v2652_v33 = vadd.f32 %v7845_v53, %v2572_v9  ;;  %v2344_v4 = vrot.slane %v2002_v54, %v7832_v1  ;;  %v2358_v36 = vrot.slane %v2004_v35, %v7832_v1  ;;  %4597 = vmatpush1.bf16.msra.mxu0 %v6326_v43  ;;  %v8253_v8 = vrot.slane %v2837_v11, %v6619_v26  ;;  %v9258_v41 = vld [vmem:[#allocation7_spill] sm:$0xff] }
 0x2ca   :  { %v2576_v42 = vmax.f32 %v2330_v63, %v2480_v37  ;;  %v2577_v13 = vmax.f32 %v2337_v31, %v2481_v51  ;;  %v2365_v30 = vrot.slane %v2005_v47, %v7832_v1  ;;  %4598 = vmatprep.subr.bf16.mxu0 %v6331_v10  ;;  %v8260_v20 = vadd.f32 %v7839_v45, %v2574_v25  ;;  %v6332_v35 = vld [vmem:[%s9162_s3 + $0x2a0] ss:$8 sps:$4 sm:$0xff]   ;;  %v6337_v47 = vld [vmem:[%s9162_s3 + $0x2b4] ss:$8 sps:$4 sm:$0xff]  }
 0x2cb   :  { %v8263_v9 = vadd.f32 %v7851_v39, %v2575_v12  ;;  %v2482_v18 = vrot.slane %v2344_v4, 4  ;;  %v2484_v48 = vrot.slane %v2358_v36, 4  ;;  %v1910_v43 = vmax.f32 %v9258_v41, %v1857_v3 }
 0x2cc   :  { %v8266_v11 = vadd.f32 %v7845_v53, %v2576_v42  ;;  %v8269_v34 = vadd.f32 %v7856_v0, %v2577_v13  ;;  %v2485_v28 = vrot.slane %v2365_v30, 4  ;;  %v8273_v63 = vrot.slane %v2003_v14, %v7832_v1 }
 0x2cd   :  { %v2578_v31 = vmax.f32 %v2344_v4, %v2482_v18  ;;  %v2580_v25 = vmax.f32 %v2358_v36, %v2484_v48  ;;  %v9259_v10 = vmax.f32 %v8095_v15, 0.0  ;;  %v9260_v12 = vmax.f32 %v8092_v38, 0.0  ;;  %4599 = vmatpush1.bf16.msra.mxu0 %v6329_v5 }
 0x2ce   :  { %v9210_v37 = vmax.f32 %v8266_v11, 0.0  ;;  %v9209_v51 = vmax.f32 %v8269_v34, 0.0  ;;  %v2581_v3 = vmax.f32 %v2365_v30, %v2485_v28  ;;  %v2836_v14 = vcombine.low %v2696_v60, %v9212_v59  ;;  %4600 = vmatprep.subr.bf16.mxu0 %v6334_v46  ;;  %v6335_v28 = vld [vmem:[%s9162_s3 + $0x2b0] ss:$8 sps:$4 sm:$0xff]  }
 0x2cf   :  { %v2818_v54 = vcombine.low %v9260_v12, %v9259_v10  ;;  %v8289_v38 = vmax.f32 %v2652_v33, 0.0  ;;  %v2702_v4 = vmax.f32 %v8260_v20, 0.0  ;;  %v8293_v36 = vadd.f32 %v7845_v53, %v2580_v25  ;;  %v9261_v33 = vld [vmem:[#allocation8_spill] sm:$0xff] }
 0x2d0   :  { %v2855_v42 = vcombine.low %v9210_v37, %v9209_v51  ;;  %v8301_v60 = vadd.f32 %v7856_v0, %v2581_v3  ;;  %v2844_v13 = vrot.slane %v2836_v14, %v6619_v26  ;;  %v1911_v30 = vmax.f32 %v9261_v33, %v8216_v21 }
 0x2d1   :  { %v2826_v5 = vrot.slane %v2818_v54, %v6619_v26  ;;  %v9217_v46 = vmax.f32 %v8263_v9, 0.0  ;;  %v2658_v18 = vadd.f32 %v7839_v45, %v2578_v31  ;;  %4601 = vmatpush1.bf16.msra.mxu0 %v6332_v35  ;;  %v6340_v31 = vld [vmem:[%s9162_s3 + $0x2c4] ss:$8 sps:$4 sm:$0xff]   ;;  %v1913_v20 = vmax.f32 %v9263_v27, %v8229_v6 }
 0x2d2   :  { %v8314_v41 = vrot.slane %v2855_v42, %v6619_v26  ;;  %v2853_v21 = vcombine.high %v2844_v13, %v8253_v8  ;;  %v2006_v10 = vcombine.low %v1910_v43, %v1911_v30  ;;  %4602 = vmatprep.subr.bf16.mxu0 %v6337_v47  ;;  %v9215_v12 = vmax.f32 %v8301_v60, 0.0  ;;  %v9262_v47 = vld [vmem:[#allocation9_spill] sm:$0xff] }
 0x2d3   :  { %v2835_v48 = vcombine.high %v2826_v5, %v8223_v61  ;;  %v2007_v35 = vcombine.high %v1910_v43, %v1911_v30  ;;  %v2834_v3 = vcombine.low %v2826_v5, %v8223_v61  ;;  %v2852_v51 = vcombine.low %v2844_v13, %v8253_v8  ;;  %v6338_v43 = vld [vmem:[%s9162_s3 + $0x2c0] ss:$8 sps:$4 sm:$0xff]  }
 0x2d4   :  { %v3011_v14 = vrot.slane %v2853_v21, 1  ;;  %v2372_v42 = vrot.slane %v2006_v10, %v7832_v1  ;;  %v1912_v59 = vmax.f32 %v9262_v47, %v8227_v55  ;;  %v2952_v13 = vrot.slane %v8209_v50, %v6619_v26  ;;  %v6343_v55 = vld [vmem:[%s9162_s3 + $0x2d4] ss:$8 sps:$4 sm:$0xff]  }
 0x2d5   :  { %v3005_v54 = vrot.slane %v2835_v48, 1  ;;  %v3455_v33 = vpack.c.bf16 %v2853_v21, %v2835_v48  ;;  %v2379_v37 = vrot.slane %v2007_v35, %v7832_v1  ;;  %v3002_v58 = vrot.slane %v2834_v3, 1  ;;  %4603 = vmatpush1.bf16.msra.mxu0 %v6335_v28 }
 0x2d6   :  { %v2486_v5 = vrot.slane %v2372_v42, 4  ;;  %v3008_v30 = vrot.slane %v2852_v51, 1  ;;  %v3454_v48 = vpack.c.bf16 %v2852_v51, %v2834_v3  ;;  %4604 = vmatprep.subr.bf16.mxu0 %v6340_v31  ;;  %v2008_v10 = vcombine.low %v1912_v59, %v1913_v20 }
 0x2d7   :  { %4486 = vmatprep.mubr.bf16.mxu1 %v3455_v33  ;;  %v2487_v21 = vrot.slane %v2379_v37, 4  ;;  %v2009_v27 = vcombine.high %v1912_v59, %v1913_v20  ;;  %v2960_v6 = vrot.slane %v8289_v38, %v6619_v26  ;;  %v2953_v35 = vcombine.high %v2952_v13, %v2952_v13  ;;  %v6341_v59 = vld [vmem:[%s9162_s3 + $0x2d0] ss:$8 sps:$4 sm:$0xff]  }
 0x2d8   :  { %v2582_v28 = vmax.f32 %v2372_v42, %v2486_v5  ;;  %4487 = vmatmul.mubr.bf16.gmra.mrb[104].mxu1 %v3454_v48  ;;  %v3003_v33 = vrot.slane %v2952_v13, 1  ;;  %v2854_v51 = vcombine.low %v2702_v4, %v9217_v46  ;;  %v2386_v31 = vrot.slane %v2008_v10, %v7832_v1 }
 0x2d9   :  { %v2583_v3 = vmax.f32 %v2379_v37, %v2487_v21  ;;  %v2393_v47 = vrot.slane %v2009_v27, %v7832_v1  ;;  %v2961_v25 = vcombine.high %v2960_v6, %v2960_v6  ;;  %4605 = vmatpush1.bf16.msra.mxu0 %v6338_v43  ;;  %v3006_v42 = vrot.slane %v2953_v35, 1  ;;  %v6346_v37 = vld [vmem:[%s9162_s3 + $0x2e4] ss:$8 sps:$4 sm:$0xff]  }
 0x2da   :  { %v8348_v20 = vadd.f32 %v7839_v45, %v2582_v28  ;;  %v3004_v5 = vsel %vm660_vm7, %v3002_v58, %v3003_v33  ;;  %v3009_v48 = vrot.slane %v2960_v6, 1  ;;  %4606 = vmatprep.subr.bf16.mxu0 %v6343_v55  ;;  %v8354_v4 = vmax.f32 %v2658_v18, 0.0 }
 0x2db   :  { %v8357_v43 = vadd.f32 %v7851_v39, %v2583_v3  ;;  %v2488_v13 = vrot.slane %v2386_v31, 4  ;;  %v3012_v21 = vrot.slane %v2961_v25, 1  ;;  %v3007_v45 = vsel %vm660_vm7, %v3005_v54, %v3006_v42 }
 0x2dc   :  { %v9216_v10 = vmax.f32 %v8348_v20, 0.0  ;;  %v3010_v27 = vsel %vm660_vm7, %v3008_v30, %v3009_v48  ;;  %v2862_v58 = vrot.slane %v2854_v51, %v6619_v26  ;;  %v2489_v6 = vrot.slane %v2393_v47, 4  ;;  %v6344_v30 = vld [vmem:[%s9162_s3 + $0x2e0] ss:$8 sps:$4 sm:$0xff]  }
 0x2dd   :  { %v9214_v55 = vmax.f32 %v8357_v43, 0.0  ;;  %v2584_v28 = vmax.f32 %v2386_v31, %v2488_v13  ;;  %v3013_v18 = vsel %vm660_vm7, %v3011_v14, %v3012_v21  ;;  %4607 = vmatpush1.bf16.msra.mxu0 %v6341_v59  ;;  %v3456_v33 = vpack.c.bf16 %v3010_v27, %v3004_v5 }
 0x2de   :  { %v3457_v35 = vpack.c.bf16 %v3013_v18, %v3007_v45  ;;  %v2871_v3 = vcombine.high %v2862_v58, %v8314_v41  ;;  %v9264_v25 = vmax.f32 %v8293_v36, 0.0  ;;  %4608 = vmatprep.subr.bf16.mxu0 %v6346_v37  ;;  %v8375_v51 = vadd.f32 %v7856_v0, %v8105_v22  ;;  %v6349_v36 = vld [vmem:[%s9162_s3 + $0x2f4] ss:$8 sps:$4 sm:$0xff]  }
 0x2df   :  { %v2873_v14 = vcombine.low %v9216_v10, %v9214_v55  ;;  %v2664_v31 = vadd.f32 %v7845_v53, %v2584_v28  ;;  %v2870_v59 = vcombine.low %v2862_v58, %v8314_v41  ;;  %v8388_v42 = vadd.f32 %v7851_v39, %v8136_v19  ;;  %v6347_v28 = vld [vmem:[%s9162_s3 + $0x2f0] ss:$8 sps:$4 sm:$0xff]  }
 0x2e0   :  { %v2872_v54 = vcombine.low %v9264_v25, %v9215_v12  ;;  %v8392_v22 = vadd.f32 %v7856_v0, %v8244_v40  ;;  %v9265_v5 = vrot.slane %v8273_v63, 4  ;;  %4559 = vmatprep.mubr.bf16.mxu0 %v3457_v35  ;;  %v2968_v53 = vrot.slane %v8354_v4, %v6619_v26 }
 0x2e1   :  { %v8400_v37 = vrot.slane %v2873_v14, %v6619_v26  ;;  %v2585_v13 = vmax.f32 %v2393_v47, %v2489_v6  ;;  %v8402_v21 = vmax.f32 %v2664_v31, 0.0  ;;  %4560 = vmatmul.mubr.bf16.gmra.mrb[8].mxu0 %v3456_v33  ;;  %v3014_v45 = vrot.slane %v2870_v59, 1  ;;  %v6352_v33 = vld [vmem:[%s9162_s3 + $0x304] ss:$8 sps:$4 sm:$0xff]  }
 0x2e2   :  { %v2579_v48 = vmax.f32 %v8273_v63, %v9265_v5  ;;  %v2880_v19 = vrot.slane %v2872_v54, %v6619_v26  ;;  %v2969_v40 = vcombine.high %v2968_v53, %v2968_v53  ;;  %v3015_v27 = vrot.slane %v2968_v53, 1  ;;  %4609 = vmatpush1.bf16.msra.mxu0 %v6344_v30 }
 0x2e3   :  { %v9266_v63 = vmax.f32 %v7870_v16, 0.0  ;;  %v3017_v47 = vrot.slane %v2871_v3, 1  ;;  %v2976_v35 = vrot.slane %v8402_v21, %v6619_v26  ;;  %4610 = vmatprep.subr.bf16.mxu0 %v6349_v36  ;;  %v9267_v54 = vmax.f32 %v7865_v7, 0.0  ;;  %v9271_v36 = vld [vmem:[#allocation12_spill] sm:$0xff] }
 0x2e4   :  { %v2889_v18 = vcombine.high %v2880_v19, %v8400_v37  ;;  %v2888_v6 = vcombine.low %v2880_v19, %v8400_v37  ;;  %v3018_v25 = vrot.slane %v2969_v40, 1  ;;  %v3016_v16 = vsel %vm660_vm7, %v3014_v45, %v3015_v27 }
 0x2e5   :  { %v3043_v58 = vcombine.low %v9266_v63, %v7934_v57  ;;  %v9268_v30 = vmax.f32 %v7860_v32, 0.0  ;;  %v9269_v63 = vld [vmem:[#allocation13_spill] sm:$0xff]  ;;  %v9272_v12 = vmax.f32 %v9271_v36, 0.0  ;;  %v2977_v1 = vcombine.high %v2976_v35, %v2976_v35 }
 0x2e6   :  { %v3465_v5 = vpack.c.bf16 %v2889_v18, %v2871_v3  ;;  %v3020_v53 = vrot.slane %v2888_v6, 1  ;;  %v3464_v19 = vpack.c.bf16 %v2888_v6, %v2870_v59  ;;  %v9270_v55 = vmax.f32 %v9269_v63, 0.0  ;;  %4611 = vmatpush1.bf16.msra.mxu0 %v6347_v28  ;;  %v9273_v59 = vld [vmem:[#allocation14_spill] sm:$0xff]  ;;  %v9283_v36 = vld [vmem:[#allocation25_spill] sm:$0xff] }
 0x2e7   :  { %v3042_v14 = vcombine.low %v9268_v30, %v9267_v54  ;;  %v3057_v31 = vrot.slane %v3043_v58, %v6619_v26  ;;  %v3023_v46 = vrot.slane %v2889_v18, 1  ;;  %v3019_v40 = vsel %vm660_vm7, %v3017_v47, %v3018_v25  ;;  %4653 = vmatprep.subr.bf16.mxu0 %v6352_v33  ;;  %v9277_v6 = vld [vmem:[#allocation18_spill] sm:$0xff] }
 0x2e8   :  { %v3060_v10 = vcombine.low %v9272_v12, %v9270_v55  ;;  %v3021_v45 = vrot.slane %v2976_v35, 1  ;;  %v9220_v7 = vmax.f32 %v8375_v51, 0.0  ;;  %v8431_v32 = vadd.f32 %v7851_v39, %v2579_v48  ;;  %4496 = vmatprep.mubr.bf16.mxu1 %v3465_v5 }
 0x2e9   :  { %v8434_v3 = vadd.f32 %v7856_v0, %v2585_v13  ;;  %v9274_v27 = vmax.f32 %v9273_v59, 0.0  ;;  %4497 = vmatmul.mubr.bf16.gmra.mrb[108].mxu1 %v3464_v19  ;;  %v3024_v12 = vrot.slane %v2977_v1, 1  ;;  %v3050_v28 = vrot.slane %v3042_v14, %v6619_v26  ;;  %v9286_v59 = vld [vmem:[#allocation26_spill] sm:$0xff] }
 0x2ea   :  { %v3022_v55 = vsel %vm660_vm7, %v3020_v53, %v3021_v45  ;;  %v9275_v18 = vmax.f32 %v7937_v62, 0.0  ;;  %v9276_v39 = vmax.f32 %v7976_v44, 0.0  ;;  %v3068_v0 = vrot.slane %v3060_v10, %v6619_v26  ;;  %v9281_v44 = vld [vmem:[#allocation23_spill] sm:$0xff] }
 0x2eb   :  { %v3061_v58 = vcombine.low %v9274_v27, %v7972_v24  ;;  %v3466_v47 = vpack.c.bf16 %v3022_v55, %v3016_v16  ;;  %v9278_v35 = vmax.f32 %v9277_v6, 0.0  ;;  %v3025_v1 = vsel %vm660_vm7, %v3023_v46, %v3024_v12 }
 0x2ec   :  { %v3078_v48 = vcombine.low %v9276_v39, %v9275_v18  ;;  %v8451_v25 = vcombine.high %v3050_v28, %v3057_v31  ;;  %v9279_v54 = vmax.f32 %v8005_v52, 0.0  ;;  %v9280_v62 = vmax.f32 %v8034_v56, 0.0 }
 0x2ed   :  { %v3075_v13 = vrot.slane %v3061_v58, %v6619_v26  ;;  %v3079_v33 = vcombine.low %v9278_v35, %v8089_v2  ;;  %v9282_v16 = vmax.f32 %v9281_v44, 0.0  ;;  %v3467_v10 = vpack.c.bf16 %v3025_v1, %v3019_v40 }
 0x2ee   :  { %v3096_v30 = vcombine.low %v9280_v62, %v9279_v54  ;;  %v3086_v53 = vrot.slane %v3078_v48, %v6619_v26  ;;  %v9284_v52 = vmax.f32 %v9283_v36, 0.0  ;;  %v9285_v56 = vmax.f32 %v8095_v15, 0.0 }
 0x2ef   :  { %v3097_v14 = vcombine.low %v9282_v16, %v8115_v23  ;;  %v8460_v5 = vcombine.high %v3068_v0, %v3075_v13  ;;  %v3093_v19 = vrot.slane %v3079_v33, %v6619_v26  ;;  %v9287_v27 = vmax.f32 %v9286_v59, 0.0  ;;  %4569 = vmatprep.mubr.bf16.mxu0 %v3467_v10 }
 0x2f0   :  { %v3104_v46 = vrot.slane %v3096_v30, %v6619_v26  ;;  %v3114_v45 = vcombine.low %v9285_v56, %v9284_v52  ;;  %v8476_v40 = vrot.slane %v9220_v7, %v6619_v26  ;;  %v2695_v12 = vmax.f32 %v8388_v42, 0.0  ;;  %4570 = vmatmul.mubr.bf16.gmra.mrb[12].mxu0 %v3466_v47 }
 0x2f1   :  { %v3111_v63 = vrot.slane %v3097_v14, %v6619_v26  ;;  %v3115_v58 = vcombine.low %v9287_v27, %v8209_v50  ;;  %v2701_v55 = vmax.f32 %v8392_v22, 0.0  ;;  %v3439_v18 = vpack.c.bf16 %v8460_v5, %v8451_v25 }
 0x2f2   :  { %v8482_v15 = vcombine.high %v3086_v53, %v3093_v19  ;;  %v8486_v48 = vcombine.low %v3086_v53, %v3093_v19  ;;  %v3122_v35 = vrot.slane %v3114_v45, %v6619_v26  ;;  %v9288_v1 = vmax.f32 %v8178_v29, 0.0 }
 0x2f3   :  { %v8484_v39 = vcombine.high %v3104_v46, %v3111_v63  ;;  %v8488_v6 = vcombine.low %v3104_v46, %v3111_v63  ;;  %4612 = vmatprep.mubr.bf16.mxu0 %v3439_v18  ;;  %v3129_v33 = vrot.slane %v3115_v58, %v6619_v26  ;;  %v9289_v54 = vmax.f32 %v8200_v49, 0.0  ;;  %v6355_v18 = vld [vmem:[%s9162_s3 + $0x314] ss:$8 sps:$4 sm:$0xff]  }
 0x2f4   :  { %v9290_v47 = vmax.f32 %v8181_v17, 0.0  ;;  %v2707_v44 = vmax.f32 %v8431_v32, 0.0  ;;  %v9221_v16 = vmax.f32 %v8434_v3, 0.0  ;;  %v8501_v14 = vcombine.low %v3068_v0, %v3075_v13 }
 0x2f5   :  { %v3132_v62 = vcombine.low %v9289_v54, %v9288_v1  ;;  %v3449_v10 = vpack.c.bf16 %v8484_v39, %v8482_v15  ;;  %v8505_v53 = vcombine.low %v3050_v28, %v3057_v31  ;;  %v3448_v29 = vpack.c.bf16 %v8488_v6, %v8486_v48 }
 0x2f6   :  { %v3133_v30 = vcombine.low %v9290_v47, %v8289_v38  ;;  %v8509_v49 = vcombine.high %v3122_v35, %v3129_v33  ;;  %v8513_v46 = vcombine.low %v3122_v35, %v3129_v33  ;;  %v9291_v63 = vmax.f32 %v8266_v11, 0.0  ;;  %v6350_v11 = vld [vmem:[%s9162_s3 + $0x300] ss:$8 sps:$4 sm:$0xff]  }
 0x2f7   :  { %v3140_v19 = vrot.slane %v3132_v62, %v6619_v26  ;;  %v9292_v0 = vmax.f32 %v8263_v9, 0.0  ;;  %v9293_v31 = vmax.f32 %v8269_v34, 0.0  ;;  %v8525_v36 = vrot.slane %v2695_v12, %v6619_v26 }
 0x2f8   :  { %v3147_v17 = vrot.slane %v3133_v30, %v6619_v26  ;;  %v8530_v52 = vrot.slane %v2701_v55, %v6619_v26  ;;  %v9294_v9 = vmax.f32 %v8348_v20, 0.0  ;;  %v9295_v56 = vmax.f32 %v8301_v60, 0.0  ;;  %v9297_v30 = vld [vmem:[#allocation27_spill] sm:$0xff] }
 0x2f9   :  { %v3150_v13 = vcombine.low %v9292_v0, %v9291_v63  ;;  %v3151_v28 = vcombine.low %v9293_v31, %v8354_v4  ;;  %v9296_v45 = vmax.f32 %v8357_v43, 0.0  ;;  %v8545_v27 = vrot.slane %v2707_v44, %v6619_v26  ;;  %v6353_v63 = vld [vmem:[%s9162_s3 + $0x310] ss:$8 sps:$4 sm:$0xff]  }
 0x2fa   :  { %v3168_v34 = vcombine.low %v9295_v56, %v9294_v9  ;;  %v3438_v58 = vpack.c.bf16 %v8501_v14, %v8505_v53  ;;  %v8552_v20 = vcombine.high %v3140_v19, %v3147_v17  ;;  %v8554_v60 = vcombine.low %v3140_v19, %v3147_v17 }
 0x2fb   :  { %v3169_v59 = vcombine.low %v9296_v45, %v8402_v21  ;;  %v3158_v35 = vrot.slane %v3150_v13, %v6619_v26  ;;  %v3165_v43 = vrot.slane %v3151_v28, %v6619_v26  ;;  %v8563_v54 = vrot.slane %v9221_v16, %v6619_v26 }
 0x2fc   :  { %v3176_v33 = vrot.slane %v3168_v34, %v6619_v26  ;;  %4613 = vmatmul.mubr.bf16.vlgmr.msra.gmra.mrb[0].mxu0 %v3438_v58  ;;  %v3459_v62 = vpack.c.bf16 %v8552_v20, %v8509_v49  ;;  %v3458_v47 = vpack.c.bf16 %v8554_v60, %v8513_v46  ;;  %v3287_v19 = vrot.slane %v9297_v30, 1 }
 0x2fd   :  { %v3183_v1 = vrot.slane %v3169_v59, %v6619_v26  ;;  %4654 = vmatpush1.bf16.msra.mxu0 %v6350_v11  ;;  %v3289_v17 = vrot.slane %v8482_v15, 1  ;;  %4622 = vmatprep.mubr.bf16.mxu0 %v3449_v10  ;;  %v8574_v0 = vcombine.high %v3158_v35, %v3165_v43  ;;  %v8578_v31 = vcombine.low %v3158_v35, %v3165_v43  ;;  %v6358_v11 = vld [vmem:[%s9162_s3 + $0x324] ss:$8 sps:$4 sm:$0xff]  }
 0x2fe   :  { %v3295_v28 = vrot.slane %v8484_v39, 1  ;;  %4655 = vmatprep.subr.bf16.mxu0 %v6355_v18  ;;  %v3286_v15 = vrot.slane %v8486_v48, 1  ;;  %v3292_v10 = vrot.slane %v8488_v6, 1  ;;  %v3301_v56 = vrot.slane %v8509_v49, 1  ;;  %v6356_v6 = vld [vmem:[%s9162_s3 + $0x320] ss:$8 sps:$4 sm:$0xff]  }
 0x2ff   :  { %v8576_v13 = vcombine.high %v3176_v33, %v3183_v1  ;;  %v8586_v9 = vcombine.low %v3176_v33, %v3183_v1  ;;  %v3307_v34 = vrot.slane %v8552_v20, 1  ;;  %v3298_v45 = vrot.slane %v8513_v46, 1  ;;  %v6361_v33 = vld [vmem:[%s9162_s3 + $0x334] ss:$8 sps:$4 sm:$0xff]  }
 0x300   :  { %v3304_v59 = vrot.slane %v8554_v60, 1  ;;  %v3313_v58 = vrot.slane %v8574_v0, 1  ;;  %v3310_v49 = vrot.slane %v8578_v31, 1  ;;  %v3233_v35 = vcombine.high %v9297_v30, %v9297_v30 }
 0x301   :  { %v3469_v39 = vpack.c.bf16 %v8576_v13, %v8574_v0  ;;  %v3319_v18 = vrot.slane %v8576_v13, 1  ;;  %4656 = vmatpush1.bf16.msra.mxu0 %v6353_v63  ;;  %v3316_v20 = vrot.slane %v8586_v9, 1  ;;  %v3241_v43 = vcombine.high %v8476_v40, %v8476_v40 }
 0x302   :  { %4657 = vmatprep.subr.bf16.mxu0 %v6358_v11  ;;  %v8611_v1 = vsel %vm660_vm7, %v3286_v15, %v3287_v19  ;;  %v3293_v63 = vrot.slane %v8476_v40, 1  ;;  %v3249_v0 = vcombine.high %v8525_v36, %v8525_v36  ;;  %v3257_v13 = vcombine.high %v8530_v52, %v8530_v52 }
 0x303   :  { %v3290_v30 = vrot.slane %v3233_v35, 1  ;;  %v3296_v7 = vrot.slane %v3241_v43, 1  ;;  %v3299_v48 = vrot.slane %v8525_v36, 1  ;;  %v3305_v11 = vrot.slane %v8530_v52, 1  ;;  %v6359_v35 = vld [vmem:[%s9162_s3 + $0x330] ss:$8 sps:$4 sm:$0xff]  }
 0x304   :  { %4623 = vmatmul.mubr.bf16.gmra.mrb[4].mxu0 %v3448_v29  ;;  %v8621_v16 = vsel %vm660_vm7, %v3292_v10, %v3293_v63  ;;  %v3302_v19 = vrot.slane %v3249_v0, 1  ;;  %v3308_v15 = vrot.slane %v3257_v13, 1  ;;  %v3265_v40 = vcombine.high %v8545_v27, %v8545_v27 }
 0x305   :  { %4658 = vmatpush1.bf16.msra.mxu0 %v6356_v6  ;;  %4632 = vmatprep.mubr.bf16.mxu0 %v3459_v62  ;;  %v8629_v43 = vsel %vm660_vm7, %v3289_v17, %v3290_v30  ;;  %v8632_v36 = vsel %vm660_vm7, %v3295_v28, %v3296_v7  ;;  %v3450_v29 = vpack.c.bf16 %v8621_v16, %v8611_v1  ;;  %v3311_v52 = vrot.slane %v8545_v27, 1  ;;  %v6364_v62 = vld [vmem:[%s9162_s3 + $0x344] ss:$8 sps:$4 sm:$0xff]   ;;  %v6410_v16 = vld [vmem:[%s9162_s3 + $0x440] ss:$8 sps:$4 sm:$0xff]   ;;  %v9304_v1 = vld [vmem:[#allocation16_spill] sm:$0xff] }
 0x306   :  { %4659 = vmatprep.subr.bf16.mxu0 %v6361_v33  ;;  %v3451_v10 = vpack.c.bf16 %v8632_v36, %v8629_v43  ;;  %v8643_v6 = vsel %vm660_vm7, %v3301_v56, %v3302_v19  ;;  %v8646_v17 = vsel %vm660_vm7, %v3307_v34, %v3308_v15  ;;  %v8649_v7 = vsel %vm660_vm7, %v3298_v45, %v3299_v48  ;;  %v6362_v45 = vld [vmem:[%s9162_s3 + $0x340] ss:$8 sps:$4 sm:$0xff]   ;;  %v9298_v48 = vld [vmem:[#allocation21_spill] sm:$0xff]  ;;  %v9299_v15 = vld [vmem:[#allocation20_spill] sm:$0xff] }
 0x307   :  { %v3461_v27 = vpack.c.bf16 %v8646_v17, %v8643_v6  ;;  %v8654_v28 = vsel %vm660_vm7, %v3304_v59, %v3305_v11  ;;  %v3273_v33 = vcombine.high %v8563_v54, %v8563_v54  ;;  %v3314_v63 = vrot.slane %v3265_v40, 1  ;;  %v6409_v43 = vld [vmem:[%s9162_s3 + $0x434] ss:$8 sps:$4 sm:$0xff]   ;;  %v6407_v36 = vld [vmem:[%s9162_s3 + $0x430] ss:$8 sps:$4 sm:$0xff]  }
 0x308   :  { %v3460_v56 = vpack.c.bf16 %v8654_v28, %v8649_v7  ;;  %v8661_v0 = vsel %vm660_vm7, %v3310_v49, %v3311_v52  ;;  %v3317_v34 = vrot.slane %v8563_v54, 1  ;;  %v3225_v59 = vcombine.high %v9298_v48, %v9298_v48  ;;  %v6367_v49 = vld [vmem:[%s9162_s3 + $0x354] ss:$8 sps:$4 sm:$0xff]   ;;  %v6416_v28 = vld [vmem:[%s9162_s3 + $0x460] ss:$8 sps:$4 sm:$0xff]  }
 0x309   :  { %4660 = vmatpush1.bf16.msra.mxu0 %v6359_v35  ;;  %v8670_v13 = vsel %vm660_vm7, %v3313_v58, %v3314_v63  ;;  %v3320_v30 = vrot.slane %v3273_v33, 1  ;;  %v3378_v54 = vcombine.low %v8209_v50, %v2695_v12  ;;  %v3283_v19 = vrot.slane %v8460_v5, 1  ;;  %v6365_v5 = vld [vmem:[%s9162_s3 + $0x350] ss:$8 sps:$4 sm:$0xff]   ;;  %v6415_v17 = vld [vmem:[%s9162_s3 + $0x454] ss:$8 sps:$4 sm:$0xff]  }
 0x30a   :  { %4661 = vmatprep.subr.bf16.mxu0 %v6364_v62  ;;  %v8676_v11 = vsel %vm660_vm7, %v3316_v20, %v3317_v34  ;;  %v3217_v40 = vcombine.high %v9299_v15, %v9299_v15  ;;  %v3277_v50 = vrot.slane %v8451_v25, 1  ;;  %v3284_v12 = vrot.slane %v3225_v59, 1  ;;  %v6368_v62 = vld [vmem:[%s9162_s3 + $0x360] ss:$8 sps:$4 sm:$0xff]  }
 0x30b   :  { %v8685_v58 = vsel %vm660_vm7, %v3319_v18, %v3320_v30  ;;  %v3470_v35 = vpack.c.bf16 %v8676_v11, %v8661_v0  ;;  %v6370_v18 = vld [vmem:[%s9162_s3 + $0x364] ss:$8 sps:$4 sm:$0xff]   ;;  %v3385_v46 = vrot.slane %v3378_v54, %v6619_v26  ;;  %v3388_v25 = vcombine.low %v8289_v38, %v2701_v55  ;;  %v6427_v0 = vld [vmem:[%s9162_s3 + $0x494] ss:$8 sps:$4 sm:$0xff]   ;;  %v6425_v11 = vld [vmem:[%s9162_s3 + $0x490] ss:$8 sps:$4 sm:$0xff]  }
 0x30c   :  { %4633 = vmatmul.mubr.bf16.gmra.mrb[8].mxu0 %v3458_v47  ;;  %v3471_v42 = vpack.c.bf16 %v8685_v58, %v8670_v13  ;;  %v3278_v60 = vrot.slane %v3217_v40, 1  ;;  %v3285_v47 = vsel %vm660_vm7, %v3283_v19, %v3284_v12  ;;  %v9300_v38 = vmax.f32 %v8434_v3, 0.0  ;;  %v6371_v3 = vld [vmem:[%s9162_s3 + $0x370] ss:$8 sps:$4 sm:$0xff]   ;;  %v6374_v19 = vld [vmem:[%s9162_s3 + $0x380] ss:$8 sps:$4 sm:$0xff]  }
 0x30d   :  { %4662 = vmatpush1.bf16.msra.mxu0 %v6362_v45  ;;  %4642 = vmatprep.mubr.bf16.mxu0 %v3469_v39  ;;  %v3398_v39 = vcombine.low %v8354_v4, %v2707_v44  ;;  %v3387_v20 = vcombine.high %v8223_v61, %v3385_v46  ;;  %v3386_v52 = vcombine.low %v8223_v61, %v3385_v46  ;;  %v6373_v61 = vld [vmem:[%s9162_s3 + $0x374] ss:$8 sps:$4 sm:$0xff]   ;;  %v6388_v46 = vld [vmem:[%s9162_s3 + $0x3c4] ss:$8 sps:$4 sm:$0xff]  }
 0x30e   :  { %4663 = vmatprep.subr.bf16.mxu0 %v6367_v49  ;;  %v3279_v33 = vsel %vm660_vm7, %v3277_v50, %v3278_v60  ;;  %v3395_v63 = vrot.slane %v3388_v25, %v6619_v26  ;;  %v3408_v32 = vcombine.low %v8402_v21, %v9300_v38  ;;  %v9301_v59 = vpack.c.bf16 %v8586_v9, %v8578_v31  ;;  %v6376_v31 = vld [vmem:[%s9162_s3 + $0x384] ss:$8 sps:$4 sm:$0xff]   ;;  %v6379_v40 = vld [vmem:[%s9162_s3 + $0x394] ss:$8 sps:$4 sm:$0xff]   ;;  %v6377_v50 = vld [vmem:[%s9162_s3 + $0x390] ss:$8 sps:$4 sm:$0xff]  }
 0x30f   :  { %v3405_v22 = vrot.slane %v3398_v39, %v6619_v26  ;;  %v3441_v4 = vpack.c.bf16 %v3285_v47, %v3279_v33  ;;  %v6385_v12 = vld [vmem:[%s9162_s3 + $0x3b4] ss:$8 sps:$4 sm:$0xff]   ;;  %v6386_v60 = vld [vmem:[%s9162_s3 + $0x3c0] ss:$8 sps:$4 sm:$0xff]   ;;  %v6389_v25 = vld [vmem:[%s9162_s3 + $0x3d0] ss:$8 sps:$4 sm:$0xff]  }
 0x310   :  { %v3397_v55 = vcombine.high %v8253_v8, %v3395_v63  ;;  %v3396_v44 = vcombine.low %v8253_v8, %v3395_v63  ;;  %v3415_v45 = vrot.slane %v3408_v32, %v6619_v26  ;;  %v6391_v47 = vld [vmem:[%s9162_s3 + $0x3d4] ss:$8 sps:$4 sm:$0xff]   ;;  %v6394_v39 = vld [vmem:[%s9162_s3 + $0x3e4] ss:$8 sps:$4 sm:$0xff]   ;;  %v3281_v33 = vrot.slane %v9298_v48, 1 }
 0x311   :  { %4664 = vmatpush1.bf16.msra.mxu0 %v6365_v5  ;;  %v3407_v34 = vcombine.high %v8314_v41, %v3405_v22  ;;  %v3406_v21 = vcombine.low %v8314_v41, %v3405_v22  ;;  %v6380_v5 = vld [vmem:[%s9162_s3 + $0x3a0] ss:$8 sps:$4 sm:$0xff]   ;;  %v3274_v63 = vrot.slane %v8505_v53, 1  ;;  %v6395_v22 = vld [vmem:[%s9162_s3 + $0x3f0] ss:$8 sps:$4 sm:$0xff]   ;;  %v3275_v32 = vrot.slane %v9299_v15, 1 }
 0x312   :  { %4665 = vmatprep.subr.bf16.mxu0 %v6370_v18  ;;  %v8734_v30 = vpack.c.bf16 %v3397_v55, %v3387_v20  ;;  %v8736_v49 = vpack.c.bf16 %v3396_v44, %v3386_v52  ;;  %v3417_v8 = vcombine.high %v8400_v37, %v3415_v45  ;;  %v3416_v9 = vcombine.low %v8400_v37, %v3415_v45  ;;  %v6382_v37 = vld [vmem:[%s9162_s3 + $0x3a4] ss:$8 sps:$4 sm:$0xff]   ;;  %v6383_v18 = vld [vmem:[%s9162_s3 + $0x3b0] ss:$8 sps:$4 sm:$0xff]   ;;  %v6392_v20 = vld [vmem:[%s9162_s3 + $0x3e0] ss:$8 sps:$4 sm:$0xff]  }
 0x313   :  { %v6397_v52 = vld [vmem:[%s9162_s3 + $0x3f4] ss:$8 sps:$4 sm:$0xff]   ;;  %v6400_v38 = vld [vmem:[%s9162_s3 + $0x404] ss:$8 sps:$4 sm:$0xff]   ;;  %v6398_v53 = vld [vmem:[%s9162_s3 + $0x400] ss:$8 sps:$4 sm:$0xff]  }
 0x314   :  { %4643 = vmatmul.mubr.bf16.gmra.mrb[12].mxu0 %v9301_v59  ;;  %v8743_v41 = vpack.c.bf16 %v3417_v8, %v3407_v34  ;;  %v8745_v54 = vpack.c.bf16 %v3416_v9, %v3406_v21  ;;  %v6401_v15 = vld [vmem:[%s9162_s3 + $0x410] ss:$8 sps:$4 sm:$0xff]   ;;  %v6406_v55 = vld [vmem:[%s9162_s3 + $0x424] ss:$8 sps:$4 sm:$0xff]   ;;  %v6404_v44 = vld [vmem:[%s9162_s3 + $0x420] ss:$8 sps:$4 sm:$0xff]  }
 0x315   :  { %4666 = vmatpush1.bf16.msra.mxu0 %v6368_v62  ;;  %4685 = vmatprep.mubr.bf16.mxu0 %v3441_v4  ;;  %v3280_v62 = vrot.slane %v8501_v14, 1  ;;  %v3276_v14 = vsel %vm660_vm7, %v3274_v63, %v3275_v32  ;;  %v9302_v34 = vld [vmem:[#allocation19_spill] sm:$0xff]  ;;  %v6421_v58 = vld [vmem:[%s9162_s3 + $0x474] ss:$8 sps:$4 sm:$0xff]   ;;  %v6419_v8 = vld [vmem:[%s9162_s3 + $0x470] ss:$8 sps:$4 sm:$0xff]  }
 0x316   :  { %4667 = vmatprep.subr.bf16.mxu0 %v6373_v61  ;;  %v6403_v61 = vld [vmem:[%s9162_s3 + $0x414] ss:$8 sps:$4 sm:$0xff]   ;;  %v9303_v45 = vmax.f32 %v9302_v34, 0.0  ;;  %v6418_v21 = vld [vmem:[%s9162_s3 + $0x464] ss:$8 sps:$4 sm:$0xff]  }
 0x317   :  { %v3282_v4 = vsel %vm660_vm7, %v3280_v62, %v3281_v33  ;;  %v6422_v9 = vld [vmem:[%s9162_s3 + $0x480] ss:$8 sps:$4 sm:$0xff]   ;;  %v6445_v62 = vld [vmem:[%s9162_s3 + $0x4f4] ss:$8 sps:$4 sm:$0xff]  }
 0x318   :  { %v3440_v48 = vpack.c.bf16 %v3282_v4, %v3276_v14  ;;  %v3348_v59 = vcombine.low %v7972_v24, %v9303_v45  ;;  %v9311_v4 = vld [vmem:[#allocation28_spill] sm:$0xff] }
 0x319   :  { %4668 = vmatpush1.bf16.msra.mxu0 %v6371_v3  ;;  %v9306_v3 = vld [vmem:[#allocation17_spill] sm:$0xff] }
 0x31a   :  { %4669 = vmatprep.subr.bf16.mxu0 %v6376_v31  ;;  %v6424_v31 = vld [vmem:[%s9162_s3 + $0x484] ss:$8 sps:$4 sm:$0xff]  }
 0x31d   :  { %4670 = vmatpush1.bf16.msra.mxu0 %v6374_v19  ;;  %v6428_v19 = vld [vmem:[%s9162_s3 + $0x4a0] ss:$8 sps:$4 sm:$0xff]  }
 0x31e   :  { %4671 = vmatprep.subr.bf16.mxu0 %v6379_v40  ;;  %v6433_v40 = vld [vmem:[%s9162_s3 + $0x4b4] ss:$8 sps:$4 sm:$0xff]  }
 0x321   :  { %4672 = vmatpush1.bf16.msra.mxu0 %v6377_v50  ;;  %v6431_v50 = vld [vmem:[%s9162_s3 + $0x4b0] ss:$8 sps:$4 sm:$0xff]  }
 0x322   :  { %4673 = vmatprep.subr.bf16.mxu0 %v6382_v37  ;;  %v6436_v37 = vld [vmem:[%s9162_s3 + $0x4c4] ss:$8 sps:$4 sm:$0xff]  }
 0x325   :  { %4674 = vmatpush1.bf16.msra.mxu0 %v6380_v5  ;;  %v6434_v5 = vld [vmem:[%s9162_s3 + $0x4c0] ss:$8 sps:$4 sm:$0xff]  }
 0x326   :  { %4675 = vmatprep.subr.bf16.mxu0 %v6385_v12  ;;  %v6439_v12 = vld [vmem:[%s9162_s3 + $0x4d4] ss:$8 sps:$4 sm:$0xff]  }
 0x329   :  { %4676 = vmatpush1.bf16.msra.mxu0 %v6383_v18  ;;  %v6437_v18 = vld [vmem:[%s9162_s3 + $0x4d0] ss:$8 sps:$4 sm:$0xff]  }
 0x32a   :  { %4677 = vmatprep.subr.bf16.mxu0 %v6388_v46  ;;  %v6442_v46 = vld [vmem:[%s9162_s3 + $0x4e4] ss:$8 sps:$4 sm:$0xff]  }
 0x32d   :  { %4678 = vmatpush1.bf16.msra.mxu0 %v6386_v60  ;;  %v9308_v60 = vmax.f32 %v8375_v51, 0.0 }
 0x32e   :  { %4679 = vmatprep.subr.bf16.mxu0 %v6391_v47 }
 0x32f   :  { %v3368_v47 = vcombine.low %v8115_v23, %v9308_v60  ;;  %v6472_v60 = vld [vmem:[%s9164_s5 + $0xf0] sm:$0xff]  }
 0x331   :  { %4680 = vmatpush1.bf16.msra.mxu0 %v6389_v25  ;;  %v6440_v25 = vld [vmem:[%s9162_s3 + $0x4e0] ss:$8 sps:$4 sm:$0xff]   ;;  %v3375_v51 = vrot.slane %v3368_v47, %v6619_v26  ;;  %v6473_v47 = vld [vmem:[%s9164_s5 + $0xb0] sm:$0xff]  }
 0x332   :  { %4681 = vmatprep.subr.bf16.mxu0 %v6394_v39  ;;  %v9309_v39 = vld [vmem:[#allocation24_spill] sm:$0xff] }
 0x333   :  { %v3377_v14 = vcombine.high %v9311_v4, %v3375_v51 }
 0x335   :  { %4682 = vmatpush1.bf16.msra.mxu0 %v6392_v20  ;;  %v9310_v20 = vmax.f32 %v9309_v39, 0.0  ;;  %v6475_v39 = vld [vmem:[%s9164_s5 + $0x38] sm:$0xff]  }
 0x336   :  { %4683 = vmatprep.subr.bf16.mxu0 %v6397_v52 }
 0x337   :  { %v3358_v52 = vcombine.low %v8089_v2, %v9310_v20  ;;  %v6476_v20 = vld [vmem:[%s9164_s5 + $0xf8] sm:$0xff]  }
 0x339   :  { %4684 = vmatpush1.bf16.msra.mxu0 %v6395_v22  ;;  %v6443_v22 = vld [vmem:[%s9162_s3 + $0x4f0] ss:$8 sps:$4 sm:$0xff]   ;;  %v3365_v2 = vrot.slane %v3358_v52, %v6619_v26 }
 0x33a   :  { %4726 = vmatprep.subr.bf16.mxu0 %v6400_v38  ;;  %v6477_v52 = vld [vmem:[%s9164_s5 + $0xb8] sm:$0xff]  }
 0x33c   :  { %4686 = vmatmul.mubr.bf16.vlgmr.msra.gmra.mrb[0].mxu0 %v3440_v48  ;;  %v9312_v48 = vld [vmem:[#allocation22_spill] sm:$0xff] }
 0x33d   :  { %4695 = vmatprep.mubr.bf16.mxu0 %v3451_v10  ;;  %4727 = vmatpush1.bf16.msra.mxu0 %v6398_v53  ;;  %v6412_v10 = vld [vmem:[%s9162_s3 + $0x444] ss:$8 sps:$4 sm:$0xff]  }
 0x33e   :  { %4728 = vmatprep.subr.bf16.mxu0 %v6403_v61  ;;  %v3367_v61 = vcombine.high %v9312_v48, %v3365_v2 }
 0x341   :  { %4729 = vmatpush1.bf16.msra.mxu0 %v6401_v15 }
 0x342   :  { %4730 = vmatprep.subr.bf16.mxu0 %v6406_v55  ;;  %v3453_v55 = vpack.c.bf16 %v3377_v14, %v3367_v61 }
 0x344   :  { %4696 = vmatmul.mubr.bf16.gmra.mrb[4].mxu0 %v3450_v29  ;;  %v9305_v29 = vmax.f32 %v9304_v1, 0.0 }
 0x345   :  { %4705 = vmatprep.mubr.bf16.mxu0 %v3461_v27  ;;  %4731 = vmatpush1.bf16.msra.mxu0 %v6404_v44  ;;  %v8847_v27 = vrot.slane %v3348_v59, %v6619_v26  ;;  %v3376_v44 = vcombine.low %v9311_v4, %v3375_v51 }
 0x346   :  { %4732 = vmatprep.subr.bf16.mxu0 %v6409_v43  ;;  %v3338_v6 = vcombine.low %v7934_v57, %v9305_v29  ;;  %v6413_v57 = vld [vmem:[%s9162_s3 + $0x450] ss:$8 sps:$4 sm:$0xff]   ;;  %v3366_v43 = vcombine.low %v9312_v48, %v3365_v2 }
 0x347   :  { %v3357_v7 = vcombine.high %v9306_v3, %v8847_v27  ;;  %v3356_v32 = vcombine.low %v9306_v3, %v8847_v27  ;;  %v6447_v27 = vld [vmem:[%s9164_s5] sm:$0xff]   ;;  %v6451_v3 = vld [vmem:[%s9164_s5 + $0x8] sm:$0xff]  }
 0x348   :  { %v3345_v24 = vrot.slane %v3338_v6, %v6619_v26 }
 0x349   :  { %4733 = vmatpush1.bf16.msra.mxu0 %v6407_v36  ;;  %v3452_v36 = vpack.c.bf16 %v3376_v44, %v3366_v43  ;;  %v9081_v43 = vld [vmem:[%s9166_s4] ss:$0 sm:$0xff] }
 0x34a   :  { %4734 = vmatprep.subr.bf16.mxu0 %v6412_v10 }
 0x34c   :  { %4706 = vmatmul.mubr.bf16.gmra.mrb[8].mxu0 %v3460_v56  ;;  %v9307_v56 = vld [vmem:[#allocation15_spill] sm:$0xff] }
 0x34d   :  { %4715 = vmatprep.mubr.bf16.mxu0 %v3471_v42  ;;  %4735 = vmatpush1.bf16.msra.mxu0 %v6410_v16  ;;  %v3347_v13 = vcombine.high %v9307_v56, %v3345_v24  ;;  %v3346_v53 = vcombine.low %v9307_v56, %v3345_v24  ;;  %v6449_v24 = vld [vmem:[%s9164_s5 + $0x80] sm:$0xff]   ;;  %v6454_v56 = vld [vmem:[%s9164_s5 + $0x50] sm:$0xff]  }
 0x34e   :  { %4736 = vmatprep.subr.bf16.mxu0 %v6415_v17  ;;  %v6446_v17 = vld [vmem:[%s9164_s5 + $0x40] sm:$0xff]  }
 0x34f   :  { %v3443_v42 = vpack.c.bf16 %v3357_v7, %v3347_v13  ;;  %v3442_v15 = vpack.c.bf16 %v3356_v32, %v3346_v53  ;;  %v6452_v7 = vld [vmem:[%s9164_s5 + $0xc8] sm:$0xff]   ;;  %v6455_v13 = vld [vmem:[%s9164_s5 + $0x10] sm:$0xff]  }
 0x351   :  { %4737 = vmatpush1.bf16.msra.mxu0 %v6413_v57  ;;  %v6448_v57 = vld [vmem:[%s9164_s5 + $0xc0] sm:$0xff]  }
 0x352   :  { %4738 = vmatprep.subr.bf16.mxu0 %v6418_v21  ;;  %5760 = vmatprep.subr.bf16.mxu1 %v6448_v57  ;;  %v6450_v21 = vld [vmem:[%s9164_s5 + $0x48] sm:$0xff]  }
 0x353   :  { %5761 = vmatpush3.bf16.msra.mxu1 %v6449_v24 }
 0x354   :  { %4716 = vmatmul.mubr.bf16.gmra.mrb[12].mxu0 %v3470_v35  ;;  %v6430_v35 = vld [vmem:[%s9162_s3 + $0x4a4] ss:$8 sps:$4 sm:$0xff]   ;;  %5762 = vmatprep.subr.bf16.mxu1 %v6452_v7 }
 0x355   :  { %4739 = vmatpush1.bf16.msra.mxu0 %v6416_v28  ;;  %4758 = vmatprep.mubr.bf16.mxu0 %v3443_v42  ;;  %v6453_v28 = vld [vmem:[%s9164_s5 + $0x88] sm:$0xff]   ;;  %v6457_v42 = vld [vmem:[%s9164_s5 + $0x90] sm:$0xff]  }
 0x356   :  { %4740 = vmatprep.subr.bf16.mxu0 %v6421_v58  ;;  %v6456_v58 = vld [vmem:[%s9164_s5 + $0xd0] sm:$0xff]  }
 0x357   :  { %5763 = vmatpush3.bf16.msra.mxu1 %v6453_v28 }
 0x358   :  { %5764 = vmatprep.subr.bf16.mxu1 %v6456_v58 }
 0x359   :  { %4741 = vmatpush1.bf16.msra.mxu0 %v6419_v8  ;;  %v6458_v8 = vld [vmem:[%s9164_s5 + $0x58] sm:$0xff]  }
 0x35a   :  { %4742 = vmatprep.subr.bf16.mxu0 %v6424_v31  ;;  %v6459_v31 = vld [vmem:[%s9164_s5 + $0x18] sm:$0xff]  }
 0x35b   :  { %5765 = vmatpush3.bf16.msra.mxu1 %v6457_v42 }
 0x35d   :  { %4743 = vmatpush1.bf16.msra.mxu0 %v6422_v9  ;;  %v6460_v9 = vld [vmem:[%s9164_s5 + $0xd8] sm:$0xff]  }
 0x35e   :  { %4744 = vmatprep.subr.bf16.mxu0 %v6427_v0  ;;  %v6461_v0 = vld [vmem:[%s9164_s5 + $0x98] sm:$0xff]   ;;  %5766 = vmatprep.subr.bf16.mxu1 %v6460_v9 }
 0x35f   :  { %5767 = vmatpush3.bf16.msra.mxu1 %v6461_v0 }
 0x361   :  { %4745 = vmatpush1.bf16.msra.mxu0 %v6425_v11  ;;  %v6462_v11 = vld [vmem:[%s9164_s5 + $0x60] sm:$0xff]  }
 0x362   :  { %4746 = vmatprep.subr.bf16.mxu0 %v6430_v35  ;;  %v6463_v35 = vld [vmem:[%s9164_s5 + $0x20] sm:$0xff]  }
 0x365   :  { %4747 = vmatpush1.bf16.msra.mxu0 %v6428_v19  ;;  %v6464_v19 = vld [vmem:[%s9164_s5 + $0xe0] sm:$0xff]  }
 0x366   :  { %4748 = vmatprep.subr.bf16.mxu0 %v6433_v40  ;;  %v6465_v40 = vld [vmem:[%s9164_s5 + $0xa0] sm:$0xff]   ;;  %5768 = vmatprep.subr.bf16.mxu1 %v6464_v19  ;;  %v6521_v19 = vmov 1935823168  }
 0x367   :  { %5769 = vmatpush3.bf16.msra.mxu1 %v6465_v40  ;;  %v4937_v40 = vunpack.c.l.s4 %v6521_v19 }
 0x369   :  { %4749 = vmatpush1.bf16.msra.mxu0 %v6431_v50  ;;  %v6466_v50 = vld [vmem:[%s9164_s5 + $0x68] sm:$0xff]  }
 0x36a   :  { %4750 = vmatprep.subr.bf16.mxu0 %v6436_v37  ;;  %v6467_v37 = vld [vmem:[%s9164_s5 + $0x28] sm:$0xff]  }
 0x36c   :  { %v8928_v33 = vpop.f32.mrb[96].mxu1 }
 0x36d   :  { %4751 = vmatpush1.bf16.msra.mxu0 %v6434_v5  ;;  %v8931_v63 = vpop.f32.mrb[97].mxu1  ;;  %v6468_v5 = vld [vmem:[%s9164_s5 + $0xe8] sm:$0xff]  }
 0x36e   :  { %4752 = vmatprep.subr.bf16.mxu0 %v6439_v12  ;;  %v8933_v23 = vpop.f32.mrb[98].mxu1  ;;  %v6469_v12 = vld [vmem:[%s9164_s5 + $0xa8] sm:$0xff]   ;;  %5770 = vmatprep.subr.bf16.mxu1 %v6468_v5 }
 0x36f   :  { %v8939_v38 = vpop.f32.mrb[99].mxu1  ;;  %5771 = vmatpush3.bf16.msra.mxu1 %v6469_v12 }
 0x370   :  { %5772 = vmatprep.subr.bf16.mxu1 %v6472_v60 }
 0x371   :  { %4753 = vmatpush1.bf16.msra.mxu0 %v6437_v18  ;;  %v6470_v18 = vld [vmem:[%s9164_s5 + $0x70] sm:$0xff]  }
 0x372   :  { %4754 = vmatprep.subr.bf16.mxu0 %v6442_v46  ;;  %v6471_v46 = vld [vmem:[%s9164_s5 + $0x30] sm:$0xff]  }
 0x373   :  { %5773 = vmatpush3.bf16.msra.mxu1 %v6473_v47 }
 0x374   :  { %5774 = vmatprep.subr.bf16.mxu1 %v6476_v20  ;;  %v4938_v20 = vunpack.c.0.s8 %v4937_v40 }
 0x375   :  { %4755 = vmatpush1.bf16.msra.mxu0 %v6440_v25  ;;  %v6474_v25 = vld [vmem:[%s9164_s5 + $0x78] sm:$0xff]  }
 0x376   :  { %4756 = vmatprep.subr.bf16.mxu0 %v6445_v62  ;;  %v9313_v62 = vmov 0.0  }
 0x377   :  { %5775 = vmatpush3.bf16.msra.mxu1 %v6477_v52 }
 0x378   :  { %5791 = vmatprep.subr.bf16.mxu1 %v9313_v62 }
 0x379   :  { %4757 = vmatpush1.bf16.msra.mxu0 %v6443_v22 }
 0x37a   :  { %5738 = vmatprep.subr.bf16.mxu0 %v6446_v17 }
 0x37c   :  { %4759 = vmatmul.mubr.bf16.vlgmr.msra.gmra.mrb[0].mxu0 %v3442_v15  ;;  %v9314_v15 = vld [vmem:[#allocation11_spill] sm:$0xff] }
 0x37d   :  { %4768 = vmatprep.mubr.bf16.mxu0 %v3453_v55  ;;  %5739 = vmatpush3.bf16.msra.mxu0 %v6447_v27 }
 0x37e   :  { %5740 = vmatprep.subr.bf16.mxu0 %v6450_v21 }
 0x381   :  { %5741 = vmatpush3.bf16.msra.mxu0 %v6451_v3 }
 0x382   :  { %5742 = vmatprep.subr.bf16.mxu0 %v6454_v56 }
 0x384   :  { %4769 = vmatmul.mubr.bf16.gmra.mrb[4].mxu0 %v3452_v36 }
 0x385   :  { %4778 = vmatprep.mubr.bf16.mxu0 %v8734_v30  ;;  %5743 = vmatpush3.bf16.msra.mxu0 %v6455_v13 }
 0x386   :  { %5744 = vmatprep.subr.bf16.mxu0 %v6458_v8 }
 0x389   :  { %5745 = vmatpush3.bf16.msra.mxu0 %v6459_v31 }
 0x38a   :  { %5746 = vmatprep.subr.bf16.mxu0 %v6462_v11 }
 0x38c   :  { %4779 = vmatmul.mubr.bf16.gmra.mrb[8].mxu0 %v8736_v49 }
 0x38d   :  { %4788 = vmatprep.mubr.bf16.mxu0 %v8743_v41  ;;  %5747 = vmatpush3.bf16.msra.mxu0 %v6463_v35 }
 0x38e   :  { %v8952_v10 = vpop.f32.mrb[100].mxu1  ;;  %5748 = vmatprep.subr.bf16.mxu0 %v6466_v50 }
 0x38f   :  { %v8954_v34 = vpop.f32.mrb[101].mxu1 }
 0x390   :  { %v8956_v45 = vpop.f32.mrb[102].mxu1 }
 0x391   :  { %v8958_v59 = vpop.f32.mrb[103].mxu1  ;;  %5749 = vmatpush3.bf16.msra.mxu0 %v6467_v37 }
 0x392   :  { %5750 = vmatprep.subr.bf16.mxu0 %v6470_v18 }
 0x394   :  { %4789 = vmatmul.mubr.bf16.gmra.mrb[12].mxu0 %v8745_v54 }
 0x395   :  { %5751 = vmatpush3.bf16.msra.mxu0 %v6471_v46 }
 0x396   :  { %5752 = vmatprep.subr.bf16.mxu0 %v6474_v25 }
 0x399   :  { %5753 = vmatpush3.bf16.msra.mxu0 %v6475_v39 }
 0x3ab   :  { %v8960_v16 = vpop.f32.mrb[104].mxu1 }
 0x3ac   :  { %v8962_v1 = vpop.f32.mrb[105].mxu1 }
 0x3ad   :  { %v8964_v29 = vpop.f32.mrb[106].mxu1 }
 0x3ae   :  { %v8966_v30 = vpop.f32.mrb[107].mxu1 }
 0x3bc   :  { %v8968_v49 = vpop.f32.mrb[108].mxu1 }
 0x3bd   :  { %v8970_v41 = vpop.f32.mrb[109].mxu1 }
 0x3be   :  { %v8972_v54 = vpop.f32.mrb[110].mxu1 }
 0x3bf   :  { %v8974_v6 = vpop.f32.mrb[111].mxu1 }
 0x44f   :  { %v4760_v51 = vpop.f32.mrb[0].mxu0 }
 0x450   :  { %v5811_v22 = vadd.f32 %v4760_v51, %v8928_v33  ;;  %v4762_v2 = vpop.f32.mrb[1].mxu0 }
 0x451   :  { %v5812_v32 = vadd.f32 %v4762_v2, %v8931_v63  ;;  %v4764_v4 = vpop.f32.mrb[2].mxu0 }
 0x452   :  { %v5813_v14 = vadd.f32 %v4764_v4, %v8933_v23  ;;  %v4766_v53 = vpop.f32.mrb[3].mxu0 }
 0x453   :  { %v4799_v48 = vmax.f32 %v5811_v22, %v5812_v32  ;;  %v5814_v61 = vadd.f32 %v4766_v53, %v8939_v38  ;;  %v9087_v38 = vcombine.high %v9081_v43, %v9081_v43  ;;  %v9315_v53 = vld [vmem:[#allocation2_spill] sm:$0xff] }
 0x455   :  { %v4813_v55 = vrot.slane %v4799_v48, %v9314_v15  ;;  %v4800_v44 = vmax.f32 %v5813_v14, %v5814_v61  ;;  %v4941_v48 = vsub.s32 %v4938_v20, %v9315_v53  ;;  %v6481_v20 = vld [vmem:[%s9165_s7 + $0x18] sm:$0xff]  }
 0x457   :  { %v4871_v36 = vrot.slane %v4813_v55, 4  ;;  %v4820_v33 = vrot.slane %v4800_v44, %v9314_v15  ;;  %v4770_v17 = vpop.f32.mrb[4].mxu0 }
 0x458   :  { %v5815_v63 = vadd.f32 %v4770_v17, %v8952_v10  ;;  %v4772_v27 = vpop.f32.mrb[5].mxu0 }
 0x459   :  { %v4887_v23 = vmax.f32 %v4813_v55, %v4871_v36  ;;  %v4872_v57 = vrot.slane %v4820_v33, 4  ;;  %v5816_v24 = vadd.f32 %v4772_v27, %v8954_v34  ;;  %v4774_v21 = vpop.f32.mrb[6].mxu0 }
 0x45a   :  { %v5817_v3 = vadd.f32 %v4774_v21, %v8956_v45  ;;  %v4776_v7 = vpop.f32.mrb[7].mxu0 }
 0x45b   :  { %v4904_v28 = vadd.f32 %v9081_v43, %v4887_v23  ;;  %v4888_v56 = vmax.f32 %v4820_v33, %v4872_v57  ;;  %v4801_v13 = vmax.f32 %v5815_v63, %v5816_v24  ;;  %v5818_v58 = vadd.f32 %v4776_v7, %v8958_v59 }
 0x45d   :  { %v4905_v10 = vadd.f32 %v9087_v38, %v4888_v56  ;;  %v4827_v42 = vrot.slane %v4801_v13, %v9314_v15  ;;  %v4802_v8 = vmax.f32 %v5817_v3, %v5818_v58  ;;  %v4912_v31 = vmax.f32 %v4904_v28, 0.0 }
 0x45f   :  { %v4913_v9 = vmax.f32 %v4905_v10, 0.0  ;;  %v4873_v0 = vrot.slane %v4827_v42, 4  ;;  %v4834_v34 = vrot.slane %v4802_v8, %v9314_v15  ;;  %v4780_v11 = vpop.f32.mrb[8].mxu0 }
 0x460   :  { %v5819_v45 = vadd.f32 %v4780_v11, %v8960_v16  ;;  %v4782_v35 = vpop.f32.mrb[9].mxu0 }
 0x461   :  { %v4928_v50 = vcombine.low %v4912_v31, %v4913_v9  ;;  %v4889_v37 = vmax.f32 %v4827_v42, %v4873_v0  ;;  %v4874_v5 = vrot.slane %v4834_v34, 4  ;;  %v5820_v59 = vadd.f32 %v4782_v35, %v8962_v1  ;;  %v4784_v12 = vpop.f32.mrb[10].mxu0 }
 0x462   :  { %v5821_v18 = vadd.f32 %v4784_v12, %v8964_v29  ;;  %v4786_v46 = vpop.f32.mrb[11].mxu0 }
 0x463   :  { %v4906_v60 = vadd.f32 %v9081_v43, %v4889_v37  ;;  %v4890_v47 = vmax.f32 %v4834_v34, %v4874_v5  ;;  %v4803_v25 = vmax.f32 %v5819_v45, %v5820_v59  ;;  %v5822_v39 = vadd.f32 %v4786_v46, %v8966_v30 }
 0x464   :  { %v4942_v24 = vrot.slane %v4928_v50, %v4941_v48 }
 0x465   :  { %v4907_v16 = vadd.f32 %v9087_v38, %v4890_v47  ;;  %v4841_v52 = vrot.slane %v4803_v25, %v9314_v15  ;;  %v4804_v51 = vmax.f32 %v5821_v18, %v5822_v39  ;;  %v4914_v22 = vmax.f32 %v4906_v60, 0.0  ;;  %v6478_v25 = vld [vmem:[%s9165_s7] sm:$0xff]   ;;  %v6480_v39 = vld [vmem:[%s9165_s7 + $0x10] sm:$0xff]  }
 0x467   :  { %v4915_v2 = vmax.f32 %v4907_v16, 0.0  ;;  %v4875_v32 = vrot.slane %v4841_v52, 4  ;;  %v4848_v1 = vrot.slane %v4804_v51, %v9314_v15  ;;  %v4790_v4 = vpop.f32.mrb[12].mxu0  ;;  %v6482_v16 = vld [vmem:[%s9165_s7 + $0x20] sm:$0xff]   ;;  %v6484_v51 = vld [vmem:[%s9165_s7 + $0x30] sm:$0xff]  }
 0x468   :  { %v5823_v29 = vadd.f32 %v4790_v4, %v8968_v49  ;;  %v4792_v14 = vpop.f32.mrb[13].mxu0 }
 0x469   :  { %v4929_v61 = vcombine.low %v4914_v22, %v4915_v2  ;;  %v4891_v55 = vmax.f32 %v4841_v52, %v4875_v32  ;;  %v4876_v30 = vrot.slane %v4848_v1, 4  ;;  %v5824_v44 = vadd.f32 %v4792_v14, %v8970_v41  ;;  %v4794_v36 = vpop.f32.mrb[14].mxu0  ;;  %v6483_v52 = vld [vmem:[%s9165_s7 + $0x28] sm:$0xff]   ;;  %v6485_v22 = vld [vmem:[%s9165_s7 + $0x38] sm:$0xff]  }
 0x46a   :  { %v5825_v33 = vadd.f32 %v4794_v36, %v8972_v54  ;;  %v4796_v17 = vpop.f32.mrb[15].mxu0 }
 0x46b   :  { %v4908_v63 = vadd.f32 %v9081_v43, %v4891_v55  ;;  %v4892_v27 = vmax.f32 %v4848_v1, %v4876_v30  ;;  %v4805_v23 = vmax.f32 %v5823_v29, %v5824_v44  ;;  %v5826_v57 = vadd.f32 %v4796_v17, %v8974_v6  ;;  %v5696_v1 = vld [vmem:[%s9167_s6] ss:$0 sm:$0xff] }
 0x46c   :  { %v4949_v49 = vrot.slane %v4929_v61, %v4941_v48 }
 0x46d   :  { %v4909_v21 = vadd.f32 %v9087_v38, %v4892_v27  ;;  %v4855_v3 = vrot.slane %v4805_v23, %v9314_v15  ;;  %v4806_v7 = vmax.f32 %v5825_v33, %v5826_v57  ;;  %v4916_v41 = vmax.f32 %v4908_v63, 0.0 }
 0x46e   :  { %v4968_v28 = vcombine.low %v4942_v24, %v4949_v49  ;;  %v4969_v56 = vcombine.high %v4942_v24, %v4949_v49 }
 0x46f   :  { %v4917_v13 = vmax.f32 %v4909_v21, 0.0  ;;  %v4877_v58 = vrot.slane %v4855_v3, 4  ;;  %v4862_v54 = vrot.slane %v4806_v7, %v9314_v15 }
 0x470   :  { %v4978_v50 = vrot.slane %v4968_v28, %v6619_v26  ;;  %v4985_v15 = vrot.slane %v4969_v56, %v6619_v26 }
 0x471   :  { %v4930_v10 = vcombine.low %v4916_v41, %v4917_v13  ;;  %v4893_v42 = vmax.f32 %v4855_v3, %v4877_v58  ;;  %v4878_v8 = vrot.slane %v4862_v54, 4 }
 0x473   :  { %v4910_v31 = vadd.f32 %v9081_v43, %v4893_v42  ;;  %v4894_v6 = vmax.f32 %v4862_v54, %v4878_v8  ;;  %v4956_v45 = vrot.slane %v4930_v10, %v4941_v48 }
 0x475   :  { %v4911_v9 = vadd.f32 %v9087_v38, %v4894_v6  ;;  %v4918_v0 = vmax.f32 %v4910_v31, 0.0 }
 0x477   :  { %v4919_v34 = vmax.f32 %v4911_v9, 0.0 }
 0x479   :  { %v4931_v11 = vcombine.low %v4918_v0, %v4919_v34 }
 0x47b   :  { %v4963_v35 = vrot.slane %v4931_v11, %v4941_v48 }
 0x47d   :  { %v4970_v19 = vcombine.low %v4956_v45, %v4963_v35  ;;  %v4971_v40 = vcombine.high %v4956_v45, %v4963_v35 }
 0x47f   :  { %v4992_v37 = vrot.slane %v4970_v19, %v6619_v26  ;;  %v4999_v5 = vrot.slane %v4971_v40, %v6619_v26  ;;  %v6479_v26 = vld [vmem:[%s9165_s7 + $0x8] sm:$0xff]  }
 0x481   :  { %v5000_v59 = vcombine.low %v4978_v50, %v4992_v37  ;;  %v5001_v43 = vcombine.high %v4978_v50, %v4992_v37  ;;  %v5002_v12 = vcombine.low %v4985_v15, %v4999_v5  ;;  %v5003_v18 = vcombine.high %v4985_v15, %v4999_v5 }
 0x483   :  { %v5008_v38 = vpack.c.bf16 %v5000_v59, %v5000_v59  ;;  %v5009_v46 = vpack.c.bf16 %v5001_v43, %v5001_v43  ;;  %v5010_v60 = vpack.c.bf16 %v5002_v12, %v5002_v12  ;;  %v5011_v47 = vpack.c.bf16 %v5003_v18, %v5003_v18 }
 0x485   :  { %5307 = vmatprep.mubr.bf16.mxu0 %v5009_v46  ;;  %5347 = vmatprep.mubr.bf16.mxu1 %v5011_v47 }
 0x486   :  { %5308 = vmatmul.mubr.bf16.vlgmr.msra.gmra.mrb[16].mxu0 %v5008_v38  ;;  %5348 = vmatmul.mubr.bf16.vlgmr.msra.gmra.mrb[112].mxu1 %v5010_v60 }
 0x487   :  { %5792 = vmatpush3.bf16.msra.mxu1 %v6478_v25  ;;  %5807 = vmatprep.mubr.msk.bf16.mxu1 %vm6522_vm14, %v9313_v62 }
 0x488   :  { %5793 = vmatprep.subr.bf16.mxu1 %v9313_v62 }
 0x48b   :  { %5794 = vmatpush3.bf16.msra.mxu1 %v6479_v26 }
 0x48c   :  { %5795 = vmatprep.subr.bf16.mxu1 %v9313_v62 }
 0x48f   :  { %5796 = vmatpush3.bf16.msra.mxu1 %v6480_v39 }
 0x490   :  { %5797 = vmatprep.subr.bf16.mxu1 %v9313_v62 }
 0x493   :  { %5798 = vmatpush3.bf16.msra.mxu1 %v6481_v20 }
 0x494   :  { %5799 = vmatprep.subr.bf16.mxu1 %v9313_v62 }
 0x497   :  { %5800 = vmatpush3.bf16.msra.mxu1 %v6482_v16 }
 0x498   :  { %5801 = vmatprep.subr.bf16.mxu1 %v9313_v62 }
 0x49b   :  { %5802 = vmatpush3.bf16.msra.mxu1 %v6483_v52 }
 0x49c   :  { %5803 = vmatprep.subr.bf16.mxu1 %v9313_v62 }
 0x49f   :  { %5804 = vmatpush3.bf16.msra.mxu1 %v6484_v51 }
 0x4a0   :  { %5805 = vmatprep.subr.bf16.mxu1 %v9313_v62  ;;  %v5729_v62 = vld [vmem:[%s9168_s8] ss:$0 sm:$0xff] }
 0x4a3   :  { %5806 = vmatpush3.bf16.msra.mxu1 %v6485_v22 }
 0x559   :  { %v5754_v2 = vpop.f32.mrb[16].mxu0  ;;  %v5776_v32 = vpop.f32.mrb[112].mxu1 }
 0x55a   :  { %v5755_v4 = vpop.f32.mrb[17].mxu0  ;;  %v5777_v29 = vpop.f32.mrb[113].mxu1 }
 0x55b   :  { %v5756_v14 = vadd.f32 %v5755_v4, %v5754_v2  ;;  %v5778_v53 = vadd.f32 %v5777_v29, %v5776_v32  ;;  %v5757_v48 = vpop.f32.mrb[18].mxu0  ;;  %v5779_v61 = vpop.f32.mrb[114].mxu1 }
 0x55c   :  { %v5758_v55 = vpop.f32.mrb[19].mxu0  ;;  %v5780_v30 = vpop.f32.mrb[115].mxu1 }
 0x55d   :  { %v5310_v44 = vadd.f32 %v5756_v14, %v5696_v1 }
 0x55f   :  { %v5350_v36 = vadd.f32 %v5778_v53, %v5310_v44 }
 0x561   :  { %v5355_v33 = vmax.f32 %v5350_v36, 0.0 }
 0x563   :  { %v5356_v17 = vpack.c.bf16 %v5355_v33, %v5355_v33 }
 0x565   :  { %5808 = vmatmul.mubr.bf16.vlgmr.msra.gmra.mrb[116].mxu1 %v5356_v17 }
 0x638   :  { %v5462_v63 = vpop.f32.mrb[116].mxu1 }
 0x639   :  { %v5463_v27 = vadd.f32 %v5729_v62, %v5462_v63  ;;  %v5809_v23 = vpop.f32.mrb[117].mxu1 }
 0x63a   :  { %v5465_v57 = vpop.f32.mrb[118].mxu1 }
 0x63b   :  { %5468 = vst [vmem:[%s9169_s9] sm:$0xff] %v5463_v27  ;;  %v5810_v24 = vpop.f32.mrb[119].mxu1 }

</bundles_post_ra>
